<compile_context>
chip_gen: v7x
topology: tpu7x:2x2x1
jax: 0.10.0
libtpu: 0.0.40
codegen_flags: <defaults>
</compile_context>

<pallas_src>
import functools

import jax
import jax.numpy as jnp
from jax.experimental import pallas as pl
from jax.experimental.pallas import tpu as pltpu

EPS = 1e-5  # PyTorch InstanceNorm2d default
VMEM_LIMIT = 64 * 1024 * 1024  # explicit scoped-VMEM budget (fits v5e/v6e/v7x)


# ----------------------------------------------------------------------------
# Pallas kernel: one deep matmul + (bias) + InstanceNorm + ReLU + residual
# ----------------------------------------------------------------------------
def _conv_kernel_body(*refs, apply_norm, apply_relu, has_residual, has_bias):
    idx = 0
    taps_ref = refs[idx]; idx += 1          # (1, KK*Cin, hw)  bf16
    w_ref = refs[idx]; idx += 1             # (Cout, KK*Cin)   bf16
    if has_bias:
        b_ref = refs[idx]; idx += 1         # (Cout, 1)        f32
    if has_residual:
        res_ref = refs[idx]; idx += 1       # (1, Cout, hw)    bf16
    o_ref = refs[idx]                       # (1, Cout, hw)

    x = taps_ref[0]                         # (KK*Cin, hw)
    w = w_ref[...]                          # (Cout, KK*Cin)
    # Single MXU matmul, contraction depth KK*Cin, f32 accumulation.
    acc = jnp.dot(w, x, preferred_element_type=jnp.float32)   # (Cout, hw)

    if has_bias:
        acc = acc + b_ref[...]              # broadcast over hw (lane) axis

    if apply_norm:
        # InstanceNorm2d(affine=False): per-channel stats over the spatial axis.
        mean = jnp.mean(acc, axis=1, keepdims=True)
        var = jnp.mean((acc - mean) ** 2, axis=1, keepdims=True)
        acc = (acc - mean) * jax.lax.rsqrt(var + EPS)

    if apply_relu:
        acc = jnp.maximum(acc, 0.0)

    if has_residual:
        acc = acc + res_ref[0].astype(jnp.float32)   # ResnetBlock: x + block(x)

    o_ref[0] = acc.astype(o_ref.dtype)


# ----------------------------------------------------------------------------
# Pallas kernel: fused 4-phase ConvTranspose2d(k=4, s=2, p=1) + joint IN + ReLU
# ----------------------------------------------------------------------------
def _deconv_kernel_body(taps_ref, w_ref, o_ref):
    # taps_ref: (1, 4, 4*Cin, hw)  w_ref: (4, Cout, 4*Cin)  o_ref: (1, 4, Cout, hw)
    accs = []
    for p in range(4):                      # static unroll: 4 sub-pixel phases
        accs.append(jnp.dot(w_ref[p], taps_ref[0, p],
                            preferred_element_type=jnp.float32))   # (Cout, hw)

    hw = accs[0].shape[1]
    n = jnp.float32(4 * hw)
    # Joint InstanceNorm statistics across all 4 phases (= full 2H x 2W output).
    s = accs[0].sum(axis=1, keepdims=True)
    for p in range(1, 4):
        s = s + accs[p].sum(axis=1, keepdims=True)
    mean = s / n
    ss = ((accs[0] - mean) ** 2).sum(axis=1, keepdims=True)
    for p in range(1, 4):
        ss = ss + ((accs[p] - mean) ** 2).sum(axis=1, keepdims=True)
    inv = jax.lax.rsqrt(ss / n + EPS)

    for p in range(4):
        y = (accs[p] - mean) * inv
        y = jnp.maximum(y, 0.0)
        o_ref[0, p] = y.astype(o_ref.dtype)


# ----------------------------------------------------------------------------
# Plain-JAX glue: im2col (padding / slicing only), NCHW-flattened layout
# ----------------------------------------------------------------------------
def _im2col_nchw(x, K, stride, dilation, pad):
    # x: (B, C, H, W) -> taps: (B, K*K*C, Ho*Wo)   (tap-major, channel-minor)
    B, C, H, W = x.shape
    xp = jnp.pad(x, ((0, 0), (0, 0), (pad, pad), (pad, pad)))
    Ho = (H + 2 * pad - dilation * (K - 1) - 1) // stride + 1
    Wo = (W + 2 * pad - dilation * (K - 1) - 1) // stride + 1
    taps = []
    for kh in range(K):
        for kw in range(K):
            h0 = kh * dilation
            w0 = kw * dilation
            sl = xp[:, :, h0:h0 + stride * (Ho - 1) + 1:stride,
                          w0:w0 + stride * (Wo - 1) + 1:stride]
            taps.append(sl.reshape(B, C, Ho * Wo))
    return jnp.concatenate(taps, axis=1), Ho, Wo


def conv2d_pallas(x, w, b=None, *, stride=1, dilation=1, pad=1,
                  apply_norm=True, apply_relu=True, residual=None,
                  out_dtype=jnp.bfloat16):
    """x: (B, Cin, H, W); w: (K, K, Cin, Cout); b: (Cout,) or None."""
    B, Cin, H, W = x.shape
    K = w.shape[0]
    Cout = w.shape[-1]

    taps, Ho, Wo = _im2col_nchw(x.astype(jnp.bfloat16), K, stride, dilation, pad)
    hw = Ho * Wo
    KKC = K * K * Cin

    # W2[co, t*Cin + ci] = w[kh, kw, ci, co] with t = kh*K + kw (matches taps).
    w2 = jnp.transpose(w, (3, 0, 1, 2)).reshape(Cout, KKC).astype(jnp.bfloat16)

    has_bias = (b is not None) and (not apply_norm)  # bias cancels under IN

    in_specs = [
        pl.BlockSpec((1, KKC, hw), lambda bi: (bi, 0, 0)),
        pl.BlockSpec((Cout, KKC), lambda bi: (0, 0)),
    ]
    inputs = [taps, w2]
    if has_bias:
        in_specs.append(pl.BlockSpec((Cout, 1), lambda bi: (0, 0)))
        inputs.append(b.reshape(Cout, 1).astype(jnp.float32))
    if residual is not None:
        in_specs.append(pl.BlockSpec((1, Cout, hw), lambda bi: (bi, 0, 0)))
        inputs.append(residual.reshape(B, Cout, hw).astype(jnp.bfloat16))

    kernel = functools.partial(
        _conv_kernel_body, apply_norm=apply_norm, apply_relu=apply_relu,
        has_residual=residual is not None, has_bias=has_bias)

    out = pl.pallas_call(
        kernel,
        out_shape=jax.ShapeDtypeStruct((B, Cout, hw), out_dtype),
        grid=(B,),
        in_specs=in_specs,
        out_specs=pl.BlockSpec((1, Cout, hw), lambda bi: (bi, 0, 0)),
        compiler_params=pltpu.CompilerParams(
            dimension_semantics=("parallel",),
            vmem_limit_bytes=VMEM_LIMIT),
    )(*inputs)
    return out.reshape(B, Cout, Ho, Wo)


# ----------------------------------------------------------------------------
# ConvTranspose2d(k=4, s=2, p=1) via sub-pixel phase decomposition
# ----------------------------------------------------------------------------
# Phase ry of the output row index (oy = 2m + ry) uses these (dy, kh) pairs:
#   ry=0 : (-1, 3), (0, 1)       ry=1 : (0, 2), (+1, 0)
_S0 = [(-1, 3), (0, 1)]
_S1 = [(0, 2), (1, 0)]


def _deconv_phase_taps(x):
    # x: (B, C, H, W) -> (B, 4, 4*C, H*W);  phase p = ry*2 + rx
    B, C, H, W = x.shape
    xp = jnp.pad(x, ((0, 0), (0, 0), (1, 1), (1, 1)))
    phases = []
    for ry in (0, 1):
        for rx in (0, 1):
            Sy = _S0 if ry == 0 else _S1
            Sx = _S0 if rx == 0 else _S1
            blocks = []
            for (dy, _kh) in Sy:
                for (dx, _kw) in Sx:
                    sl = xp[:, :, 1 + dy:1 + dy + H, 1 + dx:1 + dx + W]
                    blocks.append(sl.reshape(B, C, H * W))
            phases.append(jnp.concatenate(blocks, axis=1))   # (B, 4C, hw)
    return jnp.stack(phases, axis=1)                          # (B, 4, 4C, hw)


def _deconv_phase_weights(w_t):
    # torch layout w_t: (Cin, Cout, 4, 4) -> (4, Cout, 4*Cin), same tap order.
    phases = []
    for ry in (0, 1):
        for rx in (0, 1):
            Sy = _S0 if ry == 0 else _S1
            Sx = _S0 if rx == 0 else _S1
            blocks = []
            for (_dy, kh) in Sy:
                for (_dx, kw) in Sx:
                    blocks.append(jnp.transpose(w_t[:, :, kh, kw], (1, 0)))  # (Cout, Cin)
            phases.append(jnp.concatenate(blocks, axis=1))   # (Cout, 4*Cin)
    return jnp.stack(phases, axis=0)                          # (4, Cout, 4*Cin)


def deconv2d_pallas(x, w_t, out_dtype=jnp.bfloat16):
    """ConvTranspose2d(k=4, s=2, p=1) + InstanceNorm + ReLU (bias cancels)."""
    B, Cin, H, W = x.shape
    Cout = w_t.shape[1]
    hw = H * W

    taps = _deconv_phase_taps(x.astype(jnp.bfloat16))            # (B,4,4Cin,hw)
    wph = _deconv_phase_weights(w_t).astype(jnp.bfloat16)        # (4,Cout,4Cin)

    out = pl.pallas_call(
        _deconv_kernel_body,
        out_shape=jax.ShapeDtypeStruct((B, 4, Cout, hw), out_dtype),
        grid=(B,),
        in_specs=[pl.BlockSpec((1, 4, 4 * Cin, hw), lambda bi: (bi, 0, 0, 0)),
                  pl.BlockSpec((4, Cout, 4 * Cin), lambda bi: (0, 0, 0))],
        out_specs=pl.BlockSpec((1, 4, Cout, hw), lambda bi: (bi, 0, 0, 0)),
        compiler_params=pltpu.CompilerParams(
            dimension_semantics=("parallel",),
            vmem_limit_bytes=VMEM_LIMIT),
    )(taps, wph)

    # Interleave phases: out[:, :, 2m+ry, 2n+rx] = phase[ry*2+rx][:, :, m, n]
    out = out.reshape(B, 2, 2, Cout, H, W)
    out = jnp.transpose(out, (0, 3, 4, 1, 5, 2)).reshape(B, Cout, 2 * H, 2 * W)
    return out


# ----------------------------------------------------------------------------
# GeneratorResNet parameters (deterministic synthetic init) and forward pass
# ----------------------------------------------------------------------------
RES_DILATIONS = [2, 2, 4, 4, 8, 8, 16, 16, 1, 1]


def init_params(key):
    params = {}

    def conv_init(k, kh, kw, cin, cout, scale=None):
        kw_key, kb_key = jax.random.split(k)
        fan_in = kh * kw * cin
        s = (1.0 / jnp.sqrt(fan_in)) if scale is None else scale
        w = jax.random.normal(kw_key, (kh, kw, cin, cout), jnp.float32) * s
        b = jax.random.normal(kb_key, (cout,), jnp.float32) * 0.01
        return w, b

    keys = jax.random.split(key, 40)
    ki = iter(range(40))

    params['c1_w'], params['c1_b'] = conv_init(keys[next(ki)], 3, 3, 6, 64)
    params['c2_w'], params['c2_b'] = conv_init(keys[next(ki)], 3, 3, 64, 64)
    params['c3_w'], params['c3_b'] = conv_init(keys[next(ki)], 3, 3, 64, 64)
    for i in range(len(RES_DILATIONS)):
        params[f'r{i}_w1'], params[f'r{i}_b1'] = conv_init(keys[next(ki)], 3, 3, 64, 64)
        params[f'r{i}_w2'], params[f'r{i}_b2'] = conv_init(keys[next(ki)], 3, 3, 64, 64)
    # ConvTranspose2d weight in torch layout (Cin, Cout, K, K)
    kdw, kdb = jax.random.split(keys[next(ki)])
    params['dc_w'] = jax.random.normal(kdw, (64, 64, 4, 4), jnp.float32) * (1.0 / jnp.sqrt(64 * 16))
    params['dc_b'] = jax.random.normal(kdb, (64,), jnp.float32) * 0.01
    params['c15_w'], params['c15_b'] = conv_init(keys[next(ki)], 3, 3, 64, 64)
    params['c16_w'], params['c16_b'] = conv_init(keys[next(ki)], 3, 3, 64, 3, scale=0.05)
    return params


def run_model(x6, params):
    """The nn.Sequential `self.model`: (B,6,H,W) NCHW -> (B,3,H,W) NCHW."""
    # Bias is omitted for every normed layer (InstanceNorm2d(affine=False)
    # cancels a per-channel bias exactly); only the final conv keeps its bias.
    h = conv2d_pallas(x6, params['c1_w'], pad=1)
    h = conv2d_pallas(h, params['c2_w'], pad=1)
    h = conv2d_pallas(h, params['c3_w'], stride=2, pad=1)

    for i, d in enumerate(RES_DILATIONS):
        r = conv2d_pallas(h, params[f'r{i}_w1'], pad=d, dilation=d)
        h = conv2d_pallas(r, params[f'r{i}_w2'], pad=d, dilation=d,
                          apply_norm=True, apply_relu=False, residual=h)

    h = deconv2d_pallas(h, params['dc_w'])
    h = conv2d_pallas(h, params['c15_w'], pad=1)
    h = conv2d_pallas(h, params['c16_w'], params['c16_b'], pad=1,
                      apply_norm=False, apply_relu=False, out_dtype=jnp.float32)
    return h


def generator_forward(x, edges, seed, params):
    """GeneratorResNet.forward.  x: (B,3,H,W); edges: (B,12,H,W); seed: python int.
    Returns (B,12,H,W)."""
    outputs = []
    if seed % 9 != 0:
        input_curr = x
        for step in range(4):
            inp = jnp.concatenate(
                [input_curr, edges[:, step * 3:step * 3 + 3, :, :]], axis=1)
            residual = run_model(inp, params)
            output_curr = input_curr + residual   # .detach() irrelevant for fwd values
            input_curr = output_curr
            outputs.append(output_curr)
    else:
        for step in range(4):
            inp = jnp.concatenate(
                [x, edges[:, step * 3:step * 3 + 3, :, :]], axis=1)
            residual = run_model(inp, params)
            outputs.append(x + residual)
    return jnp.concatenate(outputs, axis=1)


if __name__ == "__main__":
    key = jax.random.PRNGKey(0)
    k_params, k_x, k_e = jax.random.split(key, 3)

    params = init_params(k_params)

    B, H, W = 2, 16, 16
    x = jax.random.normal(k_x, (B, 3, H, W), jnp.float32)
    edges = jax.random.normal(k_e, (B, 12, H, W), jnp.float32)
    seed = 7  # takes the seed % 9 != 0 branch (chained input_curr)

    fwd = jax.jit(functools.partial(generator_forward, params=params),
                  static_argnums=(2,))
    out = fwd(x, edges, seed)
    out = jax.block_until_ready(out)

    assert out.shape == (B, 12, H, W), out.shape
    assert bool(jnp.all(jnp.isfinite(out)))
    print("KERNEL_OK")
</pallas_src>

<mosaic_0001>
module attributes {stable_mosaic.version = 11 : i64} {
  func.func @_conv_kernel_body(%arg0: i32, %arg1: memref<1x54x256xbf16, #tpu.memory_space<vmem>>, %arg2: memref<64x54xbf16, #tpu.memory_space<vmem>>, %arg3: memref<1x64x256xbf16, #tpu.memory_space<vmem>>) attributes {dimension_semantics = [#tpu.dimension_semantics<parallel>], iteration_bounds = array<i64: 2>, scalar_prefetch = 0 : i64, scratch_operands = 0 : i64, tpu.core_type = #tpu.core_type<tc>, window_params = [{transform_indices = @transform_0, window_bounds = array<i64: 1, 54, 256>}, {pipeline_mode = #tpu.pipeline_mode<synchronous>, transform_indices = @transform_1, window_bounds = array<i64: 64, 54>}, {transform_indices = @transform_2, window_bounds = array<i64: 1, 64, 256>}]} {
    %c0 = arith.constant 0 : index
    %c0_0 = arith.constant 0 : index
    %c0_1 = arith.constant 0 : index
    %0 = vector.load %arg1[%c0, %c0_0, %c0_1] : memref<1x54x256xbf16, #tpu.memory_space<vmem>>, vector<1x54x256xbf16>
    %1 = vector.shape_cast %0 : vector<1x54x256xbf16> to vector<54x256xbf16>
    %c0_2 = arith.constant 0 : index
    %c0_3 = arith.constant 0 : index
    %2 = vector.load %arg2[%c0_2, %c0_3] : memref<64x54xbf16, #tpu.memory_space<vmem>>, vector<64x54xbf16>
    %cst = arith.constant dense<0.000000e+00> : vector<64x256xf32>
    %3 = tpu.matmul %2, %1, %cst {dimension_numbers = #tpu.dot_dimension_numbers<[1], [0], [0], [1], [0, 0, 1, 1], [], []>} : vector<64x54xbf16>, vector<54x256xbf16>, vector<64x256xf32> -> vector<64x256xf32>
    %cst_4 = arith.constant dense<0.000000e+00> : vector<64xf32>
    %4 = vector.multi_reduction <add>, %3, %cst_4 [1] : vector<64x256xf32> to vector<64xf32>
    %5 = vector.shape_cast %4 : vector<64xf32> to vector<64x1xf32>
    %cst_5 = arith.constant 2.560000e+02 : f32
    %6 = vector.broadcast %cst_5 : f32 to vector<64x1xf32>
    %7 = arith.divf %5, %6 : vector<64x1xf32>
    %8 = vector.broadcast %7 : vector<64x1xf32> to vector<64x256xf32>
    %9 = arith.subf %3, %8 : vector<64x256xf32>
    %10 = arith.mulf %9, %9 : vector<64x256xf32>
    %cst_6 = arith.constant dense<0.000000e+00> : vector<64xf32>
    %11 = vector.multi_reduction <add>, %10, %cst_6 [1] : vector<64x256xf32> to vector<64xf32>
    %12 = vector.shape_cast %11 : vector<64xf32> to vector<64x1xf32>
    %cst_7 = arith.constant 2.560000e+02 : f32
    %13 = vector.broadcast %cst_7 : f32 to vector<64x1xf32>
    %14 = arith.divf %12, %13 : vector<64x1xf32>
    %15 = vector.broadcast %7 : vector<64x1xf32> to vector<64x256xf32>
    %16 = arith.subf %3, %15 : vector<64x256xf32>
    %cst_8 = arith.constant 9.99999974E-6 : f32
    %17 = vector.broadcast %cst_8 : f32 to vector<64x1xf32>
    %18 = arith.addf %14, %17 : vector<64x1xf32>
    %19 = math.rsqrt %18 : vector<64x1xf32>
    %20 = vector.broadcast %19 : vector<64x1xf32> to vector<64x256xf32>
    %21 = arith.mulf %16, %20 : vector<64x256xf32>
    %cst_9 = arith.constant 0.000000e+00 : f32
    %22 = vector.broadcast %cst_9 : f32 to vector<64x256xf32>
    %23 = arith.maximumf %21, %22 : vector<64x256xf32>
    %24 = arith.truncf %23 : vector<64x256xf32> to vector<64x256xbf16>
    %c0_10 = arith.constant 0 : index
    %c0_11 = arith.constant 0 : index
    %c0_12 = arith.constant 0 : index
    %25 = vector.load %arg3[%c0_10, %c0_11, %c0_12] : memref<1x64x256xbf16, #tpu.memory_space<vmem>>, vector<1x64x256xbf16>
    %26 = vector.shape_cast %25 : vector<1x64x256xbf16> to vector<64x256xbf16>
    %27 = vector.shape_cast %24 : vector<64x256xbf16> to vector<1x64x256xbf16>
    tpu.vector_store %arg3[%c0_10, %c0_11, %c0_12], %27 {strides = array<i32>} : memref<1x64x256xbf16, #tpu.memory_space<vmem>>, vector<1x64x256xbf16>,
    return
  }
  func.func @transform_0(%arg0: i32) -> (i32, i32, i32) {
    %c0_i32 = arith.constant 0 : i32
    %c0_i32_0 = arith.constant 0 : i32
    %c0_i32_1 = arith.constant 0 : i32
    return %arg0, %c0_i32, %c0_i32_0 : i32, i32, i32
  }
  func.func @transform_1(%arg0: i32) -> (i32, i32) {
    %c0_i32 = arith.constant 0 : i32
    %c0_i32_0 = arith.constant 0 : i32
    %c0_i32_1 = arith.constant 0 : i32
    return %c0_i32, %c0_i32_0 : i32, i32
  }
  func.func @transform_2(%arg0: i32) -> (i32, i32, i32) {
    %c0_i32 = arith.constant 0 : i32
    %c0_i32_0 = arith.constant 0 : i32
    %c0_i32_1 = arith.constant 0 : i32
    return %arg0, %c0_i32, %c0_i32_0 : i32, i32, i32
  }
}

module attributes {stable_mosaic.version = 11 : i64} {
  func.func @_conv_kernel_body(%arg0: i32, %arg1: memref<1x576x256xbf16, #tpu.memory_space<vmem>>, %arg2: memref<64x576xbf16, #tpu.memory_space<vmem>>, %arg3: memref<1x64x256xbf16, #tpu.memory_space<vmem>>) attributes {dimension_semantics = [#tpu.dimension_semantics<parallel>], iteration_bounds = array<i64: 2>, scalar_prefetch = 0 : i64, scratch_operands = 0 : i64, tpu.core_type = #tpu.core_type<tc>, window_params = [{transform_indices = @transform_0, window_bounds = array<i64: 1, 576, 256>}, {pipeline_mode = #tpu.pipeline_mode<synchronous>, transform_indices = @transform_1, window_bounds = array<i64: 64, 576>}, {transform_indices = @transform_2, window_bounds = array<i64: 1, 64, 256>}]} {
    %c0 = arith.constant 0 : index
    %c0_0 = arith.constant 0 : index
    %c0_1 = arith.constant 0 : index
    %0 = vector.load %arg1[%c0, %c0_0, %c0_1] : memref<1x576x256xbf16, #tpu.memory_space<vmem>>, vector<1x576x256xbf16>
    %1 = vector.shape_cast %0 : vector<1x576x256xbf16> to vector<576x256xbf16>
    %c0_2 = arith.constant 0 : index
    %c0_3 = arith.constant 0 : index
    %2 = vector.load %arg2[%c0_2, %c0_3] : memref<64x576xbf16, #tpu.memory_space<vmem>>, vector<64x576xbf16>
    %cst = arith.constant dense<0.000000e+00> : vector<64x256xf32>
    %3 = tpu.matmul %2, %1, %cst {dimension_numbers = #tpu.dot_dimension_numbers<[1], [0], [0], [1], [0, 0, 1, 1], [], []>} : vector<64x576xbf16>, vector<576x256xbf16>, vector<64x256xf32> -> vector<64x256xf32>
    %cst_4 = arith.constant dense<0.000000e+00> : vector<64xf32>
    %4 = vector.multi_reduction <add>, %3, %cst_4 [1] : vector<64x256xf32> to vector<64xf32>
    %5 = vector.shape_cast %4 : vector<64xf32> to vector<64x1xf32>
    %cst_5 = arith.constant 2.560000e+02 : f32
    %6 = vector.broadcast %cst_5 : f32 to vector<64x1xf32>
    %7 = arith.divf %5, %6 : vector<64x1xf32>
    %8 = vector.broadcast %7 : vector<64x1xf32> to vector<64x256xf32>
    %9 = arith.subf %3, %8 : vector<64x256xf32>
    %10 = arith.mulf %9, %9 : vector<64x256xf32>
    %cst_6 = arith.constant dense<0.000000e+00> : vector<64xf32>
    %11 = vector.multi_reduction <add>, %10, %cst_6 [1] : vector<64x256xf32> to vector<64xf32>
    %12 = vector.shape_cast %11 : vector<64xf32> to vector<64x1xf32>
    %cst_7 = arith.constant 2.560000e+02 : f32
    %13 = vector.broadcast %cst_7 : f32 to vector<64x1xf32>
    %14 = arith.divf %12, %13 : vector<64x1xf32>
    %15 = vector.broadcast %7 : vector<64x1xf32> to vector<64x256xf32>
    %16 = arith.subf %3, %15 : vector<64x256xf32>
    %cst_8 = arith.constant 9.99999974E-6 : f32
    %17 = vector.broadcast %cst_8 : f32 to vector<64x1xf32>
    %18 = arith.addf %14, %17 : vector<64x1xf32>
    %19 = math.rsqrt %18 : vector<64x1xf32>
    %20 = vector.broadcast %19 : vector<64x1xf32> to vector<64x256xf32>
    %21 = arith.mulf %16, %20 : vector<64x256xf32>
    %cst_9 = arith.constant 0.000000e+00 : f32
    %22 = vector.broadcast %cst_9 : f32 to vector<64x256xf32>
    %23 = arith.maximumf %21, %22 : vector<64x256xf32>
    %24 = arith.truncf %23 : vector<64x256xf32> to vector<64x256xbf16>
    %c0_10 = arith.constant 0 : index
    %c0_11 = arith.constant 0 : index
    %c0_12 = arith.constant 0 : index
    %25 = vector.load %arg3[%c0_10, %c0_11, %c0_12] : memref<1x64x256xbf16, #tpu.memory_space<vmem>>, vector<1x64x256xbf16>
    %26 = vector.shape_cast %25 : vector<1x64x256xbf16> to vector<64x256xbf16>
    %27 = vector.shape_cast %24 : vector<64x256xbf16> to vector<1x64x256xbf16>
    tpu.vector_store %arg3[%c0_10, %c0_11, %c0_12], %27 {strides = array<i32>} : memref<1x64x256xbf16, #tpu.memory_space<vmem>>, vector<1x64x256xbf16>,
    return
  }
  func.func @transform_0(%arg0: i32) -> (i32, i32, i32) {
    %c0_i32 = arith.constant 0 : i32
    %c0_i32_0 = arith.constant 0 : i32
    %c0_i32_1 = arith.constant 0 : i32
    return %arg0, %c0_i32, %c0_i32_0 : i32, i32, i32
  }
  func.func @transform_1(%arg0: i32) -> (i32, i32) {
    %c0_i32 = arith.constant 0 : i32
    %c0_i32_0 = arith.constant 0 : i32
    %c0_i32_1 = arith.constant 0 : i32
    return %c0_i32, %c0_i32_0 : i32, i32
  }
  func.func @transform_2(%arg0: i32) -> (i32, i32, i32) {
    %c0_i32 = arith.constant 0 : i32
    %c0_i32_0 = arith.constant 0 : i32
    %c0_i32_1 = arith.constant 0 : i32
    return %arg0, %c0_i32, %c0_i32_0 : i32, i32, i32
  }
}

module attributes {stable_mosaic.version = 11 : i64} {
  func.func @_conv_kernel_body(%arg0: i32, %arg1: memref<1x576x64xbf16, #tpu.memory_space<vmem>>, %arg2: memref<64x576xbf16, #tpu.memory_space<vmem>>, %arg3: memref<1x64x64xbf16, #tpu.memory_space<vmem>>) attributes {dimension_semantics = [#tpu.dimension_semantics<parallel>], iteration_bounds = array<i64: 2>, scalar_prefetch = 0 : i64, scratch_operands = 0 : i64, tpu.core_type = #tpu.core_type<tc>, window_params = [{transform_indices = @transform_0, window_bounds = array<i64: 1, 576, 64>}, {pipeline_mode = #tpu.pipeline_mode<synchronous>, transform_indices = @transform_1, window_bounds = array<i64: 64, 576>}, {transform_indices = @transform_2, window_bounds = array<i64: 1, 64, 64>}]} {
    %c0 = arith.constant 0 : index
    %c0_0 = arith.constant 0 : index
    %c0_1 = arith.constant 0 : index
    %0 = vector.load %arg1[%c0, %c0_0, %c0_1] : memref<1x576x64xbf16, #tpu.memory_space<vmem>>, vector<1x576x64xbf16>
    %1 = vector.shape_cast %0 : vector<1x576x64xbf16> to vector<576x64xbf16>
    %c0_2 = arith.constant 0 : index
    %c0_3 = arith.constant 0 : index
    %2 = vector.load %arg2[%c0_2, %c0_3] : memref<64x576xbf16, #tpu.memory_space<vmem>>, vector<64x576xbf16>
    %cst = arith.constant dense<0.000000e+00> : vector<64x64xf32>
    %3 = tpu.matmul %2, %1, %cst {dimension_numbers = #tpu.dot_dimension_numbers<[1], [0], [0], [1], [0, 0, 1, 1], [], []>} : vector<64x576xbf16>, vector<576x64xbf16>, vector<64x64xf32> -> vector<64x64xf32>
    %cst_4 = arith.constant dense<0.000000e+00> : vector<64xf32>
    %4 = vector.multi_reduction <add>, %3, %cst_4 [1] : vector<64x64xf32> to vector<64xf32>
    %5 = vector.shape_cast %4 : vector<64xf32> to vector<64x1xf32>
    %cst_5 = arith.constant 6.400000e+01 : f32
    %6 = vector.broadcast %cst_5 : f32 to vector<64x1xf32>
    %7 = arith.divf %5, %6 : vector<64x1xf32>
    %8 = vector.broadcast %7 : vector<64x1xf32> to vector<64x64xf32>
    %9 = arith.subf %3, %8 : vector<64x64xf32>
    %10 = arith.mulf %9, %9 : vector<64x64xf32>
    %cst_6 = arith.constant dense<0.000000e+00> : vector<64xf32>
    %11 = vector.multi_reduction <add>, %10, %cst_6 [1] : vector<64x64xf32> to vector<64xf32>
    %12 = vector.shape_cast %11 : vector<64xf32> to vector<64x1xf32>
    %cst_7 = arith.constant 6.400000e+01 : f32
    %13 = vector.broadcast %cst_7 : f32 to vector<64x1xf32>
    %14 = arith.divf %12, %13 : vector<64x1xf32>
    %15 = vector.broadcast %7 : vector<64x1xf32> to vector<64x64xf32>
    %16 = arith.subf %3, %15 : vector<64x64xf32>
    %cst_8 = arith.constant 9.99999974E-6 : f32
    %17 = vector.broadcast %cst_8 : f32 to vector<64x1xf32>
    %18 = arith.addf %14, %17 : vector<64x1xf32>
    %19 = math.rsqrt %18 : vector<64x1xf32>
    %20 = vector.broadcast %19 : vector<64x1xf32> to vector<64x64xf32>
    %21 = arith.mulf %16, %20 : vector<64x64xf32>
    %cst_9 = arith.constant 0.000000e+00 : f32
    %22 = vector.broadcast %cst_9 : f32 to vector<64x64xf32>
    %23 = arith.maximumf %21, %22 : vector<64x64xf32>
    %24 = arith.truncf %23 : vector<64x64xf32> to vector<64x64xbf16>
    %c0_10 = arith.constant 0 : index
    %c0_11 = arith.constant 0 : index
    %c0_12 = arith.constant 0 : index
    %25 = vector.load %arg3[%c0_10, %c0_11, %c0_12] : memref<1x64x64xbf16, #tpu.memory_space<vmem>>, vector<1x64x64xbf16>
    %26 = vector.shape_cast %25 : vector<1x64x64xbf16> to vector<64x64xbf16>
    %27 = vector.shape_cast %24 : vector<64x64xbf16> to vector<1x64x64xbf16>
    tpu.vector_store %arg3[%c0_10, %c0_11, %c0_12], %27 {strides = array<i32>} : memref<1x64x64xbf16, #tpu.memory_space<vmem>>, vector<1x64x64xbf16>,
    return
  }
  func.func @transform_0(%arg0: i32) -> (i32, i32, i32) {
    %c0_i32 = arith.constant 0 : i32
    %c0_i32_0 = arith.constant 0 : i32
    %c0_i32_1 = arith.constant 0 : i32
    return %arg0, %c0_i32, %c0_i32_0 : i32, i32, i32
  }
  func.func @transform_1(%arg0: i32) -> (i32, i32) {
    %c0_i32 = arith.constant 0 : i32
    %c0_i32_0 = arith.constant 0 : i32
    %c0_i32_1 = arith.constant 0 : i32
    return %c0_i32, %c0_i32_0 : i32, i32
  }
  func.func @transform_2(%arg0: i32) -> (i32, i32, i32) {
    %c0_i32 = arith.constant 0 : i32
    %c0_i32_0 = arith.constant 0 : i32
    %c0_i32_1 = arith.constant 0 : i32
    return %arg0, %c0_i32, %c0_i32_0 : i32, i32, i32
  }
}

module attributes {stable_mosaic.version = 11 : i64} {
  func.func @_conv_kernel_body(%arg0: i32, %arg1: memref<1x576x64xbf16, #tpu.memory_space<vmem>>, %arg2: memref<64x576xbf16, #tpu.memory_space<vmem>>, %arg3: memref<1x64x64xbf16, #tpu.memory_space<vmem>>, %arg4: memref<1x64x64xbf16, #tpu.memory_space<vmem>>) attributes {dimension_semantics = [#tpu.dimension_semantics<parallel>], iteration_bounds = array<i64: 2>, scalar_prefetch = 0 : i64, scratch_operands = 0 : i64, tpu.core_type = #tpu.core_type<tc>, window_params = [{transform_indices = @transform_0, window_bounds = array<i64: 1, 576, 64>}, {pipeline_mode = #tpu.pipeline_mode<synchronous>, transform_indices = @transform_1, window_bounds = array<i64: 64, 576>}, {transform_indices = @transform_2, window_bounds = array<i64: 1, 64, 64>}, {transform_indices = @transform_3, window_bounds = array<i64: 1, 64, 64>}]} {
    %c0 = arith.constant 0 : index
    %c0_0 = arith.constant 0 : index
    %c0_1 = arith.constant 0 : index
    %0 = vector.load %arg1[%c0, %c0_0, %c0_1] : memref<1x576x64xbf16, #tpu.memory_space<vmem>>, vector<1x576x64xbf16>
    %1 = vector.shape_cast %0 : vector<1x576x64xbf16> to vector<576x64xbf16>
    %c0_2 = arith.constant 0 : index
    %c0_3 = arith.constant 0 : index
    %2 = vector.load %arg2[%c0_2, %c0_3] : memref<64x576xbf16, #tpu.memory_space<vmem>>, vector<64x576xbf16>
    %cst = arith.constant dense<0.000000e+00> : vector<64x64xf32>
    %3 = tpu.matmul %2, %1, %cst {dimension_numbers = #tpu.dot_dimension_numbers<[1], [0], [0], [1], [0, 0, 1, 1], [], []>} : vector<64x576xbf16>, vector<576x64xbf16>, vector<64x64xf32> -> vector<64x64xf32>
    %cst_4 = arith.constant dense<0.000000e+00> : vector<64xf32>
    %4 = vector.multi_reduction <add>, %3, %cst_4 [1] : vector<64x64xf32> to vector<64xf32>
    %5 = vector.shape_cast %4 : vector<64xf32> to vector<64x1xf32>
    %cst_5 = arith.constant 6.400000e+01 : f32
    %6 = vector.broadcast %cst_5 : f32 to vector<64x1xf32>
    %7 = arith.divf %5, %6 : vector<64x1xf32>
    %8 = vector.broadcast %7 : vector<64x1xf32> to vector<64x64xf32>
    %9 = arith.subf %3, %8 : vector<64x64xf32>
    %10 = arith.mulf %9, %9 : vector<64x64xf32>
    %cst_6 = arith.constant dense<0.000000e+00> : vector<64xf32>
    %11 = vector.multi_reduction <add>, %10, %cst_6 [1] : vector<64x64xf32> to vector<64xf32>
    %12 = vector.shape_cast %11 : vector<64xf32> to vector<64x1xf32>
    %cst_7 = arith.constant 6.400000e+01 : f32
    %13 = vector.broadcast %cst_7 : f32 to vector<64x1xf32>
    %14 = arith.divf %12, %13 : vector<64x1xf32>
    %15 = vector.broadcast %7 : vector<64x1xf32> to vector<64x64xf32>
    %16 = arith.subf %3, %15 : vector<64x64xf32>
    %cst_8 = arith.constant 9.99999974E-6 : f32
    %17 = vector.broadcast %cst_8 : f32 to vector<64x1xf32>
    %18 = arith.addf %14, %17 : vector<64x1xf32>
    %19 = math.rsqrt %18 : vector<64x1xf32>
    %20 = vector.broadcast %19 : vector<64x1xf32> to vector<64x64xf32>
    %21 = arith.mulf %16, %20 : vector<64x64xf32>
    %c0_9 = arith.constant 0 : index
    %c0_10 = arith.constant 0 : index
    %c0_11 = arith.constant 0 : index
    %22 = vector.load %arg3[%c0_9, %c0_10, %c0_11] : memref<1x64x64xbf16, #tpu.memory_space<vmem>>, vector<1x64x64xbf16>
    %23 = vector.shape_cast %22 : vector<1x64x64xbf16> to vector<64x64xbf16>
    %24 = arith.extf %23 : vector<64x64xbf16> to vector<64x64xf32>
    %25 = arith.addf %21, %24 : vector<64x64xf32>
    %26 = arith.truncf %25 : vector<64x64xf32> to vector<64x64xbf16>
    %c0_12 = arith.constant 0 : index
    %c0_13 = arith.constant 0 : index
    %c0_14 = arith.constant 0 : index
    %27 = vector.load %arg4[%c0_12, %c0_13, %c0_14] : memref<1x64x64xbf16, #tpu.memory_space<vmem>>, vector<1x64x64xbf16>
    %28 = vector.shape_cast %27 : vector<1x64x64xbf16> to vector<64x64xbf16>
    %29 = vector.shape_cast %26 : vector<64x64xbf16> to vector<1x64x64xbf16>
    tpu.vector_store %arg4[%c0_12, %c0_13, %c0_14], %29 {strides = array<i32>} : memref<1x64x64xbf16, #tpu.memory_space<vmem>>, vector<1x64x64xbf16>,
    return
  }
  func.func @transform_0(%arg0: i32) -> (i32, i32, i32) {
    %c0_i32 = arith.constant 0 : i32
    %c0_i32_0 = arith.constant 0 : i32
    %c0_i32_1 = arith.constant 0 : i32
    return %arg0, %c0_i32, %c0_i32_0 : i32, i32, i32
  }
  func.func @transform_1(%arg0: i32) -> (i32, i32) {
    %c0_i32 = arith.constant 0 : i32
    %c0_i32_0 = arith.constant 0 : i32
    %c0_i32_1 = arith.constant 0 : i32
    return %c0_i32, %c0_i32_0 : i32, i32
  }
  func.func @transform_2(%arg0: i32) -> (i32, i32, i32) {
    %c0_i32 = arith.constant 0 : i32
    %c0_i32_0 = arith.constant 0 : i32
    %c0_i32_1 = arith.constant 0 : i32
    return %arg0, %c0_i32, %c0_i32_0 : i32, i32, i32
  }
  func.func @transform_3(%arg0: i32) -> (i32, i32, i32) {
    %c0_i32 = arith.constant 0 : i32
    %c0_i32_0 = arith.constant 0 : i32
    %c0_i32_1 = arith.constant 0 : i32
    return %arg0, %c0_i32, %c0_i32_0 : i32, i32, i32
  }
}

module attributes {stable_mosaic.version = 11 : i64} {
  func.func @_deconv_kernel_body(%arg0: i32, %arg1: memref<1x4x256x64xbf16, #tpu.memory_space<vmem>>, %arg2: memref<4x64x256xbf16, #tpu.memory_space<vmem>>, %arg3: memref<1x4x64x64xbf16, #tpu.memory_space<vmem>>) attributes {dimension_semantics = [#tpu.dimension_semantics<parallel>], iteration_bounds = array<i64: 2>, scalar_prefetch = 0 : i64, scratch_operands = 0 : i64, tpu.core_type = #tpu.core_type<tc>, window_params = [{transform_indices = @transform_0, window_bounds = array<i64: 1, 4, 256, 64>}, {pipeline_mode = #tpu.pipeline_mode<synchronous>, transform_indices = @transform_1, window_bounds = array<i64: 4, 64, 256>}, {transform_indices = @transform_2, window_bounds = array<i64: 1, 4, 64, 64>}]} {
    %c0 = arith.constant 0 : index
    %c0_0 = arith.constant 0 : index
    %c0_1 = arith.constant 0 : index
    %0 = vector.load %arg2[%c0, %c0_0, %c0_1] : memref<4x64x256xbf16, #tpu.memory_space<vmem>>, vector<1x64x256xbf16>
    %1 = vector.shape_cast %0 : vector<1x64x256xbf16> to vector<64x256xbf16>
    %c0_2 = arith.constant 0 : index
    %c0_3 = arith.constant 0 : index
    %c0_4 = arith.constant 0 : index
    %c0_5 = arith.constant 0 : index
    %2 = vector.load %arg1[%c0_2, %c0_3, %c0_4, %c0_5] : memref<1x4x256x64xbf16, #tpu.memory_space<vmem>>, vector<1x1x256x64xbf16>
    %3 = vector.shape_cast %2 : vector<1x1x256x64xbf16> to vector<256x64xbf16>
    %cst = arith.constant dense<0.000000e+00> : vector<64x64xf32>
    %4 = tpu.matmul %1, %3, %cst {dimension_numbers = #tpu.dot_dimension_numbers<[1], [0], [0], [1], [0, 0, 1, 1], [], []>} : vector<64x256xbf16>, vector<256x64xbf16>, vector<64x64xf32> -> vector<64x64xf32>
    %c1 = arith.constant 1 : index
    %c0_6 = arith.constant 0 : index
    %c0_7 = arith.constant 0 : index
    %5 = vector.load %arg2[%c1, %c0_6, %c0_7] : memref<4x64x256xbf16, #tpu.memory_space<vmem>>, vector<1x64x256xbf16>
    %6 = vector.shape_cast %5 : vector<1x64x256xbf16> to vector<64x256xbf16>
    %c0_8 = arith.constant 0 : index
    %c1_9 = arith.constant 1 : index
    %c0_10 = arith.constant 0 : index
    %c0_11 = arith.constant 0 : index
    %7 = vector.load %arg1[%c0_8, %c1_9, %c0_10, %c0_11] : memref<1x4x256x64xbf16, #tpu.memory_space<vmem>>, vector<1x1x256x64xbf16>
    %8 = vector.shape_cast %7 : vector<1x1x256x64xbf16> to vector<256x64xbf16>
    %cst_12 = arith.constant dense<0.000000e+00> : vector<64x64xf32>
    %9 = tpu.matmul %6, %8, %cst_12 {dimension_numbers = #tpu.dot_dimension_numbers<[1], [0], [0], [1], [0, 0, 1, 1], [], []>} : vector<64x256xbf16>, vector<256x64xbf16>, vector<64x64xf32> -> vector<64x64xf32>
    %c2 = arith.constant 2 : index
    %c0_13 = arith.constant 0 : index
    %c0_14 = arith.constant 0 : index
    %10 = vector.load %arg2[%c2, %c0_13, %c0_14] : memref<4x64x256xbf16, #tpu.memory_space<vmem>>, vector<1x64x256xbf16>
    %11 = vector.shape_cast %10 : vector<1x64x256xbf16> to vector<64x256xbf16>
    %c0_15 = arith.constant 0 : index
    %c2_16 = arith.constant 2 : index
    %c0_17 = arith.constant 0 : index
    %c0_18 = arith.constant 0 : index
    %12 = vector.load %arg1[%c0_15, %c2_16, %c0_17, %c0_18] : memref<1x4x256x64xbf16, #tpu.memory_space<vmem>>, vector<1x1x256x64xbf16>
    %13 = vector.shape_cast %12 : vector<1x1x256x64xbf16> to vector<256x64xbf16>
    %cst_19 = arith.constant dense<0.000000e+00> : vector<64x64xf32>
    %14 = tpu.matmul %11, %13, %cst_19 {dimension_numbers = #tpu.dot_dimension_numbers<[1], [0], [0], [1], [0, 0, 1, 1], [], []>} : vector<64x256xbf16>, vector<256x64xbf16>, vector<64x64xf32> -> vector<64x64xf32>
    %c3 = arith.constant 3 : index
    %c0_20 = arith.constant 0 : index
    %c0_21 = arith.constant 0 : index
    %15 = vector.load %arg2[%c3, %c0_20, %c0_21] : memref<4x64x256xbf16, #tpu.memory_space<vmem>>, vector<1x64x256xbf16>
    %16 = vector.shape_cast %15 : vector<1x64x256xbf16> to vector<64x256xbf16>
    %c0_22 = arith.constant 0 : index
    %c3_23 = arith.constant 3 : index
    %c0_24 = arith.constant 0 : index
    %c0_25 = arith.constant 0 : index
    %17 = vector.load %arg1[%c0_22, %c3_23, %c0_24, %c0_25] : memref<1x4x256x64xbf16, #tpu.memory_space<vmem>>, vector<1x1x256x64xbf16>
    %18 = vector.shape_cast %17 : vector<1x1x256x64xbf16> to vector<256x64xbf16>
    %cst_26 = arith.constant dense<0.000000e+00> : vector<64x64xf32>
    %19 = tpu.matmul %16, %18, %cst_26 {dimension_numbers = #tpu.dot_dimension_numbers<[1], [0], [0], [1], [0, 0, 1, 1], [], []>} : vector<64x256xbf16>, vector<256x64xbf16>, vector<64x64xf32> -> vector<64x64xf32>
    %cst_27 = arith.constant dense<0.000000e+00> : vector<64xf32>
    %20 = vector.multi_reduction <add>, %4, %cst_27 [1] : vector<64x64xf32> to vector<64xf32>
    %21 = vector.shape_cast %20 : vector<64xf32> to vector<64x1xf32>
    %cst_28 = arith.constant dense<0.000000e+00> : vector<64xf32>
    %22 = vector.multi_reduction <add>, %9, %cst_28 [1] : vector<64x64xf32> to vector<64xf32>
    %23 = vector.shape_cast %22 : vector<64xf32> to vector<64x1xf32>
    %24 = arith.addf %21, %23 : vector<64x1xf32>
    %cst_29 = arith.constant dense<0.000000e+00> : vector<64xf32>
    %25 = vector.multi_reduction <add>, %14, %cst_29 [1] : vector<64x64xf32> to vector<64xf32>
    %26 = vector.shape_cast %25 : vector<64xf32> to vector<64x1xf32>
    %27 = arith.addf %24, %26 : vector<64x1xf32>
    %cst_30 = arith.constant dense<0.000000e+00> : vector<64xf32>
    %28 = vector.multi_reduction <add>, %19, %cst_30 [1] : vector<64x64xf32> to vector<64xf32>
    %29 = vector.shape_cast %28 : vector<64xf32> to vector<64x1xf32>
    %30 = arith.addf %27, %29 : vector<64x1xf32>
    %cst_31 = arith.constant 2.560000e+02 : f32
    %31 = vector.broadcast %cst_31 : f32 to vector<64x1xf32>
    %32 = arith.divf %30, %31 : vector<64x1xf32>
    %33 = vector.broadcast %32 : vector<64x1xf32> to vector<64x64xf32>
    %34 = arith.subf %4, %33 : vector<64x64xf32>
    %35 = arith.mulf %34, %34 : vector<64x64xf32>
    %cst_32 = arith.constant dense<0.000000e+00> : vector<64xf32>
    %36 = vector.multi_reduction <add>, %35, %cst_32 [1] : vector<64x64xf32> to vector<64xf32>
    %37 = vector.shape_cast %36 : vector<64xf32> to vector<64x1xf32>
    %38 = vector.broadcast %32 : vector<64x1xf32> to vector<64x64xf32>
    %39 = arith.subf %9, %38 : vector<64x64xf32>
    %40 = arith.mulf %39, %39 : vector<64x64xf32>
    %cst_33 = arith.constant dense<0.000000e+00> : vector<64xf32>
    %41 = vector.multi_reduction <add>, %40, %cst_33 [1] : vector<64x64xf32> to vector<64xf32>
    %42 = vector.shape_cast %41 : vector<64xf32> to vector<64x1xf32>
    %43 = arith.addf %37, %42 : vector<64x1xf32>
    %44 = vector.broadcast %32 : vector<64x1xf32> to vector<64x64xf32>
    %45 = arith.subf %14, %44 : vector<64x64xf32>
    %46 = arith.mulf %45, %45 : vector<64x64xf32>
    %cst_34 = arith.constant dense<0.000000e+00> : vector<64xf32>
    %47 = vector.multi_reduction <add>, %46, %cst_34 [1] : vector<64x64xf32> to vector<64xf32>
    %48 = vector.shape_cast %47 : vector<64xf32> to vector<64x1xf32>
    %49 = arith.addf %43, %48 : vector<64x1xf32>
    %50 = vector.broadcast %32 : vector<64x1xf32> to vector<64x64xf32>
    %51 = arith.subf %19, %50 : vector<64x64xf32>
    %52 = arith.mulf %51, %51 : vector<64x64xf32>
    %cst_35 = arith.constant dense<0.000000e+00> : vector<64xf32>
    %53 = vector.multi_reduction <add>, %52, %cst_35 [1] : vector<64x64xf32> to vector<64xf32>
    %54 = vector.shape_cast %53 : vector<64xf32> to vector<64x1xf32>
    %55 = arith.addf %49, %54 : vector<64x1xf32>
    %cst_36 = arith.constant 2.560000e+02 : f32
    %56 = vector.broadcast %cst_36 : f32 to vector<64x1xf32>
    %57 = arith.divf %55, %56 : vector<64x1xf32>
    %cst_37 = arith.constant 9.99999974E-6 : f32
    %58 = vector.broadcast %cst_37 : f32 to vector<64x1xf32>
    %59 = arith.addf %57, %58 : vector<64x1xf32>
    %60 = math.rsqrt %59 : vector<64x1xf32>
    %61 = vector.broadcast %32 : vector<64x1xf32> to vector<64x64xf32>
    %62 = arith.subf %4, %61 : vector<64x64xf32>
    %63 = vector.broadcast %60 : vector<64x1xf32> to vector<64x64xf32>
    %64 = arith.mulf %62, %63 : vector<64x64xf32>
    %cst_38 = arith.constant 0.000000e+00 : f32
    %65 = vector.broadcast %cst_38 : f32 to vector<64x64xf32>
    %66 = arith.maximumf %64, %65 : vector<64x64xf32>
    %67 = arith.truncf %66 : vector<64x64xf32> to vector<64x64xbf16>
    %c0_39 = arith.constant 0 : index
    %c0_40 = arith.constant 0 : index
    %c0_41 = arith.constant 0 : index
    %c0_42 = arith.constant 0 : index
    %68 = vector.load %arg3[%c0_39, %c0_40, %c0_41, %c0_42] : memref<1x4x64x64xbf16, #tpu.memory_space<vmem>>, vector<1x1x64x64xbf16>
    %69 = vector.shape_cast %68 : vector<1x1x64x64xbf16> to vector<64x64xbf16>
    %70 = vector.shape_cast %67 : vector<64x64xbf16> to vector<1x1x64x64xbf16>
    tpu.vector_store %arg3[%c0_39, %c0_40, %c0_41, %c0_42], %70 {strides = array<i32>} : memref<1x4x64x64xbf16, #tpu.memory_space<vmem>>, vector<1x1x64x64xbf16>,
    %71 = vector.broadcast %32 : vector<64x1xf32> to vector<64x64xf32>
    %72 = arith.subf %9, %71 : vector<64x64xf32>
    %73 = vector.broadcast %60 : vector<64x1xf32> to vector<64x64xf32>
    %74 = arith.mulf %72, %73 : vector<64x64xf32>
    %cst_43 = arith.constant 0.000000e+00 : f32
    %75 = vector.broadcast %cst_43 : f32 to vector<64x64xf32>
    %76 = arith.maximumf %74, %75 : vector<64x64xf32>
    %77 = arith.truncf %76 : vector<64x64xf32> to vector<64x64xbf16>
    %c0_44 = arith.constant 0 : index
    %c1_45 = arith.constant 1 : index
    %c0_46 = arith.constant 0 : index
    %c0_47 = arith.constant 0 : index
    %78 = vector.load %arg3[%c0_44, %c1_45, %c0_46, %c0_47] : memref<1x4x64x64xbf16, #tpu.memory_space<vmem>>, vector<1x1x64x64xbf16>
    %79 = vector.shape_cast %78 : vector<1x1x64x64xbf16> to vector<64x64xbf16>
    %80 = vector.shape_cast %77 : vector<64x64xbf16> to vector<1x1x64x64xbf16>
    tpu.vector_store %arg3[%c0_44, %c1_45, %c0_46, %c0_47], %80 {strides = array<i32>} : memref<1x4x64x64xbf16, #tpu.memory_space<vmem>>, vector<1x1x64x64xbf16>,
    %81 = vector.broadcast %32 : vector<64x1xf32> to vector<64x64xf32>
    %82 = arith.subf %14, %81 : vector<64x64xf32>
    %83 = vector.broadcast %60 : vector<64x1xf32> to vector<64x64xf32>
    %84 = arith.mulf %82, %83 : vector<64x64xf32>
    %cst_48 = arith.constant 0.000000e+00 : f32
    %85 = vector.broadcast %cst_48 : f32 to vector<64x64xf32>
    %86 = arith.maximumf %84, %85 : vector<64x64xf32>
    %87 = arith.truncf %86 : vector<64x64xf32> to vector<64x64xbf16>
    %c0_49 = arith.constant 0 : index
    %c2_50 = arith.constant 2 : index
    %c0_51 = arith.constant 0 : index
    %c0_52 = arith.constant 0 : index
    %88 = vector.load %arg3[%c0_49, %c2_50, %c0_51, %c0_52] : memref<1x4x64x64xbf16, #tpu.memory_space<vmem>>, vector<1x1x64x64xbf16>
    %89 = vector.shape_cast %88 : vector<1x1x64x64xbf16> to vector<64x64xbf16>
    %90 = vector.shape_cast %87 : vector<64x64xbf16> to vector<1x1x64x64xbf16>
    tpu.vector_store %arg3[%c0_49, %c2_50, %c0_51, %c0_52], %90 {strides = array<i32>} : memref<1x4x64x64xbf16, #tpu.memory_space<vmem>>, vector<1x1x64x64xbf16>,
    %91 = vector.broadcast %32 : vector<64x1xf32> to vector<64x64xf32>
    %92 = arith.subf %19, %91 : vector<64x64xf32>
    %93 = vector.broadcast %60 : vector<64x1xf32> to vector<64x64xf32>
    %94 = arith.mulf %92, %93 : vector<64x64xf32>
    %cst_53 = arith.constant 0.000000e+00 : f32
    %95 = vector.broadcast %cst_53 : f32 to vector<64x64xf32>
    %96 = arith.maximumf %94, %95 : vector<64x64xf32>
    %97 = arith.truncf %96 : vector<64x64xf32> to vector<64x64xbf16>
    %c0_54 = arith.constant 0 : index
    %c3_55 = arith.constant 3 : index
    %c0_56 = arith.constant 0 : index
    %c0_57 = arith.constant 0 : index
    %98 = vector.load %arg3[%c0_54, %c3_55, %c0_56, %c0_57] : memref<1x4x64x64xbf16, #tpu.memory_space<vmem>>, vector<1x1x64x64xbf16>
    %99 = vector.shape_cast %98 : vector<1x1x64x64xbf16> to vector<64x64xbf16>
    %100 = vector.shape_cast %97 : vector<64x64xbf16> to vector<1x1x64x64xbf16>
    tpu.vector_store %arg3[%c0_54, %c3_55, %c0_56, %c0_57], %100 {strides = array<i32>} : memref<1x4x64x64xbf16, #tpu.memory_space<vmem>>, vector<1x1x64x64xbf16>,
    return
  }
  func.func @transform_0(%arg0: i32) -> (i32, i32, i32, i32) {
    %c0_i32 = arith.constant 0 : i32
    %c0_i32_0 = arith.constant 0 : i32
    %c0_i32_1 = arith.constant 0 : i32
    %c0_i32_2 = arith.constant 0 : i32
    return %arg0, %c0_i32, %c0_i32_0, %c0_i32_1 : i32, i32, i32, i32
  }
  func.func @transform_1(%arg0: i32) -> (i32, i32, i32) {
    %c0_i32 = arith.constant 0 : i32
    %c0_i32_0 = arith.constant 0 : i32
    %c0_i32_1 = arith.constant 0 : i32
    %c0_i32_2 = arith.constant 0 : i32
    return %c0_i32, %c0_i32_0, %c0_i32_1 : i32, i32, i32
  }
  func.func @transform_2(%arg0: i32) -> (i32, i32, i32, i32) {
    %c0_i32 = arith.constant 0 : i32
    %c0_i32_0 = arith.constant 0 : i32
    %c0_i32_1 = arith.constant 0 : i32
    %c0_i32_2 = arith.constant 0 : i32
    return %arg0, %c0_i32, %c0_i32_0, %c0_i32_1 : i32, i32, i32, i32
  }
}

module attributes {stable_mosaic.version = 11 : i64} {
  func.func @_conv_kernel_body(%arg0: i32, %arg1: memref<1x576x256xbf16, #tpu.memory_space<vmem>>, %arg2: memref<3x576xbf16, #tpu.memory_space<vmem>>, %arg3: memref<3x1xf32, #tpu.memory_space<vmem>>, %arg4: memref<1x3x256xf32, #tpu.memory_space<vmem>>) attributes {dimension_semantics = [#tpu.dimension_semantics<parallel>], iteration_bounds = array<i64: 2>, scalar_prefetch = 0 : i64, scratch_operands = 0 : i64, tpu.core_type = #tpu.core_type<tc>, window_params = [{transform_indices = @transform_0, window_bounds = array<i64: 1, 576, 256>}, {pipeline_mode = #tpu.pipeline_mode<synchronous>, transform_indices = @transform_1, window_bounds = array<i64: 3, 576>}, {pipeline_mode = #tpu.pipeline_mode<synchronous>, transform_indices = @transform_2, window_bounds = array<i64: 3, 1>}, {transform_indices = @transform_3, window_bounds = array<i64: 1, 3, 256>}]} {
    %c0 = arith.constant 0 : index
    %c0_0 = arith.constant 0 : index
    %c0_1 = arith.constant 0 : index
    %0 = vector.load %arg1[%c0, %c0_0, %c0_1] : memref<1x576x256xbf16, #tpu.memory_space<vmem>>, vector<1x576x256xbf16>
    %1 = vector.shape_cast %0 : vector<1x576x256xbf16> to vector<576x256xbf16>
    %c0_2 = arith.constant 0 : index
    %c0_3 = arith.constant 0 : index
    %2 = vector.load %arg2[%c0_2, %c0_3] : memref<3x576xbf16, #tpu.memory_space<vmem>>, vector<3x576xbf16>
    %cst = arith.constant dense<0.000000e+00> : vector<3x256xf32>
    %3 = tpu.matmul %2, %1, %cst {dimension_numbers = #tpu.dot_dimension_numbers<[1], [0], [0], [1], [0, 0, 1, 1], [], []>} : vector<3x576xbf16>, vector<576x256xbf16>, vector<3x256xf32> -> vector<3x256xf32>
    %c0_4 = arith.constant 0 : index
    %c0_5 = arith.constant 0 : index
    %4 = vector.load %arg3[%c0_4, %c0_5] : memref<3x1xf32, #tpu.memory_space<vmem>>, vector<3x1xf32>
    %5 = vector.broadcast %4 : vector<3x1xf32> to vector<3x256xf32>
    %6 = arith.addf %3, %5 : vector<3x256xf32>
    %c0_6 = arith.constant 0 : index
    %c0_7 = arith.constant 0 : index
    %c0_8 = arith.constant 0 : index
    %7 = vector.load %arg4[%c0_6, %c0_7, %c0_8] : memref<1x3x256xf32, #tpu.memory_space<vmem>>, vector<1x3x256xf32>
    %8 = vector.shape_cast %7 : vector<1x3x256xf32> to vector<3x256xf32>
    %9 = vector.shape_cast %6 : vector<3x256xf32> to vector<1x3x256xf32>
    tpu.vector_store %arg4[%c0_6, %c0_7, %c0_8], %9 {strides = array<i32>} : memref<1x3x256xf32, #tpu.memory_space<vmem>>, vector<1x3x256xf32>,
    return
  }
  func.func @transform_0(%arg0: i32) -> (i32, i32, i32) {
    %c0_i32 = arith.constant 0 : i32
    %c0_i32_0 = arith.constant 0 : i32
    %c0_i32_1 = arith.constant 0 : i32
    return %arg0, %c0_i32, %c0_i32_0 : i32, i32, i32
  }
  func.func @transform_1(%arg0: i32) -> (i32, i32) {
    %c0_i32 = arith.constant 0 : i32
    %c0_i32_0 = arith.constant 0 : i32
    %c0_i32_1 = arith.constant 0 : i32
    return %c0_i32, %c0_i32_0 : i32, i32
  }
  func.func @transform_2(%arg0: i32) -> (i32, i32) {
    %c0_i32 = arith.constant 0 : i32
    %c0_i32_0 = arith.constant 0 : i32
    %c0_i32_1 = arith.constant 0 : i32
    return %c0_i32, %c0_i32_0 : i32, i32
  }
  func.func @transform_3(%arg0: i32) -> (i32, i32, i32) {
    %c0_i32 = arith.constant 0 : i32
    %c0_i32_0 = arith.constant 0 : i32
    %c0_i32_1 = arith.constant 0 : i32
    return %arg0, %c0_i32, %c0_i32_0 : i32, i32, i32
  }
}

</mosaic_0001>

<bundles_post_ra>
// kernel: generator_forward.104
= control target key start
LH: loop header
LB: loop body
LE: loop exit
PB: predicated region body
PF: predicated region fallthrough
CT: control target
= control target key end

     0   :  { %7 = vsyncpa [#allocation3], 0  ;;  %s1244_s0 = inlined_call_operand.hbm [shape: bf16[2,54,256], index: 0, kind: input, shape index: {}]   ;;  %s1245_s1 = inlined_call_operand.hbm [shape: bf16[64,54], index: 1, kind: input, shape index: {}]   ;;  %s1246_s2 = inlined_call_operand.hbm [shape: bf16[2,64,256], index: 2, kind: output, shape index: {}]  }
   0x1   :  { %9 = vsyncpa [#allocation3 + $0x1], 0 }
   0x2   :  { %10 = vsyncpa [#allocation6], 0 }
   0x3   :  { %11 = vsyncpa [#allocation4], 0 }
   0x4   :  { %13 = vsyncpa [#allocation4 + $0x1], 0  ;;  %s947_s9 = smov 0   ;;  %s949_s10 = smov 0  }
   0x5   :  { %s951_s11 = smov 0   ;;  %s953_s12 = smov 0  }
   0x6 LB: > { %s968_s13 = sadd.s32 4294967295, %s920_s12   ;;  %s639_s14 = sadd.s32 4294967294, %s920_s12   ;;  %s920_s12 = sphi %s953_s12, %s1266_s12   ;;  %s916_s11 = sphi %s951_s11, %s1265_s11   ;;  %s912_s10 = sphi %s949_s10, %s1264_s10   ;;  %s908_s9 = sphi %s947_s9, %s1263_s9  }
   0x7   : > { %p39_p0 = scmp.ne.s32.totalorder %s912_s10, %s908_s9  ;;  %p1247_p1 = scmp.eq.s32.totalorder %s968_s13, 0 }
   0x8   : > { %p90_p3 = scmp.eq.s32.totalorder %s639_s14, 1  ;;  %p640_p5 = scmp.ge.s32.totalorder %s920_s12, 1 }
   0x9   : > { %p977_p4 = por %p1247_p1, %p39_p0  ;;  %p97_p7 = scmp.lt.s32.totalorder %s920_s12, 3 }
   0xa   : > { %p982_p6 = por %p90_p3, %p39_p0  ;;  %s922_s18 = smov [#allocation5]  }
   0xb   : > { %s1250_s15 = scalar_select %p977_p4, 1, 0 }
   0xc   : > { %s1251_s16 = scalar_select %p982_p6, 1, 0 }
   0xd   : > { %p987_p8 = pnand %p640_p5, %p97_p7  ;;  %s109_s19 = sshll.u32 %s922_s18, 4  ;;  %s991_s19 = int_to_ptr.vmem [resolvable:$true] %s109_s19 }
   0xe   : > { %s1003_s21 = sadd.s32 1, %s920_s12   ;;  %s26_s22 = sadd.s32 1, %s916_s11 }
   0xf   : > { %s1252_s17 = scalar_select %p987_p8, 1, 0 }
  0x10   : > { %p705_p9 = pneg %p987_p8  ;;  %s23_s23 = ssub.s32 %s920_s12, %s1003_s21 }
  0x11   : > { %s792_s26 = scalar_lea.hbm %s1245_s1, 512 }
  0x12   : > { %p998_p11 = pnand %p705_p9, %p1247_p1  ;;  %p793_p12 = scmp.ne.s32.totalorder %s1245_s1, %s792_s26 }
  0x13   : > { %p799_p5 = scmp.lt.u32.totalorder %s792_s26, %s1245_s1 }
  0x14   : > { %p794_p13 = pneg %p998_p11 }
  0x16   : > { %p795_p0 = pnand %p794_p13, %p793_p12 }
  0x18   : > { %p796_p3 = pneg %p795_p0 }
  0x1a   : > { %p801_p7 = pnand %p799_p5, %p796_p3 }
  0x1c   : > { %804 = shalt.err (!%p801_p7)
}
  0x1d   : > { %s805_s3 = scalar_lea.vmem %s991_s19, 512  ;;  %p813_p2 = scmp.lt.s32.totalorder %s991_s19, %s991_s19 }
  0x1e   : > { %p806_p9 = scmp.ne.s32.totalorder %s991_s19, %s805_s3  ;;  %p814_p6 = scmp.lt.s32.totalorder %s805_s3, %s805_s3 }
  0x20   : > { %p808_p10 = pnand %p806_p9, %p794_p13  ;;  %p815_p4 = por %p814_p6, %p813_p2 }
  0x22   : > { %p809_p1 = pneg %p808_p10 }
  0x24   : > { %p816_p8 = pnand %p815_p4, %p809_p1 }
  0x26   : > { %819 = shalt.err (!%p816_p8)
}
  0x27   : > { %s923_s4 = smov 64   ;;  %s924_s5 = smov 4  }
  0x28   : > { %708 = dma.hbm_to_vmem [thread:$0]  (!%p998_p11), %s1245_s1, 512, %s991_s19, [#allocation6], %s923_s4, %s923_s4, %s924_s5  }
  0x29   : > { %p24_p2 = scmp.eq.s32.totalorder %s23_s23, 0  ;;  %p33_p1 = scmp.ne.s32.totalorder %s916_s11, %s912_s10 }
  0x2a   : > { %p34_p4 = scmp.eq.s32.totalorder %s920_s12, 0  ;;  %p718_p6 = scmp.lt.s32.totalorder %s920_s12, 2 }
  0x2b   : > { %s1034_s8 = scalar_select %p24_p2, %s916_s11, %s26_s22  }
  0x2c   : > { %p35_p8 = por %p34_p4, %p33_p1  ;;  %p1254_p10 = scmp.eq.s32.totalorder %s968_s13, 1 }
  0x2d   : > { %s123_s18 = sand.u32 1, %s916_s11   ;;  %s695_s24 = smul.u32 896, %s920_s12 }
  0x2e   : > { %p1038_p12 = por %p1254_p10, %p33_p1  ;;  %s694_s25 = smul.u32 56, %s123_s18 }
  0x2f   : > { %s1047_s27 = scalar_lea.hbm %s1244_s0, %s695_s24  ;;  %p1049_p11 = pnand %p718_p6, %p35_p8 }
  0x30   : > { %s127_s22 = scalar_lea.vmem [#allocation2], %s694_s25  ;;  %s1055_s28 = scalar_lea.sflag [#allocation3], %s123_s18 }
  0x31   : > { %s134_s23 = sshll.u32 %s127_s22, 4  ;;  %s820_s29 = scalar_lea.hbm %s1047_s27, 896  ;;  %s1053_s23 = int_to_ptr.vmem [resolvable:$true] %s134_s23 }
  0x32   : > { %p821_p13 = scmp.ne.s32.totalorder %s1047_s27, %s820_s29  ;;  %p822_p0 = pneg %p1049_p11 }
  0x33   : > { %s825_s4 = scalar_lea.hbm %s1244_s0, 1792  ;;  %p826_p7 = scmp.lt.u32.totalorder %s1047_s27, %s1244_s0 }
  0x34   : > { %p823_p3 = pnand %p822_p0, %p821_p13  ;;  %p827_p9 = scmp.lt.u32.totalorder %s825_s4, %s820_s29 }
  0x35   : > { %p829_p1 = scmp.lt.u32.totalorder %s820_s29, %s1047_s27 }
  0x36   : > { %p824_p5 = pneg %p823_p3  ;;  %p828_p2 = por %p827_p9, %p826_p7 }
  0x38   : > { %p830_p4 = por %p829_p1, %p828_p2 }
  0x3a   : > { %p831_p6 = pnand %p830_p4, %p824_p5 }
  0x3c   : > { %834 = shalt.err (!%p831_p6)
}
  0x3d   : > { %s835_s7 = scalar_lea.vmem %s1053_s23, 896  ;;  %s925_s18 = smov [#allocation2]  }
  0x3e   : > { %p836_p8 = scmp.ne.s32.totalorder %s1053_s23, %s835_s7  ;;  %s840_s24 = sshll.u32 %s925_s18, 4  ;;  %s841_s24 = int_to_ptr.vmem [resolvable:$false] %s840_s24 }
  0x3f   : > { %s842_s25 = scalar_lea.vmem %s841_s24, 1792  ;;  %p843_p3 = scmp.lt.s32.totalorder %s1053_s23, %s841_s24 }
  0x40   : > { %p838_p10 = pnand %p836_p8, %p822_p0  ;;  %p844_p7 = scmp.lt.s32.totalorder %s842_s25, %s835_s7 }
  0x42   : > { %p839_p13 = pneg %p838_p10  ;;  %p845_p9 = por %p844_p7, %p843_p3 }
  0x44   : > { %p846_p2 = pnand %p845_p9, %p839_p13 }
  0x46   : > { %849 = shalt.err (!%p846_p2)
}
  0x47   : > { %s926_s20 = smov 128   ;;  %s927_s26 = smov 8  }
  0x48   : > { %712 = dma.hbm_to_vmem [thread:$0]  (!%p1049_p11), %s1047_s27, 896, %s1053_s23, %s1055_s28, %s926_s20, %s926_s20, %s927_s26  }
  0x49   : > { %p1257_p0 = scmp.ne.s32.totalorder %s1252_s17, 0 }
  0x4a   : > { %s1086_s22 = sand.u32 (!%p1257_p0), 1, %s912_s10   ;;  %p1258_p5 = scmp.ne.s32.totalorder (!%p1257_p0), %s1250_s15, 0 }
  0x4b   : > { %146 = sbr.rel (%p1257_p0) target bundleno = 668 (0x29c), region = 28  ;;  %s149_s30 = scalar_lea.sflag (!%p1257_p0), [#allocation3], %s1086_s22 }
  0x4c   : > { %s696_s29 = smul.u32 (!%p1257_p0), 56, %s1086_s22 }
  0x4e   : > { %s152_s3 = scalar_lea.vmem (!%p1257_p0), [#allocation2], %s696_s29 }
  0x52   : > { %895 = dma.done.wait (%p1258_p5), %s149_s30, 896  }
  0x53   : > { %897 = vsyncadd (%p1258_p5), %s149_s30, 4294966400  ;;  %p1259_p1 = scmp.eq.s32.totalorder %s968_s13, 0 }
  0x55   : > { %899 = dma.done.wait (%p1259_p1), [#allocation6], 512   ;;  %p1260_p11 = pmov %p1259_p1 }
  0x56   : > { %v928_v0 = vmov 0   ;;  %v761_v1 = vld [vmem:[%s152_s3 + $0x4] ss:$8 sps:$4 sm:$0xff]   ;;  %v763_v2 = vld [vmem:[%s152_s3] ss:$8 sps:$4 sm:$0xff]   ;;  %vm261_vm0 = vcmask 1042432  }
  0x57   : > { %901 = vsyncadd (%p1260_p11), [#allocation6], 4294966784  ;;  %300 = vmatprep.mubr.bf16.mxu0 %v928_v0  ;;  %320 = vmatprep.mubr.bf16.mxu1 %v928_v0  ;;  %v764_v3 = vld [vmem:[%s152_s3 + $0x14] ss:$8 sps:$4 sm:$0xff]   ;;  %v766_v4 = vld [vmem:[%s152_s3 + $0x10] ss:$8 sps:$4 sm:$0xff]  }
  0x58   : > { %268 = vmatprep.subr.bf16.mxu0 %v761_v1  ;;  %686 = vmatprep.subr.bf16.mxu1 %v761_v1  ;;  %v767_v5 = vld [vmem:[%s152_s3 + $0x24] ss:$8 sps:$4 sm:$0xff]   ;;  %v184_v6 = vld [vmem:[%s152_s3 + $0x30] sm:$0x77]  ;;  %v769_v7 = vld [vmem:[%s152_s3 + $0x20] ss:$8 sps:$4 sm:$0xff]  }
  0x59   : > { %269 = vmatpush1.bf16.msra.mxu0 %v763_v2  ;;  %690 = vmatpush1.bf16.msra.mxu1 %v763_v2  ;;  %v658_v8 = vcombine.high %v184_v6, %v184_v6  ;;  %v657_v9 = vcombine.low %v184_v6, %v184_v6  ;;  %v772_v11 = vld [vmem:[#allocation5] sm:$0xff]   ;;  %v773_v12 = vld [vmem:[#allocation5 + $0x10] sm:$0xff]   ;;  %vm248_vm1 = vcmask 441344   ;;  %v774_v13 = vld [vmem:[#allocation5 + $0x8] sm:$0xff]   ;;  %s646_s15 = sshll.u32 %s1086_s22, 6  ;;  %s685_s27 = sshll.u32 %s968_s13, 10 }
  0x5a   : > { %270 = vmatprep.subr.bf16.mxu0 %v764_v3  ;;  %687 = vmatprep.subr.bf16.mxu1 %v764_v3  ;;  %v775_v14 = vld [vmem:[#allocation5 + $0x18] sm:$0xff]   ;;  %s1171_s17 = scalar_lea.vmem [#allocation7], %s646_s15  ;;  %s1197_s4 = scalar_lea.hbm %s1246_s2, %s685_s27 }
  0x5b   : > { %v263_v10 = vsel %vm261_vm0, %v657_v9, 0  ;;  %s556_s19 = sshll.u32 %s1171_s17, 4  ;;  %s543_s5 = scalar_lea.sflag [#allocation4], %s1086_s22  ;;  %s1199_s19 = int_to_ptr.vmem [resolvable:$true] %s556_s19 }
  0x5c   : > { %s850_s6 = scalar_lea.vmem %s1199_s19, 1024  ;;  %s929_s13 = smov [#allocation7]  }
  0x5d   : > { %271 = vmatpush1.bf16.msra.mxu0 %v766_v4  ;;  %691 = vmatpush1.bf16.msra.mxu1 %v766_v4  ;;  %p851_p4 = scmp.ne.s32.totalorder %s1199_s19, %s850_s6  ;;  %s854_s7 = sshll.u32 %s929_s13, 4  ;;  %s855_s7 = int_to_ptr.vmem [resolvable:$false] %s854_s7 }
  0x5e   : > { %272 = vmatprep.subr.bf16.mxu0 %v767_v5  ;;  %688 = vmatprep.subr.bf16.mxu1 %v767_v5  ;;  %s856_s18 = scalar_lea.vmem %s855_s7, 2048  ;;  %p857_p10 = scmp.lt.s32.totalorder %s1199_s19, %s855_s7 }
  0x5f   : > { %p852_p6 = pnand %p851_p4, %p1038_p12  ;;  %p858_p13 = scmp.lt.s32.totalorder %s856_s18, %s850_s6 }
  0x61   : > { %273 = vmatpush1.bf16.msra.mxu0 %v769_v7  ;;  %692 = vmatpush1.bf16.msra.mxu1 %v769_v7  ;;  %p853_p8 = pneg %p852_p6  ;;  %p859_p3 = por %p858_p13, %p857_p10 }
  0x62   : > { %659 = vmatprep.subr.msk.bf16.mxu0 %vm261_vm0, %v658_v8  ;;  %689 = vmatprep.subr.msk.bf16.mxu1 %vm261_vm0, %v658_v8 }
  0x63   : > { %p860_p7 = pnand %p859_p3, %p853_p8 }
  0x65   : > { %275 = vmatpush1.bf16.msra.mxu0 %v263_v10  ;;  %693 = vmatpush1.bf16.msra.mxu1 %v263_v10 }
  0x68   : > { %660 = vmatmul.mubr.msk.bf16.vlgmr.msra.gmra.mrb[0].mxu0 %vm248_vm1, %v772_v11  ;;  %662 = vmatmul.mubr.msk.bf16.vlgmr.msra.gmra.mrb[0].mxu1 %vm248_vm1, %v773_v12 }
  0x69   : > { %310 = vmatprep.mubr.bf16.mxu0 %v928_v0  ;;  %330 = vmatprep.mubr.bf16.mxu1 %v928_v0 }
  0x70   : > { %661 = vmatmul.mubr.msk.bf16.gmra.mrb[4].mxu0 %vm248_vm1, %v774_v13  ;;  %663 = vmatmul.mubr.msk.bf16.gmra.mrb[4].mxu1 %vm248_vm1, %v775_v14 }
 0x13b   : > { %v302_v15 = vpop.f32.mrb[0].mxu0  ;;  %v322_v16 = vpop.f32.mrb[0].mxu1 }
 0x13c   : > { %v304_v17 = vpop.f32.mrb[1].mxu0  ;;  %v324_v18 = vpop.f32.mrb[1].mxu1 }
 0x13d   : > { %v306_v19 = vpop.f32.mrb[2].mxu0  ;;  %v326_v20 = vpop.f32.mrb[2].mxu1  ;;  %v341_v21 = vadd.f32 %v304_v17, %v302_v15  ;;  %v353_v22 = vadd.f32 %v324_v18, %v322_v16 }
 0x13e   : > { %v308_v23 = vpop.f32.mrb[3].mxu0  ;;  %v328_v24 = vpop.f32.mrb[3].mxu1 }
 0x13f   : > { %342 = vadd.xlane.f32.xlu0 %v341_v21  ;;  %v356_v25 = vadd.f32 %v328_v24, %v326_v20  ;;  %v344_v26 = vadd.f32 %v308_v23, %v306_v19 }
 0x141   : > { %357 = vadd.xlane.f32.xlu1 %v356_v25 }
 0x143   : > { %354 = vadd.xlane.f32.xlu0 %v353_v22  ;;  %v312_v27 = vpop.f32.mrb[4].mxu0  ;;  %v332_v28 = vpop.f32.mrb[4].mxu1 }
 0x144   : > { %v314_v29 = vpop.f32.mrb[5].mxu0  ;;  %v334_v30 = vpop.f32.mrb[5].mxu1 }
 0x145   : > { %v316_v31 = vpop.f32.mrb[6].mxu0  ;;  %v347_v32 = vadd.f32 %v314_v29, %v312_v27  ;;  %v1098_v33 = vpop.f32.mrb[6].mxu1  ;;  %v359_v34 = vadd.f32 %v334_v30, %v332_v28 }
 0x146   : > { %v318_v35 = vpop.f32.mrb[7].mxu0  ;;  %v338_v36 = vpop.f32.mrb[7].mxu1 }
 0x147   : > { %345 = vadd.xlane.f32.xlu0 %v344_v26  ;;  %348 = vadd.xlane.f32.xlu1 %v347_v32  ;;  %v350_v37 = vadd.f32 %v318_v35, %v316_v31  ;;  %v362_v38 = vadd.f32 %v338_v36, %v1098_v33 }
 0x14b   : > { %360 = vadd.xlane.f32.xlu0 %v359_v34  ;;  %351 = vadd.xlane.f32.xlu1 %v350_v37 }
 0x14f   : > { %363 = vadd.xlane.f32.xlu1 %v362_v38 }
 0x1cc   : > { %v343_v39 = vpop.xlane.xlu0 %342 }
 0x1cd   : > { %v366_v40 = vmul.f32 0.00390625, %v343_v39 }
 0x1ce   : > { %v358_v43 = vpop.xlane.xlu1 %357 }
 0x1cf   : > { %v1101_v41 = vsub.f32 %v302_v15, %v366_v40  ;;  %v1103_v42 = vsub.f32 %v304_v17, %v366_v40  ;;  %v371_v47 = vmul.f32 0.00390625, %v358_v43 }
 0x1d0   : > { %v355_v44 = vpop.xlane.xlu0 %354 }
 0x1d1   : > { %v370_v45 = vmul.f32 0.00390625, %v355_v44  ;;  %v390_v46 = vmul.f32 %v1101_v41, %v1101_v41  ;;  %v391_v48 = vmul.f32 %v1103_v42, %v1103_v42  ;;  %v1117_v58 = vsub.f32 %v326_v20, %v371_v47 }
 0x1d2   : > { %v1119_v59 = vsub.f32 %v328_v24, %v371_v47 }
 0x1d3   : > { %v1109_v49 = vsub.f32 %v322_v16, %v370_v45  ;;  %v1111_v50 = vsub.f32 %v324_v18, %v370_v45  ;;  %v406_v53 = vadd.f32 %v391_v48, %v390_v46  ;;  %v400_v11 = vmul.f32 %v1117_v58, %v1117_v58 }
 0x1d4   : > { %v346_v51 = vpop.xlane.xlu0 %345  ;;  %v349_v52 = vpop.xlane.xlu1 %348  ;;  %v401_v12 = vmul.f32 %v1119_v59, %v1119_v59 }
 0x1d5   : > { %v367_v54 = vmul.f32 0.00390625, %v346_v51  ;;  %v368_v55 = vmul.f32 0.00390625, %v349_v52  ;;  %v398_v56 = vmul.f32 %v1109_v49, %v1109_v49  ;;  %v399_v57 = vmul.f32 %v1111_v50, %v1111_v50  ;;  %407 = vadd.xlane.f32.xlu0 %v406_v53 }
 0x1d6   : > { %v421_v22 = vadd.f32 %v401_v12, %v400_v11 }
 0x1d7   : > { %v1121_v60 = vsub.f32 %v306_v19, %v367_v54  ;;  %v1123_v61 = vsub.f32 %v308_v23, %v367_v54  ;;  %v1125_v62 = vsub.f32 %v312_v27, %v368_v55  ;;  %v1127_v63 = vsub.f32 %v314_v29, %v368_v55 }
 0x1d8   : > { %v361_v0 = vpop.xlane.xlu0 %360  ;;  %v352_v1 = vpop.xlane.xlu1 %351  ;;  %v418_v2 = vadd.f32 %v399_v57, %v398_v56 }
 0x1d9   : > { %v372_v3 = vmul.f32 0.00390625, %v361_v0  ;;  %v369_v4 = vmul.f32 0.00390625, %v352_v1  ;;  %v394_v5 = vmul.f32 %v1125_v62, %v1125_v62  ;;  %v395_v6 = vmul.f32 %v1127_v63, %v1127_v63 }
 0x1da   : > { %419 = vadd.xlane.f32.xlu0 %v418_v2  ;;  %v392_v7 = vmul.f32 %v1121_v60, %v1121_v60  ;;  %v393_v8 = vmul.f32 %v1123_v61, %v1123_v61 }
 0x1db   : > { %v1137_v9 = vsub.f32 %v332_v28, %v372_v3  ;;  %v1139_v10 = vsub.f32 %v334_v30, %v372_v3  ;;  %v1145_v13 = vsub.f32 %v316_v31, %v369_v4  ;;  %v1147_v14 = vsub.f32 %v318_v35, %v369_v4 }
 0x1dc   : > { %v364_v15 = vpop.xlane.xlu1 %363  ;;  %v412_v16 = vadd.f32 %v395_v6, %v394_v5  ;;  %v409_v17 = vadd.f32 %v393_v8, %v392_v7 }
 0x1dd   : > { %v373_v18 = vmul.f32 0.00390625, %v364_v15  ;;  %v402_v19 = vmul.f32 %v1137_v9, %v1137_v9  ;;  %v403_v20 = vmul.f32 %v1139_v10, %v1139_v10  ;;  %v396_v25 = vmul.f32 %v1145_v13, %v1145_v13 }
 0x1de   : > { %413 = vadd.xlane.f32.xlu0 %v412_v16  ;;  %410 = vadd.xlane.f32.xlu1 %v409_v17  ;;  %v397_v26 = vmul.f32 %v1147_v14, %v1147_v14 }
 0x1df   : > { %v424_v21 = vadd.f32 %v403_v20, %v402_v19  ;;  %v1154_v23 = vsub.f32 %v1098_v33, %v373_v18  ;;  %v1156_v24 = vsub.f32 %v338_v36, %v373_v18 }
 0x1e0   : > { %v415_v27 = vadd.f32 %v397_v26, %v396_v25 }
 0x1e1   : > { %v404_v28 = vmul.f32 %v1154_v23, %v1154_v23  ;;  %v405_v29 = vmul.f32 %v1156_v24, %v1156_v24 }
 0x1e2   : > { %425 = vadd.xlane.f32.xlu0 %v424_v21  ;;  %422 = vadd.xlane.f32.xlu1 %v421_v22 }
 0x1e3   : > { %v427_v30 = vadd.f32 %v405_v29, %v404_v28 }
 0x1e6   : > { %416 = vadd.xlane.f32.xlu1 %v415_v27 }
 0x1ea   : > { %428 = vadd.xlane.f32.xlu1 %v427_v30 }
 0x262   : > { %v408_v31 = vpop.xlane.xlu0 %407 }
 0x263   : > { %v430_v32 = vmul.f32 0.00390625, %v408_v31 }
 0x265   : > { %v438_v33 = vadd.f32 1e-05, %v430_v32 }
 0x267   : > { %v420_v34 = vpop.xlane.xlu0 %419  ;;  %776 = vrsqrt.f32 %v438_v33 }
 0x268   : > { %v434_v35 = vmul.f32 0.00390625, %v420_v34 }
 0x26a   : > { %v442_v36 = vadd.f32 1e-05, %v434_v35 }
 0x26b   : > { %v414_v37 = vpop.xlane.xlu0 %413  ;;  %v411_v38 = vpop.xlane.xlu1 %410 }
 0x26c   : > { %778 = vrsqrt.f32 %v442_v36  ;;  %v432_v39 = vmul.f32 0.00390625, %v414_v37  ;;  %v431_v40 = vmul.f32 0.00390625, %v411_v38 }
 0x26e   : > { %v440_v43 = vadd.f32 1e-05, %v432_v39  ;;  %v439_v44 = vadd.f32 1e-05, %v431_v40 }
 0x26f   : > { %v426_v45 = vpop.xlane.xlu0 %425  ;;  %v423_v46 = vpop.xlane.xlu1 %422 }
 0x270   : > { %780 = vrsqrt.f32 %v440_v43  ;;  %v436_v47 = vmul.f32 0.00390625, %v426_v45  ;;  %v435_v48 = vmul.f32 0.00390625, %v423_v46 }
 0x271   : > { %782 = vrsqrt.f32 %v439_v44  ;;  %v777_v51 = vpop.eup %776 }
 0x272   : > { %v444_v52 = vadd.f32 1e-05, %v436_v47  ;;  %v443_v53 = vadd.f32 1e-05, %v435_v48  ;;  %v454_v54 = vmul.f32 %v777_v51, %v1101_v41  ;;  %v455_v55 = vmul.f32 %v777_v51, %v1103_v42 }
 0x273   : > { %v417_v56 = vpop.xlane.xlu1 %416 }
 0x274   : > { %784 = vrsqrt.f32 %v444_v52  ;;  %v433_v57 = vmul.f32 0.00390625, %v417_v56  ;;  %v470_v0 = vmax.f32 %v454_v54, 0.0  ;;  %v471_v1 = vmax.f32 %v455_v55, 0.0 }
 0x275   : > { %786 = vrsqrt.f32 %v443_v53 }
 0x276   : > { %v779_v2 = vpop.eup %778  ;;  %v441_v3 = vadd.f32 1e-05, %v433_v57  ;;  %v677_v4 = vpack.c.bf16 %v471_v1, %v470_v0 }
 0x277   : > { %v462_v5 = vmul.f32 %v779_v2, %v1109_v49  ;;  %v463_v6 = vmul.f32 %v779_v2, %v1111_v50  ;;  %v429_v7 = vpop.xlane.xlu1 %428 }
 0x278   : > { %788 = vrsqrt.f32 %v441_v3  ;;  %v437_v8 = vmul.f32 0.00390625, %v429_v7  ;;  %534 = vst [vmem:[%s1171_s17] sm:$0xff] %v677_v4 }
 0x279   : > { %v478_v41 = vmax.f32 %v462_v5, 0.0  ;;  %v479_v42 = vmax.f32 %v463_v6, 0.0 }
 0x27a   : > { %v781_v11 = vpop.eup %780  ;;  %v445_v12 = vadd.f32 1e-05, %v437_v8 }
 0x27b   : > { %v783_v15 = vpop.eup %782  ;;  %v681_v16 = vpack.c.bf16 %v479_v42, %v478_v41  ;;  %v458_v17 = vmul.f32 %v781_v11, %v1125_v62  ;;  %v459_v49 = vmul.f32 %v781_v11, %v1127_v63 }
 0x27c   : > { %v456_v50 = vmul.f32 %v783_v15, %v1121_v60  ;;  %v457_v18 = vmul.f32 %v783_v15, %v1123_v61  ;;  %790 = vrsqrt.f32 %v445_v12 }
 0x27d   : > { %538 = vst [vmem:[%s1171_s17 + $0x20] sm:$0xff] %v681_v16  ;;  %v474_v19 = vmax.f32 %v458_v17, 0.0  ;;  %v475_v20 = vmax.f32 %v459_v49, 0.0 }
 0x27e   : > { %v785_v21 = vpop.eup %784  ;;  %v472_v22 = vmax.f32 %v456_v50, 0.0  ;;  %v473_v25 = vmax.f32 %v457_v18, 0.0 }
 0x27f   : > { %v787_v26 = vpop.eup %786  ;;  %v679_v27 = vpack.c.bf16 %v475_v20, %v474_v19  ;;  %v466_v28 = vmul.f32 %v785_v21, %v1137_v9  ;;  %v467_v62 = vmul.f32 %v785_v21, %v1139_v10 }
 0x280   : > { %v678_v63 = vpack.c.bf16 %v473_v25, %v472_v22  ;;  %v464_v60 = vmul.f32 %v787_v26, %v1117_v58  ;;  %v465_v61 = vmul.f32 %v787_v26, %v1119_v59 }
 0x281   : > { %536 = vst [vmem:[%s1171_s17 + $0x10] sm:$0xff] %v679_v27  ;;  %v482_v29 = vmax.f32 %v466_v28, 0.0  ;;  %v483_v30 = vmax.f32 %v467_v62, 0.0 }
 0x282   : > { %v789_v31 = vpop.eup %788  ;;  %535 = vst [vmem:[%s1171_s17 + $0x8] sm:$0xff] %v678_v63  ;;  %v480_v32 = vmax.f32 %v464_v60, 0.0  ;;  %v481_v33 = vmax.f32 %v465_v61, 0.0 }
 0x283   : > { %v683_v9 = vpack.c.bf16 %v483_v30, %v482_v29  ;;  %v460_v34 = vmul.f32 %v789_v31, %v1145_v13  ;;  %v461_v10 = vmul.f32 %v789_v31, %v1147_v14 }
 0x284   : > { %v682_v35 = vpack.c.bf16 %v481_v33, %v480_v32 }
 0x285   : > { %540 = vst [vmem:[%s1171_s17 + $0x30] sm:$0xff] %v683_v9  ;;  %v476_v58 = vmax.f32 %v460_v34, 0.0  ;;  %v477_v59 = vmax.f32 %v461_v10, 0.0 }
 0x286   : > { %v791_v36 = vpop.eup %790  ;;  %539 = vst [vmem:[%s1171_s17 + $0x28] sm:$0xff] %v682_v35 }
 0x287   : > { %v680_v37 = vpack.c.bf16 %v477_v59, %v476_v58  ;;  %v468_v38 = vmul.f32 %v791_v36, %v1154_v23  ;;  %v469_v39 = vmul.f32 %v791_v36, %v1156_v24 }
 0x289   : > { %537 = vst [vmem:[%s1171_s17 + $0x18] sm:$0xff] %v680_v37  ;;  %v484_v13 = vmax.f32 %v468_v38, 0.0  ;;  %v485_v40 = vmax.f32 %v469_v39, 0.0 }
 0x28b   : > { %v684_v14 = vpack.c.bf16 %v485_v40, %v484_v13 }
 0x28d   : > { %541 = vst [vmem:[%s1171_s17 + $0x38] sm:$0xff] %v684_v14 }
 0x28e   : > { %863 = shalt.err (!%p860_p7)
}
 0x28f   : > { %s864_s24 = scalar_lea.hbm %s1197_s4, 1024  ;;  %s868_s26 = scalar_lea.hbm %s1246_s2, 2048 }
 0x290   : > { %p865_p9 = scmp.ne.s32.totalorder %s1197_s4, %s864_s24  ;;  %p869_p5 = scmp.lt.u32.totalorder %s1197_s4, %s1246_s2 }
 0x291   : > { %p870_p1 = scmp.lt.u32.totalorder %s868_s26, %s864_s24  ;;  %p872_p4 = scmp.lt.u32.totalorder %s864_s24, %s1197_s4 }
 0x292   : > { %p866_p2 = pnand %p865_p9, %p1038_p12 }
 0x293   : > { %p871_p11 = por %p870_p1, %p869_p5 }
 0x294   : > { %p867_p0 = pneg %p866_p2 }
 0x295   : > { %p873_p6 = por %p872_p4, %p871_p11 }
 0x297   : > { %p874_p8 = pnand %p873_p6, %p867_p0 }
 0x299   : > { %877 = shalt.err (!%p874_p8)
}
 0x29a   : > { %s930_s3 = smov 128   ;;  %s931_s15 = smov 8  }
 0x29b   : > { %703 = dma.vmem_to_hbm [thread:$0]  (%p1038_p12), %s1199_s19, 1024, %s1197_s4, %s543_s5, %s930_s3, %s930_s3, %s931_s15  }
 0x29c PF: > { %s571_s17 = sand.u32 1, %s908_s9   ;;  %p1261_p10 = scmp.ne.s32.totalorder %s1251_s16, 0 }
 0x29d   : > { %p1262_p13 = scmp.ge.s32.totalorder %s920_s12, 2  ;;  %s572_s27 = scalar_lea.sflag [#allocation4], %s571_s17 }
 0x29f   : > { %p714_p3 = pnand %p1262_p13, %p1261_p10 }
 0x2a1   : > { %903 = dma.done.wait (!%p714_p3), %s572_s27, 1024  }
 0x2a2   : > { %905 = vsyncadd (!%p714_p3), %s572_s27, 4294966272  ;;  %p16_p7 = scmp.ge.s32.totalorder %s1003_s21, 4   ;;  %s1263_s9 = smov %s912_s10 }
 0x2a3   : > { %s1264_s10 = smov %s916_s11  ;;  %s1265_s11 = smov %s1034_s8 }
 0x2a4   : > { %s1266_s12 = smov %s1003_s21  ;;  %18 = sbr.rel (!%p16_p7) target bundleno = 6 (0x6), region = 77 }
 0x2ab   :  { %577 = vsyncpa [#allocation3], 1 }
 0x2ac   :  { %579 = vsyncpa [#allocation3 + $0x1], 1 }
 0x2ad   :  { %580 = vsyncpa [#allocation6], 1 }
 0x2ae   :  { %581 = vsyncpa [#allocation4], 1 }
 0x2af   :  { %583 = vsyncpa [#allocation4 + $0x1], 1 }

// kernel: generator_forward.105
= control target key start
LH: loop header
LB: loop body
LE: loop exit
PB: predicated region body
PF: predicated region fallthrough
CT: control target
= control target key end

     0   :  { %7 = vsyncpa [#allocation3], 0  ;;  %s2179_s0 = inlined_call_operand.hbm [shape: bf16[2,576,256], index: 0, kind: input, shape index: {}]   ;;  %s2180_s1 = inlined_call_operand.hbm [shape: bf16[64,576], index: 1, kind: input, shape index: {}]   ;;  %s2181_s2 = inlined_call_operand.hbm [shape: bf16[2,64,256], index: 2, kind: output, shape index: {}]  }
   0x1   :  { %9 = vsyncpa [#allocation3 + $0x1], 0 }
   0x2   :  { %10 = vsyncpa [#allocation6], 0 }
   0x3   :  { %11 = vsyncpa [#allocation4], 0 }
   0x4   :  { %13 = vsyncpa [#allocation4 + $0x1], 0  ;;  %s1804_s9 = smov 0   ;;  %s1806_s10 = smov 0  }
   0x5   :  { %s1808_s11 = smov 0   ;;  %s1810_s12 = smov 0  }
   0x6 LB: > { %s1825_s13 = sadd.s32 4294967295, %s1777_s12   ;;  %s1264_s14 = sadd.s32 4294967294, %s1777_s12   ;;  %s1777_s12 = sphi %s1810_s12, %s2201_s12   ;;  %s1773_s11 = sphi %s1808_s11, %s2200_s11   ;;  %s1769_s10 = sphi %s1806_s10, %s2199_s10   ;;  %s1765_s9 = sphi %s1804_s9, %s2198_s9  }
   0x7   : > { %p39_p0 = scmp.ne.s32.totalorder %s1769_s10, %s1765_s9  ;;  %p2182_p1 = scmp.eq.s32.totalorder %s1825_s13, 0 }
   0x8   : > { %p90_p3 = scmp.eq.s32.totalorder %s1264_s14, 1  ;;  %p1265_p5 = scmp.ge.s32.totalorder %s1777_s12, 1 }
   0x9   : > { %p1834_p4 = por %p2182_p1, %p39_p0  ;;  %p97_p7 = scmp.lt.s32.totalorder %s1777_s12, 3 }
   0xa   : > { %p1839_p6 = por %p90_p3, %p39_p0  ;;  %s1779_s18 = smov [#allocation5]  }
   0xb   : > { %s2185_s15 = scalar_select %p1834_p4, 1, 0 }
   0xc   : > { %s2186_s16 = scalar_select %p1839_p6, 1, 0 }
   0xd   : > { %p1844_p8 = pnand %p1265_p5, %p97_p7  ;;  %s109_s19 = sshll.u32 %s1779_s18, 4  ;;  %s1848_s19 = int_to_ptr.vmem [resolvable:$true] %s109_s19 }
   0xe   : > { %s1860_s21 = sadd.s32 1, %s1777_s12   ;;  %s26_s22 = sadd.s32 1, %s1773_s11 }
   0xf   : > { %s2187_s17 = scalar_select %p1844_p8, 1, 0 }
  0x10   : > { %p1441_p9 = pneg %p1844_p8  ;;  %s23_s23 = ssub.s32 %s1777_s12, %s1860_s21 }
  0x11   : > { %s1649_s26 = scalar_lea.hbm %s2180_s1, 2560 }
  0x12   : > { %p1855_p11 = pnand %p1441_p9, %p2182_p1  ;;  %p1650_p12 = scmp.ne.s32.totalorder %s2180_s1, %s1649_s26 }
  0x13   : > { %p1656_p5 = scmp.lt.u32.totalorder %s1649_s26, %s2180_s1 }
  0x14   : > { %p1651_p13 = pneg %p1855_p11 }
  0x16   : > { %p1652_p0 = pnand %p1651_p13, %p1650_p12 }
  0x18   : > { %p1653_p3 = pneg %p1652_p0 }
  0x1a   : > { %p1658_p7 = pnand %p1656_p5, %p1653_p3 }
  0x1c   : > { %1661 = shalt.err (!%p1658_p7)
}
  0x1d   : > { %s1662_s3 = scalar_lea.vmem %s1848_s19, 2560  ;;  %p1670_p2 = scmp.lt.s32.totalorder %s1848_s19, %s1848_s19 }
  0x1e   : > { %p1663_p9 = scmp.ne.s32.totalorder %s1848_s19, %s1662_s3  ;;  %p1671_p6 = scmp.lt.s32.totalorder %s1662_s3, %s1662_s3 }
  0x20   : > { %p1665_p10 = pnand %p1663_p9, %p1651_p13  ;;  %p1672_p4 = por %p1671_p6, %p1670_p2 }
  0x22   : > { %p1666_p1 = pneg %p1665_p10 }
  0x24   : > { %p1673_p8 = pnand %p1672_p4, %p1666_p1 }
  0x26   : > { %1676 = shalt.err (!%p1673_p8)
}
  0x27   : > { %s1780_s4 = smov 320   ;;  %s1781_s5 = smov 20  }
  0x28   : > { %1444 = dma.hbm_to_vmem [thread:$0]  (!%p1855_p11), %s2180_s1, 2560, %s1848_s19, [#allocation6], %s1780_s4, %s1780_s4, %s1781_s5  }
  0x29   : > { %p24_p2 = scmp.eq.s32.totalorder %s23_s23, 0  ;;  %p33_p1 = scmp.ne.s32.totalorder %s1773_s11, %s1769_s10 }
  0x2a   : > { %p34_p4 = scmp.eq.s32.totalorder %s1777_s12, 0  ;;  %p1454_p6 = scmp.lt.s32.totalorder %s1777_s12, 2 }
  0x2b   : > { %s1891_s8 = scalar_select %p24_p2, %s1773_s11, %s26_s22  }
  0x2c   : > { %p35_p8 = por %p34_p4, %p33_p1  ;;  %p2189_p10 = scmp.eq.s32.totalorder %s1825_s13, 1 }
  0x2d   : > { %s123_s18 = sand.u32 1, %s1773_s11   ;;  %s1431_s24 = smul.u32 9216, %s1777_s12 }
  0x2e   : > { %p1895_p12 = por %p2189_p10, %p33_p1  ;;  %s1430_s25 = smul.u32 576, %s123_s18 }
  0x2f   : > { %s1904_s27 = scalar_lea.hbm %s2179_s0, %s1431_s24  ;;  %p1906_p11 = pnand %p1454_p6, %p35_p8 }
  0x30   : > { %s127_s22 = scalar_lea.vmem [#allocation2], %s1430_s25  ;;  %s1912_s28 = scalar_lea.sflag [#allocation3], %s123_s18 }
  0x31   : > { %s134_s23 = sshll.u32 %s127_s22, 4  ;;  %s1677_s29 = scalar_lea.hbm %s1904_s27, 9216  ;;  %s1910_s23 = int_to_ptr.vmem [resolvable:$true] %s134_s23 }
  0x32   : > { %p1678_p13 = scmp.ne.s32.totalorder %s1904_s27, %s1677_s29  ;;  %p1679_p0 = pneg %p1906_p11 }
  0x33   : > { %s1682_s4 = scalar_lea.hbm %s2179_s0, 18432  ;;  %p1683_p7 = scmp.lt.u32.totalorder %s1904_s27, %s2179_s0 }
  0x34   : > { %p1680_p3 = pnand %p1679_p0, %p1678_p13  ;;  %p1684_p9 = scmp.lt.u32.totalorder %s1682_s4, %s1677_s29 }
  0x35   : > { %p1686_p1 = scmp.lt.u32.totalorder %s1677_s29, %s1904_s27 }
  0x36   : > { %p1681_p5 = pneg %p1680_p3  ;;  %p1685_p2 = por %p1684_p9, %p1683_p7 }
  0x38   : > { %p1687_p4 = por %p1686_p1, %p1685_p2 }
  0x3a   : > { %p1688_p6 = pnand %p1687_p4, %p1681_p5 }
  0x3c   : > { %1691 = shalt.err (!%p1688_p6)
}
  0x3d   : > { %s1692_s7 = scalar_lea.vmem %s1910_s23, 9216  ;;  %s1782_s18 = smov [#allocation2]  }
  0x3e   : > { %p1693_p8 = scmp.ne.s32.totalorder %s1910_s23, %s1692_s7  ;;  %s1697_s24 = sshll.u32 %s1782_s18, 4  ;;  %s1698_s24 = int_to_ptr.vmem [resolvable:$false] %s1697_s24 }
  0x3f   : > { %s1699_s25 = scalar_lea.vmem %s1698_s24, 18432  ;;  %p1700_p3 = scmp.lt.s32.totalorder %s1910_s23, %s1698_s24 }
  0x40   : > { %p1695_p10 = pnand %p1693_p8, %p1679_p0  ;;  %p1701_p7 = scmp.lt.s32.totalorder %s1699_s25, %s1692_s7 }
  0x42   : > { %p1696_p13 = pneg %p1695_p10  ;;  %p1702_p9 = por %p1701_p7, %p1700_p3 }
  0x44   : > { %p1703_p2 = pnand %p1702_p9, %p1696_p13 }
  0x46   : > { %1706 = shalt.err (!%p1703_p2)
}
  0x47   : > { %s1783_s20 = smov 128   ;;  %s1784_s26 = smov 8  }
  0x48   : > { %1448 = dma.hbm_to_vmem [thread:$0]  (!%p1906_p11), %s1904_s27, 9216, %s1910_s23, %s1912_s28, %s1783_s20, %s1783_s20, %s1784_s26  }
  0x49   : > { %p2192_p0 = scmp.ne.s32.totalorder %s2187_s17, 0 }
  0x4a   : > { %s1943_s22 = sand.u32 (!%p2192_p0), 1, %s1769_s10   ;;  %p2193_p5 = scmp.ne.s32.totalorder (!%p2192_p0), %s2185_s15, 0 }
  0x4b   : > { %146 = sbr.rel (%p2192_p0) target bundleno = 750 (0x2ee), region = 28  ;;  %s149_s30 = scalar_lea.sflag (!%p2192_p0), [#allocation3], %s1943_s22 }
  0x4c   : > { %s1432_s29 = smul.u32 (!%p2192_p0), 576, %s1943_s22 }
  0x4e   : > { %s1947_s3 = scalar_lea.vmem (!%p2192_p0), [#allocation2], %s1432_s29 }
  0x52   : > { %1752 = dma.done.wait (%p2193_p5), %s149_s30, 9216  }
  0x53   : > { %1754 = vsyncadd (%p2193_p5), %s149_s30, 4294958080  ;;  %p2194_p11 = scmp.eq.s32.totalorder %s1825_s13, 0 }
  0x55   : > { %1756 = dma.done.wait (%p2194_p11), [#allocation6], 2560   ;;  %p2195_p1 = pmov %p2194_p11 }
  0x56   : > { %v1497_v0 = vld [vmem:[%s1947_s3 + $0x4] ss:$8 sps:$4 sm:$0xff]   ;;  %v1501_v2 = vld [vmem:[%s1947_s3] ss:$8 sps:$4 sm:$0xff]   ;;  %v1503_v4 = vld [vmem:[%s1947_s3 + $0x14] ss:$8 sps:$4 sm:$0xff]  }
  0x57   : > { %1758 = vsyncadd (%p2195_p1), [#allocation6], 4294964736  ;;  %v1499_v1 = vld [vmem:[%s1947_s3 + $0x104] ss:$8 sps:$4 sm:$0xff]   ;;  %747 = vmatprep.subr.bf16.mxu1 %v1497_v0  ;;  %v1502_v3 = vld [vmem:[%s1947_s3 + $0x100] ss:$8 sps:$4 sm:$0xff]  }
  0x58   : > { %820 = vmatprep.subr.bf16.mxu0 %v1499_v1  ;;  %748 = vmatpush1.bf16.msra.mxu1 %v1501_v2  ;;  %v1505_v5 = vld [vmem:[%s1947_s3 + $0x114] ss:$8 sps:$4 sm:$0xff]   ;;  %v1507_v6 = vld [vmem:[%s1947_s3 + $0x10] ss:$8 sps:$4 sm:$0xff]   ;;  %v1509_v8 = vld [vmem:[%s1947_s3 + $0x24] ss:$8 sps:$4 sm:$0xff]  }
  0x59   : > { %821 = vmatpush1.bf16.msra.mxu0 %v1502_v3  ;;  %749 = vmatprep.subr.bf16.mxu1 %v1503_v4  ;;  %v1508_v7 = vld [vmem:[%s1947_s3 + $0x110] ss:$8 sps:$4 sm:$0xff]   ;;  %v1511_v9 = vld [vmem:[%s1947_s3 + $0x124] ss:$8 sps:$4 sm:$0xff]   ;;  %v1513_v10 = vld [vmem:[%s1947_s3 + $0x20] ss:$8 sps:$4 sm:$0xff]  }
  0x5a   : > { %822 = vmatprep.subr.bf16.mxu0 %v1505_v5  ;;  %v1514_v11 = vld [vmem:[%s1947_s3 + $0x120] ss:$8 sps:$4 sm:$0xff]   ;;  %v1515_v12 = vld [vmem:[%s1947_s3 + $0x34] ss:$8 sps:$4 sm:$0xff]   ;;  %v1519_v14 = vld [vmem:[%s1947_s3 + $0x30] ss:$8 sps:$4 sm:$0xff]  }
  0x5b   : > { %v1517_v13 = vld [vmem:[%s1947_s3 + $0x134] ss:$8 sps:$4 sm:$0xff]   ;;  %v1520_v15 = vld [vmem:[%s1947_s3 + $0x130] ss:$8 sps:$4 sm:$0xff]   ;;  %v1521_v16 = vld [vmem:[%s1947_s3 + $0x44] ss:$8 sps:$4 sm:$0xff]  }
  0x5c   : > { %750 = vmatpush1.bf16.msra.mxu1 %v1507_v6  ;;  %v1523_v17 = vld [vmem:[%s1947_s3 + $0x144] ss:$8 sps:$4 sm:$0xff]   ;;  %v1525_v18 = vld [vmem:[%s1947_s3 + $0x40] ss:$8 sps:$4 sm:$0xff]   ;;  %v1527_v20 = vld [vmem:[%s1947_s3 + $0x54] ss:$8 sps:$4 sm:$0xff]  }
  0x5d   : > { %823 = vmatpush1.bf16.msra.mxu0 %v1508_v7  ;;  %751 = vmatprep.subr.bf16.mxu1 %v1509_v8  ;;  %v1526_v19 = vld [vmem:[%s1947_s3 + $0x140] ss:$8 sps:$4 sm:$0xff]   ;;  %v1529_v21 = vld [vmem:[%s1947_s3 + $0x154] ss:$8 sps:$4 sm:$0xff]   ;;  %v1531_v22 = vld [vmem:[%s1947_s3 + $0x50] ss:$8 sps:$4 sm:$0xff]  }
  0x5e   : > { %824 = vmatprep.subr.bf16.mxu0 %v1511_v9  ;;  %v1532_v23 = vld [vmem:[%s1947_s3 + $0x150] ss:$8 sps:$4 sm:$0xff]   ;;  %v1533_v24 = vld [vmem:[%s1947_s3 + $0x64] ss:$8 sps:$4 sm:$0xff]   ;;  %v1537_v26 = vld [vmem:[%s1947_s3 + $0x60] ss:$8 sps:$4 sm:$0xff]  }
  0x5f   : > { %v1535_v25 = vld [vmem:[%s1947_s3 + $0x164] ss:$8 sps:$4 sm:$0xff]   ;;  %v1538_v27 = vld [vmem:[%s1947_s3 + $0x160] ss:$8 sps:$4 sm:$0xff]   ;;  %v1539_v28 = vld [vmem:[%s1947_s3 + $0x74] ss:$8 sps:$4 sm:$0xff]  }
  0x60   : > { %752 = vmatpush1.bf16.msra.mxu1 %v1513_v10  ;;  %v1541_v29 = vld [vmem:[%s1947_s3 + $0x174] ss:$8 sps:$4 sm:$0xff]   ;;  %v1543_v30 = vld [vmem:[%s1947_s3 + $0x70] ss:$8 sps:$4 sm:$0xff]   ;;  %v1545_v32 = vld [vmem:[%s1947_s3 + $0x84] ss:$8 sps:$4 sm:$0xff]  }
  0x61   : > { %825 = vmatpush1.bf16.msra.mxu0 %v1514_v11  ;;  %753 = vmatprep.subr.bf16.mxu1 %v1515_v12  ;;  %v1544_v31 = vld [vmem:[%s1947_s3 + $0x170] ss:$8 sps:$4 sm:$0xff]   ;;  %v1547_v33 = vld [vmem:[%s1947_s3 + $0x184] ss:$8 sps:$4 sm:$0xff]   ;;  %v1549_v34 = vld [vmem:[%s1947_s3 + $0x80] ss:$8 sps:$4 sm:$0xff]  }
  0x62   : > { %826 = vmatprep.subr.bf16.mxu0 %v1517_v13  ;;  %v1550_v35 = vld [vmem:[%s1947_s3 + $0x180] ss:$8 sps:$4 sm:$0xff]   ;;  %v1551_v36 = vld [vmem:[%s1947_s3 + $0x94] ss:$8 sps:$4 sm:$0xff]   ;;  %v1555_v38 = vld [vmem:[%s1947_s3 + $0x90] ss:$8 sps:$4 sm:$0xff]  }
  0x63   : > { %v1553_v37 = vld [vmem:[%s1947_s3 + $0x194] ss:$8 sps:$4 sm:$0xff]   ;;  %v1556_v39 = vld [vmem:[%s1947_s3 + $0x190] ss:$8 sps:$4 sm:$0xff]   ;;  %v1557_v40 = vld [vmem:[%s1947_s3 + $0xa4] ss:$8 sps:$4 sm:$0xff]  }
  0x64   : > { %754 = vmatpush1.bf16.msra.mxu1 %v1519_v14  ;;  %v1559_v41 = vld [vmem:[%s1947_s3 + $0x1a4] ss:$8 sps:$4 sm:$0xff]   ;;  %v1561_v42 = vld [vmem:[%s1947_s3 + $0xa0] ss:$8 sps:$4 sm:$0xff]   ;;  %v1563_v44 = vld [vmem:[%s1947_s3 + $0xb4] ss:$8 sps:$4 sm:$0xff]  }
  0x65   : > { %827 = vmatpush1.bf16.msra.mxu0 %v1520_v15  ;;  %755 = vmatprep.subr.bf16.mxu1 %v1521_v16  ;;  %v1562_v43 = vld [vmem:[%s1947_s3 + $0x1a0] ss:$8 sps:$4 sm:$0xff]   ;;  %v1565_v45 = vld [vmem:[%s1947_s3 + $0x1b4] ss:$8 sps:$4 sm:$0xff]   ;;  %v1567_v46 = vld [vmem:[%s1947_s3 + $0xb0] ss:$8 sps:$4 sm:$0xff]  }
  0x66   : > { %828 = vmatprep.subr.bf16.mxu0 %v1523_v17  ;;  %v1568_v47 = vld [vmem:[%s1947_s3 + $0x1b0] ss:$8 sps:$4 sm:$0xff]   ;;  %v1569_v48 = vld [vmem:[%s1947_s3 + $0xc4] ss:$8 sps:$4 sm:$0xff]   ;;  %v1573_v52 = vld [vmem:[%s1947_s3 + $0xc0] ss:$8 sps:$4 sm:$0xff]  }
  0x67   : > { %v1595_v49 = vld [vmem:[#allocation5 + $0x4] ss:$20 sps:$4 sm:$0xff]   ;;  %v1598_v51 = vld [vmem:[#allocation5 + $0xc] ss:$20 sps:$4 sm:$0xff]   ;;  %v1575_v54 = vld [vmem:[%s1947_s3 + $0xd4] ss:$8 sps:$4 sm:$0xff]  }
  0x68   : > { %756 = vmatpush1.bf16.msra.mxu1 %v1525_v18  ;;  %v1571_v50 = vld [vmem:[%s1947_s3 + $0x1c4] ss:$8 sps:$4 sm:$0xff]   ;;  %779 = vmatprep.mubr.bf16.mxu1 %v1595_v49  ;;  %v1574_v53 = vld [vmem:[%s1947_s3 + $0x1c0] ss:$8 sps:$4 sm:$0xff]   ;;  %v1577_v55 = vld [vmem:[%s1947_s3 + $0x1d4] ss:$8 sps:$4 sm:$0xff]  }
  0x69   : > { %829 = vmatpush1.bf16.msra.mxu0 %v1526_v19  ;;  %757 = vmatprep.subr.bf16.mxu1 %v1527_v20  ;;  %v1579_v56 = vld [vmem:[%s1947_s3 + $0xd0] ss:$8 sps:$4 sm:$0xff]   ;;  %v1581_v58 = vld [vmem:[%s1947_s3 + $0xe4] ss:$8 sps:$4 sm:$0xff]   ;;  %v1585_v60 = vld [vmem:[%s1947_s3 + $0xe0] ss:$8 sps:$4 sm:$0xff]  }
  0x6a   : > { %830 = vmatprep.subr.bf16.mxu0 %v1529_v21  ;;  %852 = vmatprep.mubr.bf16.mxu0 %v1598_v51  ;;  %v1580_v57 = vld [vmem:[%s1947_s3 + $0x1d0] ss:$8 sps:$4 sm:$0xff]   ;;  %v1583_v59 = vld [vmem:[%s1947_s3 + $0x1e4] ss:$8 sps:$4 sm:$0xff]   ;;  %v1586_v61 = vld [vmem:[%s1947_s3 + $0x1e0] ss:$8 sps:$4 sm:$0xff]  }
  0x6b   : > { %v1587_v62 = vld [vmem:[%s1947_s3 + $0xf4] ss:$8 sps:$4 sm:$0xff]   ;;  %v1591_v0 = vld [vmem:[%s1947_s3 + $0xf0] ss:$8 sps:$4 sm:$0xff]   ;;  %v1601_v2 = vld [vmem:[%s1947_s3 + $0x204] ss:$8 sps:$4 sm:$0xff]  }
  0x6c   : > { %758 = vmatpush1.bf16.msra.mxu1 %v1531_v22  ;;  %v1589_v63 = vld [vmem:[%s1947_s3 + $0x1f4] ss:$8 sps:$4 sm:$0xff]   ;;  %v1592_v1 = vld [vmem:[%s1947_s3 + $0x1f0] ss:$8 sps:$4 sm:$0xff]   ;;  %v1599_v5 = vld [vmem:[%s1947_s3 + $0x200] ss:$8 sps:$4 sm:$0xff]  }
  0x6d   : > { %831 = vmatpush1.bf16.msra.mxu0 %v1532_v23  ;;  %759 = vmatprep.subr.bf16.mxu1 %v1533_v24  ;;  %v1593_v3 = vld [vmem:[#allocation5] ss:$20 sps:$4 sm:$0xff]   ;;  %v1596_v4 = vld [vmem:[#allocation5 + $0x8] ss:$20 sps:$4 sm:$0xff]   ;;  %v1608_v9 = vld [vmem:[%s1947_s3 + $0x210] ss:$8 sps:$4 sm:$0xff]  }
  0x6e   : > { %832 = vmatprep.subr.bf16.mxu0 %v1535_v25  ;;  %v1602_v6 = vld [vmem:[#allocation5 + $0x2c] ss:$20 sps:$4 sm:$0xff]   ;;  %v1604_v7 = vld [vmem:[#allocation5 + $0x34] ss:$20 sps:$4 sm:$0xff]   ;;  %v1607_v12 = vld [vmem:[#allocation5 + $0x30] ss:$20 sps:$4 sm:$0xff]  }
  0x6f   : > { %v1610_v8 = vld [vmem:[%s1947_s3 + $0x214] ss:$8 sps:$4 sm:$0xff]   ;;  %v1619_v10 = vld [vmem:[%s1947_s3 + $0x224] ss:$8 sps:$4 sm:$0xff]   ;;  %v1617_v15 = vld [vmem:[%s1947_s3 + $0x220] ss:$8 sps:$4 sm:$0xff]  }
  0x70   : > { %760 = vmatpush1.bf16.msra.mxu1 %v1537_v26  ;;  %v1606_v11 = vld [vmem:[#allocation5 + $0x28] ss:$20 sps:$4 sm:$0xff]   ;;  %v1626_v17 = vld [vmem:[%s1947_s3 + $0x230] ss:$8 sps:$4 sm:$0xff]   ;;  %v1625_v23 = vld [vmem:[#allocation5 + $0x80] ss:$20 sps:$4 sm:$0xff]  }
  0x71   : > { %833 = vmatpush1.bf16.msra.mxu0 %v1538_v27  ;;  %761 = vmatprep.subr.bf16.mxu1 %v1539_v28  ;;  %v1611_v13 = vld [vmem:[#allocation5 + $0x54] ss:$20 sps:$4 sm:$0xff]   ;;  %v1613_v14 = vld [vmem:[#allocation5 + $0x5c] ss:$20 sps:$4 sm:$0xff]   ;;  %v1616_v19 = vld [vmem:[#allocation5 + $0x58] ss:$20 sps:$4 sm:$0xff]  }
  0x72   : > { %834 = vmatprep.subr.bf16.mxu0 %v1541_v29  ;;  %v1628_v16 = vld [vmem:[%s1947_s3 + $0x234] ss:$8 sps:$4 sm:$0xff]   ;;  %v1615_v18 = vld [vmem:[#allocation5 + $0x50] ss:$20 sps:$4 sm:$0xff]   ;;  %v1624_v22 = vld [vmem:[#allocation5 + $0x78] ss:$20 sps:$4 sm:$0xff]  }
  0x73   : > { %v1620_v20 = vld [vmem:[#allocation5 + $0x7c] ss:$20 sps:$4 sm:$0xff]   ;;  %v1622_v21 = vld [vmem:[#allocation5 + $0x84] ss:$20 sps:$4 sm:$0xff]   ;;  %v1785_v24 = vmov 0   ;;  %vm734_vm0 = vcmask 523264  }
  0x74   : > { %762 = vmatpush1.bf16.msra.mxu1 %v1543_v30  ;;  %v1629_v25 = vld [vmem:[#allocation5 + $0x10] ss:$20 sps:$4 sm:$0xff]   ;;  %v1630_v26 = vld [vmem:[#allocation5 + $0x60] ss:$20 sps:$4 sm:$0xff]   ;;  %v1631_v27 = vld [vmem:[#allocation5 + $0x38] ss:$20 sps:$4 sm:$0xff]  }
  0x75   : > { %835 = vmatpush1.bf16.msra.mxu0 %v1544_v31  ;;  %763 = vmatprep.subr.bf16.mxu1 %v1545_v32  ;;  %v1632_v28 = vld [vmem:[#allocation5 + $0x88] ss:$20 sps:$4 sm:$0xff]   ;;  %s1271_s15 = sshll.u32 %s1943_s22, 6  ;;  %s1389_s27 = sshll.u32 %s1825_s13, 10 }
  0x76   : > { %836 = vmatprep.subr.bf16.mxu0 %v1547_v33  ;;  %s2106_s17 = scalar_lea.vmem [#allocation7], %s1271_s15  ;;  %s2132_s4 = scalar_lea.hbm %s2181_s2, %s1389_s27 }
  0x77   : > { %s1181_s19 = sshll.u32 %s2106_s17, 4  ;;  %s1168_s5 = scalar_lea.sflag [#allocation4], %s1943_s22  ;;  %s2134_s19 = int_to_ptr.vmem [resolvable:$true] %s1181_s19 }
  0x78   : > { %764 = vmatpush1.bf16.msra.mxu1 %v1549_v34  ;;  %s1707_s6 = scalar_lea.vmem %s2134_s19, 1024  ;;  %s1786_s13 = smov [#allocation7]  }
  0x79   : > { %837 = vmatpush1.bf16.msra.mxu0 %v1550_v35  ;;  %765 = vmatprep.subr.bf16.mxu1 %v1551_v36  ;;  %p1708_p4 = scmp.ne.s32.totalorder %s2134_s19, %s1707_s6  ;;  %s1711_s7 = sshll.u32 %s1786_s13, 4  ;;  %s1712_s7 = int_to_ptr.vmem [resolvable:$false] %s1711_s7 }
  0x7a   : > { %838 = vmatprep.subr.bf16.mxu0 %v1553_v37  ;;  %s1713_s18 = scalar_lea.vmem %s1712_s7, 2048  ;;  %p1714_p10 = scmp.lt.s32.totalorder %s2134_s19, %s1712_s7 }
  0x7b   : > { %p1709_p6 = pnand %p1708_p4, %p1895_p12  ;;  %p1715_p13 = scmp.lt.s32.totalorder %s1713_s18, %s1707_s6 }
  0x7c   : > { %766 = vmatpush1.bf16.msra.mxu1 %v1555_v38 }
  0x7d   : > { %839 = vmatpush1.bf16.msra.mxu0 %v1556_v39  ;;  %767 = vmatprep.subr.bf16.mxu1 %v1557_v40  ;;  %p1710_p8 = pneg %p1709_p6  ;;  %p1716_p3 = por %p1715_p13, %p1714_p10 }
  0x7e   : > { %840 = vmatprep.subr.bf16.mxu0 %v1559_v41 }
  0x7f   : > { %p1717_p7 = pnand %p1716_p3, %p1710_p8 }
  0x80   : > { %768 = vmatpush1.bf16.msra.mxu1 %v1561_v42 }
  0x81   : > { %841 = vmatpush1.bf16.msra.mxu0 %v1562_v43  ;;  %769 = vmatprep.subr.bf16.mxu1 %v1563_v44 }
  0x82   : > { %842 = vmatprep.subr.bf16.mxu0 %v1565_v45 }
  0x84   : > { %770 = vmatpush1.bf16.msra.mxu1 %v1567_v46 }
  0x85   : > { %843 = vmatpush1.bf16.msra.mxu0 %v1568_v47  ;;  %771 = vmatprep.subr.bf16.mxu1 %v1569_v48 }
  0x86   : > { %844 = vmatprep.subr.bf16.mxu0 %v1571_v50 }
  0x88   : > { %772 = vmatpush1.bf16.msra.mxu1 %v1573_v52 }
  0x89   : > { %845 = vmatpush1.bf16.msra.mxu0 %v1574_v53  ;;  %773 = vmatprep.subr.bf16.mxu1 %v1575_v54 }
  0x8a   : > { %846 = vmatprep.subr.bf16.mxu0 %v1577_v55 }
  0x8c   : > { %774 = vmatpush1.bf16.msra.mxu1 %v1579_v56 }
  0x8d   : > { %847 = vmatpush1.bf16.msra.mxu0 %v1580_v57  ;;  %775 = vmatprep.subr.bf16.mxu1 %v1581_v58 }
  0x8e   : > { %848 = vmatprep.subr.bf16.mxu0 %v1583_v59 }
  0x90   : > { %776 = vmatpush1.bf16.msra.mxu1 %v1585_v60 }
  0x91   : > { %849 = vmatpush1.bf16.msra.mxu0 %v1586_v61  ;;  %777 = vmatprep.subr.bf16.mxu1 %v1587_v62 }
  0x92   : > { %850 = vmatprep.subr.bf16.mxu0 %v1589_v63 }
  0x94   : > { %778 = vmatpush1.bf16.msra.mxu1 %v1591_v0 }
  0x95   : > { %851 = vmatpush1.bf16.msra.mxu0 %v1592_v1  ;;  %1390 = vmatprep.subr.bf16.mxu1 %v1601_v2 }
  0x96   : > { %893 = vmatprep.subr.bf16.mxu0 %v1601_v2 }
  0x97   : > { %780 = vmatmul.mubr.bf16.vlgmr.msra.gmra.mrb[0].mxu1 %v1593_v3 }
  0x98   : > { %853 = vmatmul.mubr.bf16.vlgmr.msra.gmra.mrb[0].mxu0 %v1596_v4  ;;  %1394 = vmatpush1.bf16.msra.mxu1 %v1599_v5 }
  0x99   : > { %894 = vmatpush1.bf16.msra.mxu0 %v1599_v5  ;;  %789 = vmatprep.mubr.bf16.mxu1 %v1602_v6 }
  0x9a   : > { %862 = vmatprep.mubr.bf16.mxu0 %v1604_v7  ;;  %895 = vmatprep.subr.bf16.mxu0 %v1610_v8 }
  0x9b   : > { %1391 = vmatprep.subr.bf16.mxu1 %v1610_v8 }
  0x9c   : > { %1395 = vmatpush1.bf16.msra.mxu1 %v1608_v9 }
  0x9d   : > { %896 = vmatpush1.bf16.msra.mxu0 %v1608_v9  ;;  %1392 = vmatprep.subr.bf16.mxu1 %v1619_v10 }
  0x9e   : > { %897 = vmatprep.subr.bf16.mxu0 %v1619_v10 }
  0x9f   : > { %790 = vmatmul.mubr.bf16.gmra.mrb[4].mxu1 %v1606_v11 }
  0xa0   : > { %863 = vmatmul.mubr.bf16.gmra.mrb[4].mxu0 %v1607_v12  ;;  %799 = vmatprep.mubr.bf16.mxu1 %v1611_v13 }
  0xa1   : > { %872 = vmatprep.mubr.bf16.mxu0 %v1613_v14  ;;  %898 = vmatpush1.bf16.msra.mxu0 %v1617_v15 }
  0xa2   : > { %1396 = vmatpush1.bf16.msra.mxu1 %v1617_v15  ;;  %899 = vmatprep.subr.bf16.mxu0 %v1628_v16 }
  0xa3   : > { %1393 = vmatprep.subr.bf16.mxu1 %v1628_v16 }
  0xa5   : > { %900 = vmatpush1.bf16.msra.mxu0 %v1626_v17 }
  0xa6   : > { %1397 = vmatpush1.bf16.msra.mxu1 %v1626_v17 }
  0xa7   : > { %800 = vmatmul.mubr.bf16.gmra.mrb[8].mxu1 %v1615_v18 }
  0xa8   : > { %873 = vmatmul.mubr.bf16.gmra.mrb[8].mxu0 %v1616_v19  ;;  %809 = vmatprep.mubr.bf16.mxu1 %v1620_v20 }
  0xa9   : > { %882 = vmatprep.mubr.bf16.mxu0 %v1622_v21 }
  0xaf   : > { %810 = vmatmul.mubr.bf16.gmra.mrb[12].mxu1 %v1624_v22 }
  0xb0   : > { %883 = vmatmul.mubr.bf16.gmra.mrb[12].mxu0 %v1625_v23  ;;  %945 = vmatprep.mubr.bf16.mxu1 %v1785_v24 }
  0xb1   : > { %925 = vmatprep.mubr.bf16.mxu0 %v1785_v24 }
  0xb7   : > { %1366 = vmatmul.mubr.msk.bf16.vlgmr.msra.gmra.mrb[16].mxu1 %vm734_vm0, %v1630_v26 }
  0xb8   : > { %1364 = vmatmul.mubr.msk.bf16.vlgmr.msra.gmra.mrb[0].mxu0 %vm734_vm0, %v1629_v25  ;;  %955 = vmatprep.mubr.bf16.mxu1 %v1785_v24 }
  0xb9   : > { %935 = vmatprep.mubr.bf16.mxu0 %v1785_v24 }
  0xbf   : > { %1367 = vmatmul.mubr.msk.bf16.gmra.mrb[20].mxu1 %vm734_vm0, %v1632_v28 }
  0xc0   : > { %1365 = vmatmul.mubr.msk.bf16.gmra.mrb[4].mxu0 %vm734_vm0, %v1631_v27 }
 0x16a   : > { %v781_v29 = vpop.f32.mrb[0].mxu1 }
 0x16b   : > { %v783_v30 = vpop.f32.mrb[1].mxu1 }
 0x16c   : > { %v785_v31 = vpop.f32.mrb[2].mxu1 }
 0x16d   : > { %v787_v32 = vpop.f32.mrb[3].mxu1 }
 0x172   : > { %v791_v33 = vpop.f32.mrb[4].mxu1 }
 0x173   : > { %v793_v34 = vpop.f32.mrb[5].mxu1 }
 0x174   : > { %v795_v35 = vpop.f32.mrb[6].mxu1 }
 0x175   : > { %v797_v36 = vpop.f32.mrb[7].mxu1 }
 0x17a   : > { %v801_v37 = vpop.f32.mrb[8].mxu1 }
 0x17b   : > { %v874_v38 = vpop.f32.mrb[8].mxu0  ;;  %v803_v40 = vpop.f32.mrb[9].mxu1 }
 0x17c   : > { %v875_v39 = vadd.f32 %v874_v38, %v801_v37  ;;  %v876_v41 = vpop.f32.mrb[9].mxu0  ;;  %v805_v43 = vpop.f32.mrb[10].mxu1 }
 0x17d   : > { %v877_v42 = vadd.f32 %v876_v41, %v803_v40  ;;  %v878_v44 = vpop.f32.mrb[10].mxu0  ;;  %v807_v46 = vpop.f32.mrb[11].mxu1 }
 0x17e   : > { %v879_v45 = vadd.f32 %v878_v44, %v805_v43  ;;  %v880_v47 = vpop.f32.mrb[11].mxu0 }
 0x17f   : > { %v881_v48 = vadd.f32 %v880_v47, %v807_v46 }
 0x182   : > { %v811_v49 = vpop.f32.mrb[12].mxu1 }
 0x183   : > { %v884_v50 = vpop.f32.mrb[12].mxu0  ;;  %v813_v52 = vpop.f32.mrb[13].mxu1 }
 0x184   : > { %v885_v51 = vadd.f32 %v884_v50, %v811_v49  ;;  %v886_v53 = vpop.f32.mrb[13].mxu0  ;;  %v815_v55 = vpop.f32.mrb[14].mxu1 }
 0x185   : > { %v887_v54 = vadd.f32 %v886_v53, %v813_v52  ;;  %v888_v56 = vpop.f32.mrb[14].mxu0  ;;  %v817_v58 = vpop.f32.mrb[15].mxu1 }
 0x186   : > { %v889_v57 = vadd.f32 %v888_v56, %v815_v55  ;;  %v890_v59 = vpop.f32.mrb[15].mxu0 }
 0x187   : > { %v891_v60 = vadd.f32 %v890_v59, %v817_v58 }
 0x18a   : > { %v947_v62 = vpop.f32.mrb[16].mxu1 }
 0x18b   : > { %v927_v61 = vpop.f32.mrb[0].mxu0  ;;  %v948_v0 = vadd.f32 %v947_v62, %v875_v39  ;;  %v949_v2 = vpop.f32.mrb[17].mxu1 }
 0x18c   : > { %v1398_v63 = vadd.f32 %v927_v61, %v781_v29  ;;  %v929_v1 = vpop.f32.mrb[1].mxu0  ;;  %v950_v4 = vadd.f32 %v949_v2, %v877_v42  ;;  %v951_v6 = vpop.f32.mrb[18].mxu1 }
 0x18d   : > { %v1399_v3 = vadd.f32 %v929_v1, %v783_v30  ;;  %v931_v5 = vpop.f32.mrb[2].mxu0  ;;  %v952_v8 = vadd.f32 %v951_v6, %v879_v45  ;;  %v953_v10 = vpop.f32.mrb[19].mxu1 }
 0x18e   : > { %v1400_v7 = vadd.f32 %v931_v5, %v785_v31  ;;  %v933_v9 = vpop.f32.mrb[3].mxu0  ;;  %v954_v12 = vadd.f32 %v953_v10, %v881_v48  ;;  %v978_v17 = vadd.f32 %v950_v4, %v948_v0 }
 0x18f   : > { %v1401_v11 = vadd.f32 %v933_v9, %v787_v32  ;;  %v966_v13 = vadd.f32 %v1399_v3, %v1398_v63 }
 0x190   : > { %v981_v14 = vadd.f32 %v954_v12, %v952_v8 }
 0x191   : > { %967 = vadd.xlane.f32.xlu0 %v966_v13  ;;  %v969_v37 = vadd.f32 %v1401_v11, %v1400_v7 }
 0x192   : > { %v957_v16 = vpop.f32.mrb[20].mxu1  ;;  %982 = vadd.xlane.f32.xlu1 %v981_v14 }
 0x193   : > { %v937_v15 = vpop.f32.mrb[4].mxu0  ;;  %v958_v19 = vadd.f32 %v957_v16, %v885_v51  ;;  %v959_v21 = vpop.f32.mrb[21].mxu1 }
 0x194   : > { %v1402_v18 = vadd.f32 %v937_v15, %v791_v33  ;;  %v939_v20 = vpop.f32.mrb[5].mxu0  ;;  %v960_v23 = vadd.f32 %v959_v21, %v887_v54  ;;  %v961_v25 = vpop.f32.mrb[22].mxu1 }
 0x195   : > { %v1403_v22 = vadd.f32 %v939_v20, %v793_v34  ;;  %v941_v24 = vpop.f32.mrb[6].mxu0  ;;  %979 = vadd.xlane.f32.xlu0 %v978_v17  ;;  %v2029_v27 = vadd.f32 %v961_v25, %v889_v57  ;;  %v963_v29 = vpop.f32.mrb[23].mxu1 }
 0x196   : > { %v1404_v26 = vadd.f32 %v941_v24, %v795_v35  ;;  %v943_v28 = vpop.f32.mrb[7].mxu0  ;;  %v2031_v31 = vadd.f32 %v963_v29, %v891_v60  ;;  %v984_v38 = vadd.f32 %v960_v23, %v958_v19 }
 0x197   : > { %v1405_v30 = vadd.f32 %v943_v28, %v797_v36  ;;  %v972_v32 = vadd.f32 %v1403_v22, %v1402_v18 }
 0x198   : > { %v987_v34 = vadd.f32 %v2031_v31, %v2029_v27 }
 0x199   : > { %973 = vadd.xlane.f32.xlu1 %v972_v32  ;;  %970 = vadd.xlane.f32.xlu0 %v969_v37  ;;  %v975_v33 = vadd.f32 %v1405_v30, %v1404_v26 }
 0x19d   : > { %976 = vadd.xlane.f32.xlu1 %v975_v33  ;;  %985 = vadd.xlane.f32.xlu0 %v984_v38 }
 0x1a1   : > { %988 = vadd.xlane.f32.xlu1 %v987_v34 }
 0x21e   : > { %v968_v35 = vpop.xlane.xlu0 %967 }
 0x21f   : > { %v991_v39 = vmul.f32 0.00390625, %v968_v35  ;;  %v983_v36 = vpop.xlane.xlu1 %982 }
 0x220   : > { %v996_v45 = vmul.f32 0.00390625, %v983_v36 }
 0x221   : > { %v2035_v40 = vsub.f32 %v1398_v63, %v991_v39  ;;  %v2037_v41 = vsub.f32 %v1399_v3, %v991_v39 }
 0x222   : > { %v980_v42 = vpop.xlane.xlu0 %979  ;;  %v2051_v56 = vsub.f32 %v952_v8, %v996_v45  ;;  %v2053_v57 = vsub.f32 %v954_v12, %v996_v45 }
 0x223   : > { %v995_v43 = vmul.f32 0.00390625, %v980_v42  ;;  %v1015_v44 = vmul.f32 %v2035_v40, %v2035_v40  ;;  %v1016_v46 = vmul.f32 %v2037_v41, %v2037_v41 }
 0x224   : > { %v1025_v9 = vmul.f32 %v2051_v56, %v2051_v56  ;;  %v1026_v10 = vmul.f32 %v2053_v57, %v2053_v57 }
 0x225   : > { %v2043_v47 = vsub.f32 %v948_v0, %v995_v43  ;;  %v2045_v48 = vsub.f32 %v950_v4, %v995_v43  ;;  %v1031_v51 = vadd.f32 %v1016_v46, %v1015_v44 }
 0x226   : > { %v974_v49 = vpop.xlane.xlu1 %973  ;;  %v971_v50 = vpop.xlane.xlu0 %970  ;;  %v1046_v20 = vadd.f32 %v1026_v10, %v1025_v9 }
 0x227   : > { %v993_v52 = vmul.f32 0.00390625, %v974_v49  ;;  %v992_v53 = vmul.f32 0.00390625, %v971_v50  ;;  %v1023_v54 = vmul.f32 %v2043_v47, %v2043_v47  ;;  %v1024_v55 = vmul.f32 %v2045_v48, %v2045_v48  ;;  %1032 = vadd.xlane.f32.xlu0 %v1031_v51 }
 0x229   : > { %v2055_v58 = vsub.f32 %v1402_v18, %v993_v52  ;;  %v2057_v59 = vsub.f32 %v1403_v22, %v993_v52  ;;  %v2059_v60 = vsub.f32 %v1400_v7, %v992_v53  ;;  %v2061_v61 = vsub.f32 %v1401_v11, %v992_v53 }
 0x22a   : > { %v977_v62 = vpop.xlane.xlu1 %976  ;;  %v986_v63 = vpop.xlane.xlu0 %985  ;;  %v1043_v0 = vadd.f32 %v1024_v55, %v1023_v54 }
 0x22b   : > { %v994_v1 = vmul.f32 0.00390625, %v977_v62  ;;  %v997_v2 = vmul.f32 0.00390625, %v986_v63  ;;  %v1019_v3 = vmul.f32 %v2055_v58, %v2055_v58  ;;  %v1020_v4 = vmul.f32 %v2057_v59, %v2057_v59 }
 0x22c   : > { %1044 = vadd.xlane.f32.xlu0 %v1043_v0  ;;  %v1017_v5 = vmul.f32 %v2059_v60, %v2059_v60  ;;  %v1018_v6 = vmul.f32 %v2061_v61, %v2061_v61 }
 0x22d   : > { %v2071_v7 = vsub.f32 %v958_v19, %v997_v2  ;;  %v2073_v8 = vsub.f32 %v960_v23, %v997_v2  ;;  %v2079_v11 = vsub.f32 %v1404_v26, %v994_v1  ;;  %v2081_v12 = vsub.f32 %v1405_v30, %v994_v1 }
 0x22e   : > { %v989_v13 = vpop.xlane.xlu1 %988  ;;  %v1037_v14 = vadd.f32 %v1020_v4, %v1019_v3  ;;  %v1034_v15 = vadd.f32 %v1018_v6, %v1017_v5 }
 0x22f   : > { %v998_v16 = vmul.f32 0.00390625, %v989_v13  ;;  %v1027_v17 = vmul.f32 %v2071_v7, %v2071_v7  ;;  %v1028_v18 = vmul.f32 %v2073_v8, %v2073_v8  ;;  %v1021_v23 = vmul.f32 %v2079_v11, %v2079_v11 }
 0x230   : > { %1038 = vadd.xlane.f32.xlu0 %v1037_v14  ;;  %1035 = vadd.xlane.f32.xlu1 %v1034_v15  ;;  %v1022_v24 = vmul.f32 %v2081_v12, %v2081_v12 }
 0x231   : > { %v1049_v19 = vadd.f32 %v1028_v18, %v1027_v17  ;;  %v2088_v21 = vsub.f32 %v2029_v27, %v998_v16  ;;  %v2091_v22 = vsub.f32 %v2031_v31, %v998_v16 }
 0x232   : > { %v1040_v25 = vadd.f32 %v1022_v24, %v1021_v23 }
 0x233   : > { %v1029_v26 = vmul.f32 %v2088_v21, %v2088_v21  ;;  %v1030_v28 = vmul.f32 %v2091_v22, %v2091_v22 }
 0x234   : > { %1050 = vadd.xlane.f32.xlu0 %v1049_v19  ;;  %1047 = vadd.xlane.f32.xlu1 %v1046_v20 }
 0x235   : > { %v1052_v27 = vadd.f32 %v1030_v28, %v1029_v26 }
 0x238   : > { %1041 = vadd.xlane.f32.xlu1 %v1040_v25 }
 0x23c   : > { %1053 = vadd.xlane.f32.xlu1 %v1052_v27 }
 0x2b4   : > { %v1033_v29 = vpop.xlane.xlu0 %1032 }
 0x2b5   : > { %v1055_v30 = vmul.f32 0.00390625, %v1033_v29 }
 0x2b7   : > { %v1063_v31 = vadd.f32 1e-05, %v1055_v30 }
 0x2b9   : > { %v1045_v32 = vpop.xlane.xlu0 %1044  ;;  %1633 = vrsqrt.f32 %v1063_v31 }
 0x2ba   : > { %v1059_v37 = vmul.f32 0.00390625, %v1045_v32 }
 0x2bc   : > { %v1067_v33 = vadd.f32 1e-05, %v1059_v37 }
 0x2bd   : > { %v1039_v38 = vpop.xlane.xlu0 %1038  ;;  %v1036_v34 = vpop.xlane.xlu1 %1035 }
 0x2be   : > { %1635 = vrsqrt.f32 %v1067_v33  ;;  %v1057_v35 = vmul.f32 0.00390625, %v1039_v38  ;;  %v1056_v39 = vmul.f32 0.00390625, %v1036_v34 }
 0x2c0   : > { %v1065_v36 = vadd.f32 1e-05, %v1057_v35  ;;  %v1064_v42 = vadd.f32 1e-05, %v1056_v39 }
 0x2c1   : > { %v1051_v43 = vpop.xlane.xlu0 %1050  ;;  %v1048_v44 = vpop.xlane.xlu1 %1047 }
 0x2c2   : > { %1637 = vrsqrt.f32 %v1065_v36  ;;  %v1061_v45 = vmul.f32 0.00390625, %v1051_v43  ;;  %v1060_v46 = vmul.f32 0.00390625, %v1048_v44 }
 0x2c3   : > { %1639 = vrsqrt.f32 %v1064_v42  ;;  %v1634_v49 = vpop.eup %1633 }
 0x2c4   : > { %v1069_v50 = vadd.f32 1e-05, %v1061_v45  ;;  %v1068_v51 = vadd.f32 1e-05, %v1060_v46  ;;  %v1079_v52 = vmul.f32 %v1634_v49, %v2035_v40  ;;  %v1080_v53 = vmul.f32 %v1634_v49, %v2037_v41 }
 0x2c5   : > { %v1042_v54 = vpop.xlane.xlu1 %1041 }
 0x2c6   : > { %1641 = vrsqrt.f32 %v1069_v50  ;;  %v1058_v55 = vmul.f32 0.00390625, %v1042_v54  ;;  %v1095_v62 = vmax.f32 %v1079_v52, 0.0  ;;  %v1096_v63 = vmax.f32 %v1080_v53, 0.0 }
 0x2c7   : > { %1643 = vrsqrt.f32 %v1068_v51 }
 0x2c8   : > { %v1636_v0 = vpop.eup %1635  ;;  %v1066_v1 = vadd.f32 1e-05, %v1058_v55  ;;  %v1381_v2 = vpack.c.bf16 %v1096_v63, %v1095_v62 }
 0x2c9   : > { %v1087_v3 = vmul.f32 %v1636_v0, %v2043_v47  ;;  %v1088_v4 = vmul.f32 %v1636_v0, %v2045_v48  ;;  %v1054_v5 = vpop.xlane.xlu1 %1053 }
 0x2ca   : > { %1645 = vrsqrt.f32 %v1066_v1  ;;  %v1062_v6 = vmul.f32 0.00390625, %v1054_v5  ;;  %1159 = vst [vmem:[%s2106_s17] sm:$0xff] %v1381_v2 }
 0x2cb   : > { %v1103_v40 = vmax.f32 %v1087_v3, 0.0  ;;  %v1104_v41 = vmax.f32 %v1088_v4, 0.0 }
 0x2cc   : > { %v1638_v9 = vpop.eup %1637  ;;  %v1070_v10 = vadd.f32 1e-05, %v1062_v6 }
 0x2cd   : > { %v1640_v13 = vpop.eup %1639  ;;  %v1385_v14 = vpack.c.bf16 %v1104_v41, %v1103_v40  ;;  %v1083_v15 = vmul.f32 %v1638_v9, %v2055_v58  ;;  %v1084_v47 = vmul.f32 %v1638_v9, %v2057_v59 }
 0x2ce   : > { %v1081_v48 = vmul.f32 %v1640_v13, %v2059_v60  ;;  %v1082_v16 = vmul.f32 %v1640_v13, %v2061_v61  ;;  %1647 = vrsqrt.f32 %v1070_v10 }
 0x2cf   : > { %1163 = vst [vmem:[%s2106_s17 + $0x20] sm:$0xff] %v1385_v14  ;;  %v1099_v17 = vmax.f32 %v1083_v15, 0.0  ;;  %v1100_v18 = vmax.f32 %v1084_v47, 0.0 }
 0x2d0   : > { %v1642_v19 = vpop.eup %1641  ;;  %v1097_v20 = vmax.f32 %v1081_v48, 0.0  ;;  %v1098_v23 = vmax.f32 %v1082_v16, 0.0 }
 0x2d1   : > { %v1644_v24 = vpop.eup %1643  ;;  %v1383_v25 = vpack.c.bf16 %v1100_v18, %v1099_v17  ;;  %v1091_v26 = vmul.f32 %v1642_v19, %v2071_v7  ;;  %v1092_v58 = vmul.f32 %v1642_v19, %v2073_v8 }
 0x2d2   : > { %v1382_v59 = vpack.c.bf16 %v1098_v23, %v1097_v20  ;;  %v1089_v60 = vmul.f32 %v1644_v24, %v2051_v56  ;;  %v1090_v61 = vmul.f32 %v1644_v24, %v2053_v57 }
 0x2d3   : > { %1161 = vst [vmem:[%s2106_s17 + $0x10] sm:$0xff] %v1383_v25  ;;  %v1107_v28 = vmax.f32 %v1091_v26, 0.0  ;;  %v1108_v27 = vmax.f32 %v1092_v58, 0.0 }
 0x2d4   : > { %v1646_v29 = vpop.eup %1645  ;;  %1160 = vst [vmem:[%s2106_s17 + $0x8] sm:$0xff] %v1382_v59  ;;  %v1105_v30 = vmax.f32 %v1089_v60, 0.0  ;;  %v1106_v31 = vmax.f32 %v1090_v61, 0.0 }
 0x2d5   : > { %v1387_v7 = vpack.c.bf16 %v1108_v27, %v1107_v28  ;;  %v1085_v32 = vmul.f32 %v1646_v29, %v2079_v11  ;;  %v1086_v8 = vmul.f32 %v1646_v29, %v2081_v12 }
 0x2d6   : > { %v1386_v37 = vpack.c.bf16 %v1106_v31, %v1105_v30 }
 0x2d7   : > { %1165 = vst [vmem:[%s2106_s17 + $0x30] sm:$0xff] %v1387_v7  ;;  %v1101_v56 = vmax.f32 %v1085_v32, 0.0  ;;  %v1102_v57 = vmax.f32 %v1086_v8, 0.0 }
 0x2d8   : > { %v1648_v33 = vpop.eup %1647  ;;  %1164 = vst [vmem:[%s2106_s17 + $0x28] sm:$0xff] %v1386_v37 }
 0x2d9   : > { %v1384_v38 = vpack.c.bf16 %v1102_v57, %v1101_v56  ;;  %v1093_v34 = vmul.f32 %v1648_v33, %v2088_v21  ;;  %v1094_v35 = vmul.f32 %v1648_v33, %v2091_v22 }
 0x2db   : > { %1162 = vst [vmem:[%s2106_s17 + $0x18] sm:$0xff] %v1384_v38  ;;  %v1109_v11 = vmax.f32 %v1093_v34, 0.0  ;;  %v1110_v39 = vmax.f32 %v1094_v35, 0.0 }
 0x2dd   : > { %v1388_v12 = vpack.c.bf16 %v1110_v39, %v1109_v11 }
 0x2df   : > { %1166 = vst [vmem:[%s2106_s17 + $0x38] sm:$0xff] %v1388_v12 }
 0x2e0   : > { %1720 = shalt.err (!%p1717_p7)
}
 0x2e1   : > { %s1721_s24 = scalar_lea.hbm %s2132_s4, 1024  ;;  %s1725_s26 = scalar_lea.hbm %s2181_s2, 2048 }
 0x2e2   : > { %p1722_p9 = scmp.ne.s32.totalorder %s2132_s4, %s1721_s24  ;;  %p1726_p5 = scmp.lt.u32.totalorder %s2132_s4, %s2181_s2 }
 0x2e3   : > { %p1727_p11 = scmp.lt.u32.totalorder %s1725_s26, %s1721_s24  ;;  %p1729_p4 = scmp.lt.u32.totalorder %s1721_s24, %s2132_s4 }
 0x2e4   : > { %p1723_p2 = pnand %p1722_p9, %p1895_p12 }
 0x2e5   : > { %p1728_p1 = por %p1727_p11, %p1726_p5 }
 0x2e6   : > { %p1724_p0 = pneg %p1723_p2 }
 0x2e7   : > { %p1730_p6 = por %p1729_p4, %p1728_p1 }
 0x2e9   : > { %p1731_p8 = pnand %p1730_p6, %p1724_p0 }
 0x2eb   : > { %1734 = shalt.err (!%p1731_p8)
}
 0x2ec   : > { %s1787_s3 = smov 128   ;;  %s1788_s15 = smov 8  }
 0x2ed   : > { %1439 = dma.vmem_to_hbm [thread:$0]  (%p1895_p12), %s2134_s19, 1024, %s2132_s4, %s1168_s5, %s1787_s3, %s1787_s3, %s1788_s15  }
 0x2ee PF: > { %s1196_s17 = sand.u32 1, %s1765_s9   ;;  %p2196_p10 = scmp.ne.s32.totalorder %s2186_s16, 0 }
 0x2ef   : > { %p2197_p13 = scmp.ge.s32.totalorder %s1777_s12, 2  ;;  %s1197_s27 = scalar_lea.sflag [#allocation4], %s1196_s17 }
 0x2f1   : > { %p1450_p3 = pnand %p2197_p13, %p2196_p10 }
 0x2f3   : > { %1760 = dma.done.wait (!%p1450_p3), %s1197_s27, 1024  }
 0x2f4   : > { %1762 = vsyncadd (!%p1450_p3), %s1197_s27, 4294966272  ;;  %p16_p7 = scmp.ge.s32.totalorder %s1860_s21, 4   ;;  %s2198_s9 = smov %s1769_s10 }
 0x2f5   : > { %s2199_s10 = smov %s1773_s11  ;;  %s2200_s11 = smov %s1891_s8 }
 0x2f6   : > { %s2201_s12 = smov %s1860_s21  ;;  %18 = sbr.rel (!%p16_p7) target bundleno = 6 (0x6), region = 77 }
 0x2fd   :  { %1202 = vsyncpa [#allocation3], 1 }
 0x2fe   :  { %1204 = vsyncpa [#allocation3 + $0x1], 1 }
 0x2ff   :  { %1205 = vsyncpa [#allocation6], 1 }
 0x300   :  { %1206 = vsyncpa [#allocation4], 1 }
 0x301   :  { %1208 = vsyncpa [#allocation4 + $0x1], 1 }

// kernel: generator_forward.106
= control target key start
LH: loop header
LB: loop body
LE: loop exit
PB: predicated region body
PF: predicated region fallthrough
CT: control target
= control target key end

     0   :  { %7 = vsyncpa [#allocation3], 0  ;;  %s1874_s0 = inlined_call_operand.hbm [shape: bf16[2,576,64], index: 0, kind: input, shape index: {}]   ;;  %s1875_s1 = inlined_call_operand.hbm [shape: bf16[64,576], index: 1, kind: input, shape index: {}]   ;;  %s1876_s2 = inlined_call_operand.hbm [shape: bf16[2,64,64], index: 2, kind: output, shape index: {}]  }
   0x1   :  { %9 = vsyncpa [#allocation3 + $0x1], 0 }
   0x2   :  { %10 = vsyncpa [#allocation6], 0 }
   0x3   :  { %11 = vsyncpa [#allocation4], 0 }
   0x4   :  { %13 = vsyncpa [#allocation4 + $0x1], 0  ;;  %s1551_s9 = smov 0   ;;  %s1553_s10 = smov 0  }
   0x5   :  { %s1555_s11 = smov 0   ;;  %s1557_s12 = smov 0  }
   0x6 LB: > { %s1572_s13 = sadd.s32 4294967295, %s1525_s12   ;;  %s1049_s14 = sadd.s32 4294967294, %s1525_s12   ;;  %s1525_s12 = sphi %s1557_s12, %s1896_s12   ;;  %s1521_s11 = sphi %s1555_s11, %s1895_s11   ;;  %s1517_s10 = sphi %s1553_s10, %s1894_s10   ;;  %s1513_s9 = sphi %s1551_s9, %s1893_s9  }
   0x7   : > { %p39_p0 = scmp.ne.s32.totalorder %s1517_s10, %s1513_s9  ;;  %p1877_p1 = scmp.eq.s32.totalorder %s1572_s13, 0 }
   0x8   : > { %p90_p3 = scmp.eq.s32.totalorder %s1049_s14, 1  ;;  %p1050_p5 = scmp.ge.s32.totalorder %s1525_s12, 1 }
   0x9   : > { %p1581_p4 = por %p1877_p1, %p39_p0  ;;  %p97_p7 = scmp.lt.s32.totalorder %s1525_s12, 3 }
   0xa   : > { %p1586_p6 = por %p90_p3, %p39_p0  ;;  %s1527_s18 = smov [#allocation5]  }
   0xb   : > { %s1880_s15 = scalar_select %p1581_p4, 1, 0 }
   0xc   : > { %s1881_s16 = scalar_select %p1586_p6, 1, 0 }
   0xd   : > { %p1591_p8 = pnand %p1050_p5, %p97_p7  ;;  %s109_s19 = sshll.u32 %s1527_s18, 4  ;;  %s1595_s19 = int_to_ptr.vmem [resolvable:$true] %s109_s19 }
   0xe   : > { %s1607_s21 = sadd.s32 1, %s1525_s12   ;;  %s26_s22 = sadd.s32 1, %s1521_s11 }
   0xf   : > { %s1882_s17 = scalar_select %p1591_p8, 1, 0 }
  0x10   : > { %p1262_p9 = pneg %p1591_p8  ;;  %s23_s23 = ssub.s32 %s1525_s12, %s1607_s21 }
  0x11   : > { %s1397_s26 = scalar_lea.hbm %s1875_s1, 2560 }
  0x12   : > { %p1602_p11 = pnand %p1262_p9, %p1877_p1  ;;  %p1398_p12 = scmp.ne.s32.totalorder %s1875_s1, %s1397_s26 }
  0x13   : > { %p1404_p5 = scmp.lt.u32.totalorder %s1397_s26, %s1875_s1 }
  0x14   : > { %p1399_p13 = pneg %p1602_p11 }
  0x16   : > { %p1400_p0 = pnand %p1399_p13, %p1398_p12 }
  0x18   : > { %p1401_p3 = pneg %p1400_p0 }
  0x1a   : > { %p1406_p7 = pnand %p1404_p5, %p1401_p3 }
  0x1c   : > { %1409 = shalt.err (!%p1406_p7)
}
  0x1d   : > { %s1410_s3 = scalar_lea.vmem %s1595_s19, 2560  ;;  %p1418_p2 = scmp.lt.s32.totalorder %s1595_s19, %s1595_s19 }
  0x1e   : > { %p1411_p9 = scmp.ne.s32.totalorder %s1595_s19, %s1410_s3  ;;  %p1419_p6 = scmp.lt.s32.totalorder %s1410_s3, %s1410_s3 }
  0x20   : > { %p1413_p10 = pnand %p1411_p9, %p1399_p13  ;;  %p1420_p4 = por %p1419_p6, %p1418_p2 }
  0x22   : > { %p1414_p1 = pneg %p1413_p10 }
  0x24   : > { %p1421_p8 = pnand %p1420_p4, %p1414_p1 }
  0x26   : > { %1424 = shalt.err (!%p1421_p8)
}
  0x27   : > { %s1528_s4 = smov 320   ;;  %s1529_s5 = smov 20  }
  0x28   : > { %1265 = dma.hbm_to_vmem [thread:$0]  (!%p1602_p11), %s1875_s1, 2560, %s1595_s19, [#allocation6], %s1528_s4, %s1528_s4, %s1529_s5  }
  0x29   : > { %p24_p2 = scmp.eq.s32.totalorder %s23_s23, 0  ;;  %p33_p1 = scmp.ne.s32.totalorder %s1521_s11, %s1517_s10 }
  0x2a   : > { %p34_p4 = scmp.eq.s32.totalorder %s1525_s12, 0  ;;  %p1275_p6 = scmp.lt.s32.totalorder %s1525_s12, 2 }
  0x2b   : > { %s1638_s8 = scalar_select %p24_p2, %s1521_s11, %s26_s22  }
  0x2c   : > { %p35_p8 = por %p34_p4, %p33_p1  ;;  %p1884_p10 = scmp.eq.s32.totalorder %s1572_s13, 1 }
  0x2d   : > { %s123_s18 = sand.u32 1, %s1521_s11   ;;  %s1252_s24 = smul.u32 4608, %s1525_s12 }
  0x2e   : > { %p1642_p12 = por %p1884_p10, %p33_p1  ;;  %s1251_s25 = smul.u32 288, %s123_s18 }
  0x2f   : > { %s1651_s27 = scalar_lea.hbm %s1874_s0, %s1252_s24  ;;  %p1653_p11 = pnand %p1275_p6, %p35_p8 }
  0x30   : > { %s127_s22 = scalar_lea.vmem [#allocation2], %s1251_s25  ;;  %s1659_s28 = scalar_lea.sflag [#allocation3], %s123_s18 }
  0x31   : > { %s134_s23 = sshll.u32 %s127_s22, 4  ;;  %s1425_s29 = scalar_lea.hbm %s1651_s27, 4608  ;;  %s1657_s23 = int_to_ptr.vmem [resolvable:$true] %s134_s23 }
  0x32   : > { %p1426_p13 = scmp.ne.s32.totalorder %s1651_s27, %s1425_s29  ;;  %p1427_p0 = pneg %p1653_p11 }
  0x33   : > { %s1430_s4 = scalar_lea.hbm %s1874_s0, 9216  ;;  %p1431_p7 = scmp.lt.u32.totalorder %s1651_s27, %s1874_s0 }
  0x34   : > { %p1428_p3 = pnand %p1427_p0, %p1426_p13  ;;  %p1432_p9 = scmp.lt.u32.totalorder %s1430_s4, %s1425_s29 }
  0x35   : > { %p1434_p1 = scmp.lt.u32.totalorder %s1425_s29, %s1651_s27 }
  0x36   : > { %p1429_p5 = pneg %p1428_p3  ;;  %p1433_p2 = por %p1432_p9, %p1431_p7 }
  0x38   : > { %p1435_p4 = por %p1434_p1, %p1433_p2 }
  0x3a   : > { %p1436_p6 = pnand %p1435_p4, %p1429_p5 }
  0x3c   : > { %1439 = shalt.err (!%p1436_p6)
}
  0x3d   : > { %s1440_s7 = scalar_lea.vmem %s1657_s23, 4608  ;;  %s1530_s18 = smov [#allocation2]  }
  0x3e   : > { %p1441_p8 = scmp.ne.s32.totalorder %s1657_s23, %s1440_s7  ;;  %s1445_s24 = sshll.u32 %s1530_s18, 4  ;;  %s1446_s24 = int_to_ptr.vmem [resolvable:$false] %s1445_s24 }
  0x3f   : > { %s1447_s25 = scalar_lea.vmem %s1446_s24, 9216  ;;  %p1448_p3 = scmp.lt.s32.totalorder %s1657_s23, %s1446_s24 }
  0x40   : > { %p1443_p10 = pnand %p1441_p8, %p1427_p0  ;;  %p1449_p7 = scmp.lt.s32.totalorder %s1447_s25, %s1440_s7 }
  0x42   : > { %p1444_p13 = pneg %p1443_p10  ;;  %p1450_p9 = por %p1449_p7, %p1448_p3 }
  0x44   : > { %p1451_p2 = pnand %p1450_p9, %p1444_p13 }
  0x46   : > { %1454 = shalt.err (!%p1451_p2)
}
  0x47   : > { %s1531_s20 = smov 64   ;;  %s1532_s26 = smov 4  }
  0x48   : > { %1269 = dma.hbm_to_vmem [thread:$0]  (!%p1653_p11), %s1651_s27, 4608, %s1657_s23, %s1659_s28, %s1531_s20, %s1531_s20, %s1532_s26  }
  0x49   : > { %p1887_p0 = scmp.ne.s32.totalorder %s1882_s17, 0 }
  0x4a   : > { %s1690_s22 = sand.u32 (!%p1887_p0), 1, %s1517_s10   ;;  %p1888_p5 = scmp.ne.s32.totalorder (!%p1887_p0), %s1880_s15, 0 }
  0x4b   : > { %146 = sbr.rel (%p1887_p0) target bundleno = 711 (0x2c7), region = 28  ;;  %s149_s30 = scalar_lea.sflag (!%p1887_p0), [#allocation3], %s1690_s22 }
  0x4c   : > { %s1253_s29 = smul.u32 (!%p1887_p0), 288, %s1690_s22 }
  0x4e   : > { %s1694_s3 = scalar_lea.vmem (!%p1887_p0), [#allocation2], %s1253_s29 }
  0x52   : > { %1500 = dma.done.wait (%p1888_p5), %s149_s30, 4608  }
  0x53   : > { %1502 = vsyncadd (%p1888_p5), %s149_s30, 4294962688  ;;  %p1889_p11 = scmp.eq.s32.totalorder %s1572_s13, 0 }
  0x55   : > { %1504 = dma.done.wait (%p1889_p11), [#allocation6], 2560   ;;  %p1890_p1 = pmov %p1889_p11 }
  0x56   : > { %v1317_v0 = vld [vmem:[%s1694_s3 + $0x40] sm:$0xff]   ;;  %v1321_v4 = vld [vmem:[%s1694_s3 + $0x48] sm:$0xff]   ;;  %v1325_v8 = vld [vmem:[%s1694_s3 + $0x50] sm:$0xff]   ;;  %vm590_vm0 = vcmask 523264   ;;  %s1056_s15 = sshll.u32 %s1690_s22, 5  ;;  %vm943_vm1 = vcmask 519168  }
  0x57   : > { %1506 = vsyncadd (%p1890_p1), [#allocation6], 4294964736  ;;  %v1318_v1 = vld [vmem:[%s1694_s3 + $0xc0] sm:$0xff]   ;;  %1139 = vmatprep.subr.bf16.mxu0 %v1317_v0  ;;  %v1322_v5 = vld [vmem:[%s1694_s3 + $0xc8] sm:$0xff]   ;;  %s1800_s17 = scalar_lea.vmem [#allocation7], %s1056_s15  ;;  %s1138_s27 = sshll.u32 %s1572_s13, 9 }
  0x58   : > { %v1319_v2 = vld [vmem:[%s1694_s3] sm:$0xff]   ;;  %1179 = vmatprep.subr.bf16.mxu1 %v1318_v1  ;;  %v1323_v6 = vld [vmem:[%s1694_s3 + $0x8] sm:$0xff]   ;;  %v1326_v9 = vld [vmem:[%s1694_s3 + $0xd0] sm:$0xff]   ;;  %s966_s19 = sshll.u32 %s1800_s17, 4  ;;  %s1826_s4 = scalar_lea.hbm %s1876_s2, %s1138_s27  ;;  %s1828_s19 = int_to_ptr.vmem [resolvable:$true] %s966_s19 }
  0x59   : > { %v1320_v3 = vld [vmem:[%s1694_s3 + $0x80] sm:$0xff]   ;;  %1140 = vmatpush3.bf16.msra.mxu0 %v1319_v2  ;;  %v1324_v7 = vld [vmem:[%s1694_s3 + $0x88] sm:$0xff]   ;;  %v1327_v10 = vld [vmem:[%s1694_s3 + $0x10] sm:$0xff]   ;;  %s953_s13 = scalar_lea.sflag [#allocation4], %s1690_s22  ;;  %s1455_s5 = scalar_lea.vmem %s1828_s19, 512 }
  0x5a   : > { %1180 = vmatpush3.bf16.msra.mxu1 %v1320_v3  ;;  %1141 = vmatprep.subr.bf16.mxu0 %v1321_v4  ;;  %v1328_v11 = vld [vmem:[%s1694_s3 + $0x90] sm:$0xff]   ;;  %v1329_v12 = vld [vmem:[%s1694_s3 + $0x58] sm:$0xff]   ;;  %v1333_v16 = vld [vmem:[%s1694_s3 + $0x60] sm:$0xff]   ;;  %p1456_p4 = scmp.ne.s32.totalorder %s1828_s19, %s1455_s5  ;;  %s1533_s6 = smov [#allocation7]  }
  0x5b   : > { %1181 = vmatprep.subr.bf16.mxu1 %v1322_v5  ;;  %v1330_v13 = vld [vmem:[%s1694_s3 + $0xd8] sm:$0xff]   ;;  %v1334_v17 = vld [vmem:[%s1694_s3 + $0xe0] sm:$0xff]   ;;  %v1337_v20 = vld [vmem:[%s1694_s3 + $0x68] sm:$0xff]   ;;  %s1459_s7 = sshll.u32 %s1533_s6, 4  ;;  %s1460_s7 = int_to_ptr.vmem [resolvable:$false] %s1459_s7 }
  0x5c   : > { %v1331_v14 = vld [vmem:[%s1694_s3 + $0x18] sm:$0xff]   ;;  %v1335_v18 = vld [vmem:[%s1694_s3 + $0x20] sm:$0xff]   ;;  %v1338_v21 = vld [vmem:[%s1694_s3 + $0xe8] sm:$0xff]   ;;  %p1457_p6 = pnand %p1456_p4, %p1642_p12  ;;  %s1461_s18 = scalar_lea.vmem %s1460_s7, 1024 }
  0x5d   : > { %1142 = vmatpush3.bf16.msra.mxu0 %v1323_v6  ;;  %v1332_v15 = vld [vmem:[%s1694_s3 + $0x98] sm:$0xff]   ;;  %v1336_v19 = vld [vmem:[%s1694_s3 + $0xa0] sm:$0xff]   ;;  %v1339_v22 = vld [vmem:[%s1694_s3 + $0x28] sm:$0xff]   ;;  %p1462_p10 = scmp.lt.s32.totalorder %s1828_s19, %s1460_s7  ;;  %p1463_p13 = scmp.lt.s32.totalorder %s1461_s18, %s1455_s5 }
  0x5e   : > { %1182 = vmatpush3.bf16.msra.mxu1 %v1324_v7  ;;  %1143 = vmatprep.subr.bf16.mxu0 %v1325_v8  ;;  %v1340_v23 = vld [vmem:[%s1694_s3 + $0xa8] sm:$0xff]   ;;  %v1341_v24 = vld [vmem:[%s1694_s3 + $0x70] sm:$0xff]   ;;  %v1345_v28 = vld [vmem:[%s1694_s3 + $0x78] sm:$0xff]   ;;  %p1458_p8 = pneg %p1457_p6 }
  0x5f   : > { %1183 = vmatprep.subr.bf16.mxu1 %v1326_v9  ;;  %v1342_v25 = vld [vmem:[%s1694_s3 + $0xf0] sm:$0xff]   ;;  %v1346_v29 = vld [vmem:[%s1694_s3 + $0xf8] sm:$0xff]   ;;  %v1354_v35 = vld [vmem:[#allocation5 + $0xc] ss:$20 sps:$4 sm:$0xff]   ;;  %p1464_p3 = por %p1463_p13, %p1462_p10 }
  0x60   : > { %v1343_v26 = vld [vmem:[%s1694_s3 + $0x30] sm:$0xff]   ;;  %v1347_v30 = vld [vmem:[%s1694_s3 + $0x38] sm:$0xff]   ;;  %v1355_v36 = vld [vmem:[%s1694_s3 + $0x100] sm:$0xff]   ;;  %700 = vmatprep.mubr.bf16.mxu1 %v1354_v35 }
  0x61   : > { %1144 = vmatpush3.bf16.msra.mxu0 %v1327_v10  ;;  %v1344_v27 = vld [vmem:[%s1694_s3 + $0xb0] sm:$0xff]   ;;  %v1348_v31 = vld [vmem:[%s1694_s3 + $0xb8] sm:$0xff]   ;;  %v1356_v37 = vld [vmem:[#allocation5 + $0x2c] ss:$20 sps:$4 sm:$0xff]   ;;  %p1465_p7 = pnand %p1464_p3, %p1458_p8 }
  0x62   : > { %1184 = vmatpush3.bf16.msra.mxu1 %v1328_v11  ;;  %1145 = vmatprep.subr.bf16.mxu0 %v1329_v12  ;;  %v1349_v32 = vld [vmem:[#allocation5] ss:$20 sps:$4 sm:$0xff]   ;;  %v1351_v33 = vld [vmem:[#allocation5 + $0x4] ss:$20 sps:$4 sm:$0xff]   ;;  %v1352_v34 = vld [vmem:[#allocation5 + $0x8] ss:$20 sps:$4 sm:$0xff]  }
  0x63   : > { %1185 = vmatprep.subr.bf16.mxu1 %v1330_v13  ;;  %635 = vmatprep.mubr.bf16.mxu0 %v1351_v33  ;;  %v1358_v38 = vld [vmem:[#allocation5 + $0x34] ss:$20 sps:$4 sm:$0xff]   ;;  %v1361_v41 = vld [vmem:[#allocation5 + $0x30] ss:$20 sps:$4 sm:$0xff]   ;;  %v1376_v45 = vld [vmem:[%s1694_s3 + $0x118] sm:$0xff]  }
  0x64   : > { %v1362_v39 = vld [vmem:[%s1694_s3 + $0x108] sm:$0xff]   ;;  %v1365_v43 = vld [vmem:[#allocation5 + $0x5c] ss:$20 sps:$4 sm:$0xff]   ;;  %v1372_v49 = vld [vmem:[#allocation5 + $0x84] ss:$20 sps:$4 sm:$0xff]  }
  0x65   : > { %1146 = vmatpush3.bf16.msra.mxu0 %v1331_v14  ;;  %v1360_v40 = vld [vmem:[#allocation5 + $0x28] ss:$20 sps:$4 sm:$0xff]   ;;  %v1369_v44 = vld [vmem:[%s1694_s3 + $0x110] sm:$0xff]   ;;  %v1368_v47 = vld [vmem:[#allocation5 + $0x58] ss:$20 sps:$4 sm:$0xff]  }
  0x66   : > { %1186 = vmatpush3.bf16.msra.mxu1 %v1332_v15  ;;  %1147 = vmatprep.subr.bf16.mxu0 %v1333_v16  ;;  %v1363_v42 = vld [vmem:[#allocation5 + $0x54] ss:$20 sps:$4 sm:$0xff]   ;;  %v1367_v46 = vld [vmem:[#allocation5 + $0x50] ss:$20 sps:$4 sm:$0xff]   ;;  %v1374_v50 = vld [vmem:[#allocation5 + $0x78] ss:$20 sps:$4 sm:$0xff]  }
  0x67   : > { %1187 = vmatprep.subr.bf16.mxu1 %v1334_v17  ;;  %v1370_v48 = vld [vmem:[#allocation5 + $0x7c] ss:$20 sps:$4 sm:$0xff]   ;;  %v1375_v51 = vld [vmem:[#allocation5 + $0x80] ss:$20 sps:$4 sm:$0xff]   ;;  %v1379_v54 = vld [vmem:[#allocation5 + $0x38] ss:$20 sps:$4 sm:$0xff]  }
  0x68   : > { %v1377_v52 = vld [vmem:[#allocation5 + $0x10] ss:$20 sps:$4 sm:$0xff]   ;;  %v1378_v53 = vld [vmem:[#allocation5 + $0x60] ss:$20 sps:$4 sm:$0xff]   ;;  %v1380_v55 = vld [vmem:[#allocation5 + $0x88] ss:$20 sps:$4 sm:$0xff]  }
  0x69   : > { %1148 = vmatpush3.bf16.msra.mxu0 %v1335_v18 }
  0x6a   : > { %1188 = vmatpush3.bf16.msra.mxu1 %v1336_v19  ;;  %1149 = vmatprep.subr.bf16.mxu0 %v1337_v20 }
  0x6b   : > { %1189 = vmatprep.subr.bf16.mxu1 %v1338_v21 }
  0x6d   : > { %1150 = vmatpush3.bf16.msra.mxu0 %v1339_v22 }
  0x6e   : > { %1190 = vmatpush3.bf16.msra.mxu1 %v1340_v23  ;;  %1151 = vmatprep.subr.bf16.mxu0 %v1341_v24 }
  0x6f   : > { %1191 = vmatprep.subr.bf16.mxu1 %v1342_v25 }
  0x71   : > { %1152 = vmatpush3.bf16.msra.mxu0 %v1343_v26 }
  0x72   : > { %1192 = vmatpush3.bf16.msra.mxu1 %v1344_v27  ;;  %1153 = vmatprep.subr.bf16.mxu0 %v1345_v28 }
  0x73   : > { %1193 = vmatprep.subr.bf16.mxu1 %v1346_v29 }
  0x75   : > { %1154 = vmatpush3.bf16.msra.mxu0 %v1347_v30 }
  0x76   : > { %1194 = vmatpush3.bf16.msra.mxu1 %v1348_v31  ;;  %1227 = vmatprep.subr.bf16.mxu0 %v1355_v36 }
  0x77   : > { %1243 = vmatprep.subr.bf16.mxu1 %v1355_v36 }
  0x78   : > { %636 = vmatmul.mubr.bf16.vlgmr.msra.gmra.mrb[0].mxu0 %v1349_v32 }
  0x79   : > { %701 = vmatmul.mubr.bf16.vlgmr.msra.gmra.mrb[0].mxu1 %v1352_v34  ;;  %1228 = vmatpush3.bf16.msra.mxu0 %v1355_v36 }
  0x7a   : > { %1247 = vmatpush3.bf16.msra.mxu1 %v1355_v36  ;;  %643 = vmatprep.mubr.bf16.mxu0 %v1356_v37 }
  0x7b   : > { %708 = vmatprep.mubr.bf16.mxu1 %v1358_v38  ;;  %1229 = vmatprep.subr.bf16.mxu0 %v1362_v39 }
  0x7c   : > { %1244 = vmatprep.subr.bf16.mxu1 %v1362_v39 }
  0x7d   : > { %1230 = vmatpush3.bf16.msra.mxu0 %v1362_v39 }
  0x7e   : > { %1248 = vmatpush3.bf16.msra.mxu1 %v1362_v39  ;;  %1231 = vmatprep.subr.bf16.mxu0 %v1369_v44 }
  0x7f   : > { %1245 = vmatprep.subr.bf16.mxu1 %v1369_v44 }
  0x80   : > { %644 = vmatmul.mubr.bf16.gmra.mrb[4].mxu0 %v1360_v40 }
  0x81   : > { %709 = vmatmul.mubr.bf16.gmra.mrb[4].mxu1 %v1361_v41  ;;  %651 = vmatprep.mubr.bf16.mxu0 %v1363_v42 }
  0x82   : > { %716 = vmatprep.mubr.bf16.mxu1 %v1365_v43  ;;  %1232 = vmatpush3.bf16.msra.mxu0 %v1369_v44 }
  0x83   : > { %1249 = vmatpush3.bf16.msra.mxu1 %v1369_v44  ;;  %1233 = vmatprep.subr.bf16.mxu0 %v1376_v45 }
  0x84   : > { %1246 = vmatprep.subr.bf16.mxu1 %v1376_v45 }
  0x86   : > { %1234 = vmatpush3.bf16.msra.mxu0 %v1376_v45 }
  0x87   : > { %1250 = vmatpush3.bf16.msra.mxu1 %v1376_v45 }
  0x88   : > { %652 = vmatmul.mubr.bf16.gmra.mrb[8].mxu0 %v1367_v46 }
  0x89   : > { %717 = vmatmul.mubr.bf16.gmra.mrb[8].mxu1 %v1368_v47  ;;  %659 = vmatprep.mubr.bf16.mxu0 %v1370_v48 }
  0x8a   : > { %724 = vmatprep.mubr.bf16.mxu1 %v1372_v49 }
  0x90   : > { %660 = vmatmul.mubr.bf16.gmra.mrb[12].mxu0 %v1374_v50 }
  0x91   : > { %725 = vmatmul.mubr.bf16.gmra.mrb[12].mxu1 %v1375_v51  ;;  %1235 = vmatprep.mubr.msk.bf16.mxu0 %vm590_vm0, %v1377_v52 }
  0x92   : > { %1239 = vmatprep.mubr.msk.bf16.mxu1 %vm590_vm0, %v1378_v53 }
  0x98   : > { %1236 = vmatmul.mubr.msk.bf16.vlgmr.msra.gmra.mrb[16].mxu0 %vm590_vm0, %v1379_v54 }
  0x99   : > { %1240 = vmatmul.mubr.msk.bf16.vlgmr.msra.gmra.mrb[16].mxu1 %vm590_vm0, %v1380_v55 }
 0x14b   : > { %v1155_v56 = vpop.f32.mrb[0].mxu0 }
 0x14c   : > { %v1195_v57 = vpop.f32.mrb[0].mxu1  ;;  %v1156_v58 = vpop.f32.mrb[1].mxu0 }
 0x14d   : > { %v1157_v59 = vadd.f32 %v1156_v58, %v1155_v56  ;;  %v1196_v60 = vpop.f32.mrb[1].mxu1  ;;  %v1158_v61 = vpop.f32.mrb[2].mxu0 }
 0x14e   : > { %v1197_v62 = vadd.f32 %v1196_v60, %v1195_v57  ;;  %v1198_v63 = vpop.f32.mrb[2].mxu1  ;;  %v1159_v0 = vpop.f32.mrb[3].mxu0 }
 0x14f   : > { %v1160_v1 = vadd.f32 %v1159_v0, %v1158_v61  ;;  %v1199_v2 = vpop.f32.mrb[3].mxu1 }
 0x150   : > { %v1200_v3 = vadd.f32 %v1199_v2, %v1198_v63  ;;  %v703_v4 = vadd.f32 %v1197_v62, %v1157_v59 }
 0x152   : > { %v706_v5 = vadd.f32 %v1200_v3, %v1160_v1 }
 0x153   : > { %v1161_v6 = vpop.f32.mrb[4].mxu0 }
 0x154   : > { %v1201_v7 = vpop.f32.mrb[4].mxu1  ;;  %v1162_v8 = vpop.f32.mrb[5].mxu0 }
 0x155   : > { %v1163_v9 = vadd.f32 %v1162_v8, %v1161_v6  ;;  %v1202_v10 = vpop.f32.mrb[5].mxu1  ;;  %v1164_v11 = vpop.f32.mrb[6].mxu0 }
 0x156   : > { %v1203_v12 = vadd.f32 %v1202_v10, %v1201_v7  ;;  %v1204_v13 = vpop.f32.mrb[6].mxu1  ;;  %v1165_v14 = vpop.f32.mrb[7].mxu0 }
 0x157   : > { %v1166_v15 = vadd.f32 %v1165_v14, %v1164_v11  ;;  %v1205_v16 = vpop.f32.mrb[7].mxu1 }
 0x158   : > { %v1206_v17 = vadd.f32 %v1205_v16, %v1204_v13  ;;  %v711_v18 = vadd.f32 %v1203_v12, %v1163_v9 }
 0x15a   : > { %v714_v19 = vadd.f32 %v1206_v17, %v1166_v15 }
 0x15b   : > { %v1167_v20 = vpop.f32.mrb[8].mxu0 }
 0x15c   : > { %v1207_v21 = vpop.f32.mrb[8].mxu1  ;;  %v1168_v22 = vpop.f32.mrb[9].mxu0 }
 0x15d   : > { %v1169_v23 = vadd.f32 %v1168_v22, %v1167_v20  ;;  %v1208_v24 = vpop.f32.mrb[9].mxu1  ;;  %v1170_v25 = vpop.f32.mrb[10].mxu0 }
 0x15e   : > { %v1209_v26 = vadd.f32 %v1208_v24, %v1207_v21  ;;  %v1210_v27 = vpop.f32.mrb[10].mxu1  ;;  %v1171_v28 = vpop.f32.mrb[11].mxu0 }
 0x15f   : > { %v1172_v29 = vadd.f32 %v1171_v28, %v1170_v25  ;;  %v1211_v30 = vpop.f32.mrb[11].mxu1 }
 0x160   : > { %v1212_v31 = vadd.f32 %v1211_v30, %v1210_v27  ;;  %v719_v32 = vadd.f32 %v1209_v26, %v1169_v23 }
 0x162   : > { %v722_v33 = vadd.f32 %v1212_v31, %v1172_v29 }
 0x163   : > { %v1173_v34 = vpop.f32.mrb[12].mxu0 }
 0x164   : > { %v1213_v35 = vpop.f32.mrb[12].mxu1  ;;  %v1174_v36 = vpop.f32.mrb[13].mxu0 }
 0x165   : > { %v1175_v37 = vadd.f32 %v1174_v36, %v1173_v34  ;;  %v1214_v38 = vpop.f32.mrb[13].mxu1  ;;  %v1176_v39 = vpop.f32.mrb[14].mxu0 }
 0x166   : > { %v1215_v40 = vadd.f32 %v1214_v38, %v1213_v35  ;;  %v1216_v41 = vpop.f32.mrb[14].mxu1  ;;  %v1177_v42 = vpop.f32.mrb[15].mxu0 }
 0x167   : > { %v1178_v43 = vadd.f32 %v1177_v42, %v1176_v39  ;;  %v1217_v44 = vpop.f32.mrb[15].mxu1 }
 0x168   : > { %v1218_v45 = vadd.f32 %v1217_v44, %v1216_v41  ;;  %v727_v46 = vadd.f32 %v1215_v40, %v1175_v37 }
 0x16a   : > { %v730_v47 = vadd.f32 %v1218_v45, %v1178_v43 }
 0x16b   : > { %v1237_v48 = vpop.f32.mrb[16].mxu0 }
 0x16c   : > { %v776_v49 = vadd.f32 %v1237_v48, %v711_v18  ;;  %v1241_v50 = vpop.f32.mrb[16].mxu1  ;;  %v767_v51 = vpop.f32.mrb[17].mxu0 }
 0x16d   : > { %v1744_v52 = vadd.f32 %v1241_v50, %v727_v46  ;;  %v768_v53 = vadd.f32 %v767_v51, %v703_v4  ;;  %v783_v54 = vpop.f32.mrb[17].mxu1  ;;  %v1238_v55 = vpop.f32.mrb[18].mxu0 }
 0x16e   : > { %v784_v56 = vadd.f32 %v783_v54, %v719_v32  ;;  %v779_v57 = vadd.f32 %v1238_v55, %v714_v19  ;;  %v1242_v58 = vpop.f32.mrb[18].mxu1  ;;  %v770_v59 = vpop.f32.mrb[19].mxu0  ;;  %v804_v60 = vsel %vm590_vm0, %v776_v49, 0.0 }
 0x16f   : > { %v795_v61 = vadd.f32 %v1242_v58, %v730_v47  ;;  %v771_v62 = vadd.f32 %v770_v59, %v706_v5  ;;  %v786_v63 = vpop.f32.mrb[19].mxu1  ;;  %805 = vadd.xlane.f32.xlu1 %v804_v60  ;;  %v798_v0 = vsel %vm590_vm0, %v768_v53, 0.0  ;;  %v816_v7 = vsel %vm590_vm0, %v1744_v52, 0.0 }
 0x170   : > { %v787_v1 = vadd.f32 %v786_v63, %v722_v33  ;;  %799 = vadd.xlane.f32.xlu0 %v798_v0  ;;  %v807_v2 = vsel %vm590_vm0, %v779_v57, 0.0  ;;  %v810_v3 = vsel %vm590_vm0, %v784_v56, 0.0 }
 0x171   : > { %v801_v6 = vsel %vm590_vm0, %v771_v62, 0.0  ;;  %v819_v5 = vsel %vm590_vm0, %v795_v61, 0.0 }
 0x172   : > { %v813_v4 = vsel %vm590_vm0, %v787_v1, 0.0 }
 0x173   : > { %808 = vadd.xlane.f32.xlu1 %v807_v2 }
 0x174   : > { %811 = vadd.xlane.f32.xlu0 %v810_v3 }
 0x177   : > { %814 = vadd.xlane.f32.xlu1 %v813_v4 }
 0x178   : > { %802 = vadd.xlane.f32.xlu0 %v801_v6 }
 0x17b   : > { %820 = vadd.xlane.f32.xlu1 %v819_v5 }
 0x17c   : > { %817 = vadd.xlane.f32.xlu0 %v816_v7 }
 0x1fc   : > { %v806_v8 = vpop.xlane.xlu1 %805 }
 0x1fd   : > { %v825_v9 = vmul.f32 0.015625, %v806_v8  ;;  %v800_v10 = vpop.xlane.xlu0 %799 }
 0x1fe   : > { %v823_v11 = vmul.f32 0.015625, %v800_v10 }
 0x1ff   : > { %v1755_v12 = vsub.f32 %v776_v49, %v825_v9 }
 0x200   : > { %v1757_v13 = vsub.f32 %v768_v53, %v823_v11  ;;  %v809_v14 = vpop.xlane.xlu1 %808 }
 0x201   : > { %v826_v15 = vmul.f32 0.015625, %v809_v14  ;;  %v812_v16 = vpop.xlane.xlu0 %811  ;;  %v841_v17 = vmul.f32 %v1755_v12, %v1755_v12 }
 0x202   : > { %v827_v18 = vmul.f32 0.015625, %v812_v16  ;;  %v839_v21 = vmul.f32 %v1757_v13, %v1757_v13 }
 0x203   : > { %v1761_v19 = vsub.f32 %v779_v57, %v826_v15  ;;  %v853_v20 = vsel %vm590_vm0, %v841_v17, 0.0 }
 0x204   : > { %v1766_v22 = vsub.f32 %v784_v56, %v827_v18  ;;  %v815_v23 = vpop.xlane.xlu1 %814  ;;  %854 = vadd.xlane.f32.xlu0 %v853_v20  ;;  %v847_v29 = vsel %vm590_vm0, %v839_v21, 0.0 }
 0x205   : > { %v828_v24 = vmul.f32 0.015625, %v815_v23  ;;  %v803_v25 = vpop.xlane.xlu0 %802  ;;  %v842_v26 = vmul.f32 %v1761_v19, %v1761_v19 }
 0x206   : > { %v824_v27 = vmul.f32 0.015625, %v803_v25  ;;  %v843_v30 = vmul.f32 %v1766_v22, %v1766_v22 }
 0x207   : > { %v856_v28 = vsel %vm590_vm0, %v842_v26, 0.0  ;;  %v1774_v31 = vsub.f32 %v787_v1, %v828_v24 }
 0x208   : > { %v1776_v32 = vsub.f32 %v771_v62, %v824_v27  ;;  %857 = vadd.xlane.f32.xlu1 %v856_v28  ;;  %v821_v33 = vpop.xlane.xlu1 %820  ;;  %848 = vadd.xlane.f32.xlu0 %v847_v29  ;;  %v859_v38 = vsel %vm590_vm0, %v843_v30, 0.0 }
 0x209   : > { %v830_v34 = vmul.f32 0.015625, %v821_v33  ;;  %v818_v35 = vpop.xlane.xlu0 %817  ;;  %v844_v42 = vmul.f32 %v1774_v31, %v1774_v31 }
 0x20a   : > { %v829_v36 = vmul.f32 0.015625, %v818_v35  ;;  %v840_v37 = vmul.f32 %v1776_v32, %v1776_v32 }
 0x20b   : > { %v1781_v39 = vsub.f32 %v795_v61, %v830_v34  ;;  %v862_v44 = vsel %vm590_vm0, %v844_v42, 0.0 }
 0x20c   : > { %v1784_v40 = vsub.f32 %v1744_v52, %v829_v36  ;;  %860 = vadd.xlane.f32.xlu0 %v859_v38  ;;  %v850_v41 = vsel %vm590_vm0, %v840_v37, 0.0 }
 0x20d   : > { %851 = vadd.xlane.f32.xlu1 %v850_v41  ;;  %v846_v46 = vmul.f32 %v1781_v39, %v1781_v39 }
 0x20e   : > { %v845_v43 = vmul.f32 %v1784_v40, %v1784_v40 }
 0x20f   : > { %v868_v47 = vsel %vm590_vm0, %v846_v46, 0.0 }
 0x210   : > { %v865_v45 = vsel %vm590_vm0, %v845_v43, 0.0 }
 0x211   : > { %863 = vadd.xlane.f32.xlu1 %v862_v44  ;;  %866 = vadd.xlane.f32.xlu0 %v865_v45 }
 0x215   : > { %869 = vadd.xlane.f32.xlu1 %v868_v47 }
 0x291   : > { %v855_v48 = vpop.xlane.xlu0 %854 }
 0x292   : > { %v873_v49 = vmul.f32 0.015625, %v855_v48 }
 0x294   : > { %v881_v50 = vadd.f32 1e-05, %v873_v49 }
 0x295   : > { %v858_v51 = vpop.xlane.xlu1 %857  ;;  %v849_v52 = vpop.xlane.xlu0 %848 }
 0x296   : > { %1381 = vrsqrt.f32 %v881_v50  ;;  %v874_v53 = vmul.f32 0.015625, %v858_v51  ;;  %v871_v54 = vmul.f32 0.015625, %v849_v52 }
 0x298   : > { %v882_v55 = vadd.f32 1e-05, %v874_v53  ;;  %v879_v56 = vadd.f32 1e-05, %v871_v54 }
 0x299   : > { %v861_v57 = vpop.xlane.xlu0 %860 }
 0x29a   : > { %1383 = vrsqrt.f32 %v882_v55  ;;  %v875_v58 = vmul.f32 0.015625, %v861_v57  ;;  %v852_v59 = vpop.xlane.xlu1 %851 }
 0x29b   : > { %1385 = vrsqrt.f32 %v879_v56  ;;  %v872_v60 = vmul.f32 0.015625, %v852_v59 }
 0x29c   : > { %v883_v61 = vadd.f32 1e-05, %v875_v58 }
 0x29d   : > { %v880_v62 = vadd.f32 1e-05, %v872_v60 }
 0x29e   : > { %1387 = vrsqrt.f32 %v883_v61  ;;  %v864_v63 = vpop.xlane.xlu1 %863  ;;  %v867_v0 = vpop.xlane.xlu0 %866 }
 0x29f   : > { %1389 = vrsqrt.f32 %v880_v62  ;;  %v876_v1 = vmul.f32 0.015625, %v864_v63  ;;  %v877_v2 = vmul.f32 0.015625, %v867_v0 }
 0x2a0   : > { %v1382_v3 = vpop.eup %1381 }
 0x2a1   : > { %v897_v4 = vmul.f32 %v1382_v3, %v1755_v12  ;;  %v884_v6 = vadd.f32 1e-05, %v876_v1  ;;  %v885_v5 = vadd.f32 1e-05, %v877_v2 }
 0x2a2   : > { %v870_v7 = vpop.xlane.xlu1 %869 }
 0x2a3   : > { %v905_v8 = vmax.f32 %v897_v4, 0.0  ;;  %1391 = vrsqrt.f32 %v884_v6  ;;  %v878_v9 = vmul.f32 0.015625, %v870_v7 }
 0x2a4   : > { %v1384_v10 = vpop.eup %1383  ;;  %1393 = vrsqrt.f32 %v885_v5 }
 0x2a5   : > { %v1386_v11 = vpop.eup %1385  ;;  %v1132_v14 = vpack.c.bf16 %v905_v8, %v905_v8  ;;  %v898_v15 = vmul.f32 %v1384_v10, %v1761_v19  ;;  %v886_v16 = vadd.f32 1e-05, %v878_v9 }
 0x2a6   : > { %v895_v17 = vmul.f32 %v1386_v11, %v1757_v13 }
 0x2a7   : > { %946 = vst.msk [vmem:[%s1800_s17 + $0x8] sm:$0xf] %vm943_vm1, %v1132_v14  ;;  %v906_v12 = vmax.f32 %v898_v15, 0.0  ;;  %1395 = vrsqrt.f32 %v886_v16 }
 0x2a8   : > { %v1388_v18 = vpop.eup %1387  ;;  %v903_v20 = vmax.f32 %v895_v17, 0.0 }
 0x2a9   : > { %v1390_v21 = vpop.eup %1389  ;;  %v1133_v23 = vpack.c.bf16 %v906_v12, %v906_v12  ;;  %v899_v19 = vmul.f32 %v1388_v18, %v1766_v22 }
 0x2aa   : > { %v1130_v24 = vpack.c.bf16 %v903_v20, %v903_v20  ;;  %v896_v13 = vmul.f32 %v1390_v21, %v1776_v32 }
 0x2ab   : > { %947 = vst.msk [vmem:[%s1800_s17 + $0xc] sm:$0xf] %vm943_vm1, %v1133_v23  ;;  %v907_v25 = vmax.f32 %v899_v19, 0.0 }
 0x2ac   : > { %944 = vst.msk [vmem:[%s1800_s17] sm:$0xf] %vm943_vm1, %v1130_v24  ;;  %v904_v26 = vmax.f32 %v896_v13, 0.0 }
 0x2ad   : > { %v1392_v27 = vpop.eup %1391  ;;  %v1134_v28 = vpack.c.bf16 %v907_v25, %v907_v25 }
 0x2ae   : > { %v1394_v29 = vpop.eup %1393  ;;  %v1131_v30 = vpack.c.bf16 %v904_v26, %v904_v26  ;;  %v900_v33 = vmul.f32 %v1392_v27, %v1774_v31 }
 0x2af   : > { %948 = vst.msk [vmem:[%s1800_s17 + $0x10] sm:$0xf] %vm943_vm1, %v1134_v28  ;;  %v901_v22 = vmul.f32 %v1394_v29, %v1784_v40 }
 0x2b0   : > { %945 = vst.msk [vmem:[%s1800_s17 + $0x4] sm:$0xf] %vm943_vm1, %v1131_v30  ;;  %v908_v32 = vmax.f32 %v900_v33, 0.0 }
 0x2b1   : > { %v1396_v34 = vpop.eup %1395  ;;  %v909_v35 = vmax.f32 %v901_v22, 0.0 }
 0x2b2   : > { %v1135_v36 = vpack.c.bf16 %v908_v32, %v908_v32  ;;  %v902_v37 = vmul.f32 %v1396_v34, %v1781_v39 }
 0x2b3   : > { %v1136_v38 = vpack.c.bf16 %v909_v35, %v909_v35 }
 0x2b4   : > { %949 = vst.msk [vmem:[%s1800_s17 + $0x14] sm:$0xf] %vm943_vm1, %v1135_v36  ;;  %v910_v31 = vmax.f32 %v902_v37, 0.0 }
 0x2b5   : > { %950 = vst.msk [vmem:[%s1800_s17 + $0x18] sm:$0xf] %vm943_vm1, %v1136_v38 }
 0x2b6   : > { %v1137_v40 = vpack.c.bf16 %v910_v31, %v910_v31 }
 0x2b8   : > { %951 = vst.msk [vmem:[%s1800_s17 + $0x1c] sm:$0xf] %vm943_vm1, %v1137_v40 }
 0x2b9   : > { %1468 = shalt.err (!%p1465_p7)
}
 0x2ba   : > { %s1469_s24 = scalar_lea.hbm %s1826_s4, 512  ;;  %s1473_s26 = scalar_lea.hbm %s1876_s2, 1024 }
 0x2bb   : > { %p1470_p9 = scmp.ne.s32.totalorder %s1826_s4, %s1469_s24  ;;  %p1474_p5 = scmp.lt.u32.totalorder %s1826_s4, %s1876_s2 }
 0x2bc   : > { %p1475_p11 = scmp.lt.u32.totalorder %s1473_s26, %s1469_s24  ;;  %p1477_p4 = scmp.lt.u32.totalorder %s1469_s24, %s1826_s4 }
 0x2bd   : > { %p1471_p2 = pnand %p1470_p9, %p1642_p12 }
 0x2be   : > { %p1476_p1 = por %p1475_p11, %p1474_p5 }
 0x2bf   : > { %p1472_p0 = pneg %p1471_p2 }
 0x2c0   : > { %p1478_p6 = por %p1477_p4, %p1476_p1 }
 0x2c2   : > { %p1479_p8 = pnand %p1478_p6, %p1472_p0 }
 0x2c4   : > { %1482 = shalt.err (!%p1479_p8)
}
 0x2c5   : > { %s1534_s3 = smov 64   ;;  %s1535_s15 = smov 4  }
 0x2c6   : > { %1260 = dma.vmem_to_hbm [thread:$0]  (%p1642_p12), %s1828_s19, 512, %s1826_s4, %s953_s13, %s1534_s3, %s1534_s3, %s1535_s15  }
 0x2c7 PF: > { %s981_s17 = sand.u32 1, %s1513_s9   ;;  %p1891_p10 = scmp.ne.s32.totalorder %s1881_s16, 0 }
 0x2c8   : > { %p1892_p13 = scmp.ge.s32.totalorder %s1525_s12, 2  ;;  %s982_s27 = scalar_lea.sflag [#allocation4], %s981_s17 }
 0x2ca   : > { %p1271_p3 = pnand %p1892_p13, %p1891_p10 }
 0x2cc   : > { %1508 = dma.done.wait (!%p1271_p3), %s982_s27, 512  }
 0x2cd   : > { %1510 = vsyncadd (!%p1271_p3), %s982_s27, 4294966784  ;;  %p16_p7 = scmp.ge.s32.totalorder %s1607_s21, 4   ;;  %s1893_s9 = smov %s1517_s10 }
 0x2ce   : > { %s1894_s10 = smov %s1521_s11  ;;  %s1895_s11 = smov %s1638_s8 }
 0x2cf   : > { %s1896_s12 = smov %s1607_s21  ;;  %18 = sbr.rel (!%p16_p7) target bundleno = 6 (0x6), region = 77 }
 0x2d6   :  { %987 = vsyncpa [#allocation3], 1 }
 0x2d7   :  { %989 = vsyncpa [#allocation3 + $0x1], 1 }
 0x2d8   :  { %990 = vsyncpa [#allocation6], 1 }
 0x2d9   :  { %991 = vsyncpa [#allocation4], 1 }
 0x2da   :  { %993 = vsyncpa [#allocation4 + $0x1], 1 }

// kernel: generator_forward.108
= control target key start
LH: loop header
LB: loop body
LE: loop exit
PB: predicated region body
PF: predicated region fallthrough
CT: control target
= control target key end

     0   :  { %8 = vsyncpa [#allocation3], 0  ;;  %s2104_s0 = inlined_call_operand.hbm [shape: bf16[2,576,64], index: 0, kind: input, shape index: {}]   ;;  %s2105_s1 = inlined_call_operand.hbm [shape: bf16[64,576], index: 1, kind: input, shape index: {}]   ;;  %s2106_s2 = inlined_call_operand.hbm [shape: bf16[2,64,64], index: 2, kind: input, shape index: {}]   ;;  %s2107_s3 = inlined_call_operand.hbm [shape: bf16[2,64,64], index: 3, kind: output, shape index: {}]  }
   0x1   :  { %10 = vsyncpa [#allocation3 + $0x1], 0 }
   0x2   :  { %11 = vsyncpa [#allocation6], 0 }
   0x3   :  { %12 = vsyncpa [#allocation4], 0 }
   0x4   :  { %14 = vsyncpa [#allocation4 + $0x1], 0  ;;  %s1720_s12 = smov 0   ;;  %s1722_s13 = smov 0  }
   0x5   :  { %s1724_s14 = smov 0   ;;  %s1726_s15 = smov 0  }
   0x6 LB: > { %s1741_s16 = sadd.s32 1, %s1688_s15   ;;  %s27_s17 = sadd.s32 1, %s1684_s14  ;;  %s1688_s15 = sphi %s1726_s15, %s2128_s15   ;;  %s1684_s14 = sphi %s1724_s14, %s2127_s14   ;;  %s1680_s13 = sphi %s1722_s13, %s2126_s13   ;;  %s1676_s12 = sphi %s1720_s12, %s2125_s12  }
   0x7   : > { %s24_s18 = ssub.s32 %s1688_s15, %s1741_s16  ;;  %p34_p0 = scmp.ne.s32.totalorder %s1684_s14, %s1680_s13 }
   0x8   : > { %p25_p1 = scmp.eq.s32.totalorder %s24_s18, 0  ;;  %p35_p2 = scmp.eq.s32.totalorder %s1688_s15, 0 }
   0x9   : > { %p1404_p4 = scmp.lt.s32.totalorder %s1688_s15, 2  ;;  %s150_s20 = sand.u32 1, %s1688_s15  }
   0xa   : > { %s1752_s19 = scalar_select %p25_p1, %s1684_s14, %s27_s17  }
   0xb   : > { %p36_p5 = por %p35_p2, %p34_p0  ;;  %s152_s21 = sand.u32 1, %s1684_s14  }
   0xc   : > { %s1375_s22 = smul.u32 288, %s152_s21  ;;  %s1773_s30 = scalar_lea.sflag [#allocation3], %s150_s20 }
   0xd   : > { %p1761_p6 = pnand %p1404_p4, %p36_p5  ;;  %s1376_s24 = smul.u32 4608, %s1688_s15 }
   0xe   : > { %s154_s28 = scalar_lea.vmem [#allocation2], %s1375_s22  ;;  %s1531_s7 = scalar_lea.hbm %s2104_s0, 9216 }
   0xf   : > { %s1769_s27 = scalar_lea.hbm %s2104_s0, %s1376_s24  ;;  %s161_s29 = sshll.u32 %s154_s28, 4  ;;  %s1771_s29 = int_to_ptr.vmem [resolvable:$true] %s161_s29 }
  0x10   : > { %s1526_s4 = scalar_lea.hbm %s1769_s27, 4608  ;;  %p1528_p8 = pneg %p1761_p6 }
  0x11   : > { %p1527_p7 = scmp.ne.s32.totalorder %s1769_s27, %s1526_s4  ;;  %p1532_p11 = scmp.lt.u32.totalorder %s1769_s27, %s2104_s0 }
  0x12   : > { %p1533_p12 = scmp.lt.u32.totalorder %s1531_s7, %s1526_s4  ;;  %p1535_p1 = scmp.lt.u32.totalorder %s1526_s4, %s1769_s27 }
  0x13   : > { %p1529_p9 = pnand %p1528_p8, %p1527_p7 }
  0x14   : > { %p1534_p13 = por %p1533_p12, %p1532_p11 }
  0x15   : > { %p1530_p10 = pneg %p1529_p9 }
  0x16   : > { %p1536_p2 = por %p1535_p1, %p1534_p13 }
  0x18   : > { %p1537_p4 = pnand %p1536_p2, %p1530_p10 }
  0x1a   : > { %1540 = shalt.err (!%p1537_p4)
}
  0x1b   : > { %s1541_s10 = scalar_lea.vmem %s1771_s29, 4608  ;;  %s1690_s11 = smov [#allocation2]  }
  0x1c   : > { %p1542_p5 = scmp.ne.s32.totalorder %s1771_s29, %s1541_s10  ;;  %s1546_s17 = sshll.u32 %s1690_s11, 4  ;;  %s1547_s17 = int_to_ptr.vmem [resolvable:$false] %s1546_s17 }
  0x1d   : > { %s1548_s18 = scalar_lea.vmem %s1547_s17, 9216  ;;  %p1549_p3 = scmp.lt.s32.totalorder %s1771_s29, %s1547_s17 }
  0x1e   : > { %p1544_p7 = pnand %p1542_p5, %p1528_p8  ;;  %p1550_p11 = scmp.lt.s32.totalorder %s1548_s18, %s1541_s10 }
  0x20   : > { %p1545_p9 = pneg %p1544_p7  ;;  %p1551_p12 = por %p1550_p11, %p1549_p3 }
  0x22   : > { %p1552_p13 = pnand %p1551_p12, %p1545_p9 }
  0x24   : > { %1555 = shalt.err (!%p1552_p13)
}
  0x25   : > { %s1691_s20 = smov 64   ;;  %s1692_s22 = smov 4  }
  0x26   : > { %1395 = dma.hbm_to_vmem [thread:$0]  (!%p1761_p6), %s1769_s27, 4608, %s1771_s29, %s1773_s30, %s1691_s20, %s1691_s20, %s1692_s22  }
  0x27   : > { %s1154_s24 = sshll.u32 %s152_s21, 5  ;;  %s1807_s25 = sadd.s32 4294967295, %s1688_s15  }
  0x28   : > { %s1149_s26 = sadd.s32 4294967294, %s1688_s15   ;;  %p40_p3 = scmp.ne.s32.totalorder %s1680_s13, %s1676_s12 }
  0x29   : > { %p2108_p10 = scmp.eq.s32.totalorder %s1807_s25, 0  ;;  %p111_p1 = scmp.eq.s32.totalorder %s1807_s25, 1 }
  0x2a   : > { %p117_p2 = scmp.eq.s32.totalorder %s1149_s26, 1  ;;  %p1150_p5 = scmp.ge.s32.totalorder %s1688_s15, 1 }
  0x2b   : > { %p1816_p4 = por %p2108_p10, %p40_p3  ;;  %p1824_p7 = por %p111_p1, %p34_p0 }
  0x2c   : > { %p1828_p9 = por %p117_p2, %p40_p3  ;;  %p124_p11 = scmp.lt.s32.totalorder %s1688_s15, 3 }
  0x2d   : > { %s2113_s28 = scalar_select %p1816_p4, 1, 0 }
  0x2e   : > { %s2114_s21 = scalar_select %p1824_p7, 1, 0 }
  0x2f   : > { %s2115_s27 = scalar_select %p1828_p9, 1, 0 }
  0x30   : > { %p1833_p12 = pnand %p1150_p5, %p124_p11  ;;  %s1693_s4 = smov [#allocation5]  }
  0x31   : > { %s136_s5 = sshll.u32 %s1693_s4, 4  ;;  %s1234_s6 = sshll.u32 %s1688_s15, 9  ;;  %s1837_s5 = int_to_ptr.vmem [resolvable:$true] %s136_s5 }
  0x32   : > { %s2116_s29 = scalar_select %p1833_p12, 1, 0 }
  0x33   : > { %p1388_p0 = pneg %p1833_p12  ;;  %s1845_s9 = scalar_lea.hbm %s2106_s2, %s1234_s6 }
  0x34   : > { %s175_s10 = scalar_lea.vmem [#allocation7], %s1154_s24  ;;  %s1556_s18 = scalar_lea.hbm %s1845_s9, 512 }
  0x35   : > { %s182_s11 = sshll.u32 %s175_s10, 4  ;;  %p1849_p13 = pnand %p1388_p0, %p2108_p10  ;;  %s1853_s11 = int_to_ptr.vmem [resolvable:$true] %s182_s11 }
  0x36   : > { %p1557_p3 = scmp.ne.s32.totalorder %s1845_s9, %s1556_s18  ;;  %s1561_s6 = scalar_lea.hbm %s2106_s2, 1024 }
  0x37   : > { %p1562_p5 = scmp.lt.u32.totalorder %s1845_s9, %s2106_s2  ;;  %p1563_p11 = scmp.lt.u32.totalorder %s1561_s6, %s1556_s18 }
  0x38   : > { %p1559_p1 = pnand %p1557_p3, %p1528_p8  ;;  %p1565_p10 = scmp.lt.u32.totalorder %s1556_s18, %s1845_s9 }
  0x39   : > { %p1564_p0 = por %p1563_p11, %p1562_p5 }
  0x3a   : > { %p1560_p2 = pneg %p1559_p1 }
  0x3b   : > { %p1566_p9 = por %p1565_p10, %p1564_p0 }
  0x3d   : > { %p1567_p7 = pnand %p1566_p9, %p1560_p2 }
  0x3f   : > { %1570 = shalt.err (!%p1567_p7)
}
  0x40   : > { %s1571_s8 = scalar_lea.vmem %s1853_s11, 512  ;;  %s1694_s10 = smov [#allocation7]  }
  0x41   : > { %p1572_p3 = scmp.ne.s32.totalorder %s1853_s11, %s1571_s8  ;;  %s1576_s26 = sshll.u32 %s1694_s10, 4  ;;  %s1577_s26 = int_to_ptr.vmem [resolvable:$false] %s1576_s26 }
  0x42   : > { %s1578_s4 = scalar_lea.vmem %s1577_s26, 1024  ;;  %p1579_p12 = scmp.lt.s32.totalorder %s1853_s11, %s1577_s26 }
  0x43   : > { %p1574_p1 = pnand %p1572_p3, %p1528_p8  ;;  %p1580_p5 = scmp.lt.s32.totalorder %s1578_s4, %s1571_s8 }
  0x45   : > { %p1575_p4 = pneg %p1574_p1  ;;  %p1581_p11 = por %p1580_p5, %p1579_p12 }
  0x47   : > { %p1582_p10 = pnand %p1581_p11, %p1575_p4 }
  0x49   : > { %1585 = shalt.err (!%p1582_p10)
}
  0x4a   : > { %1398 = dma.hbm_to_vmem [thread:$0]  (!%p1761_p6), %s1845_s9, 512, %s1853_s11, %s1773_s30, %s1691_s20, %s1691_s20, %s1692_s22  }
  0x4b   : > { %s1586_s7 = scalar_lea.hbm %s2105_s1, 2560  ;;  %p1588_p4 = pneg %p1849_p13 }
  0x4c   : > { %p1587_p8 = scmp.ne.s32.totalorder %s2105_s1, %s1586_s7  ;;  %p1593_p12 = scmp.lt.u32.totalorder %s1586_s7, %s2105_s1 }
  0x4e   : > { %p1589_p7 = pnand %p1588_p4, %p1587_p8 }
  0x50   : > { %p1590_p9 = pneg %p1589_p7 }
  0x52   : > { %p1595_p2 = pnand %p1593_p12, %p1590_p9 }
  0x54   : > { %1598 = shalt.err (!%p1595_p2)
}
  0x55   : > { %s1599_s30 = scalar_lea.vmem %s1837_s5, 2560  ;;  %p1607_p1 = scmp.lt.s32.totalorder %s1837_s5, %s1837_s5 }
  0x56   : > { %p1600_p6 = scmp.ne.s32.totalorder %s1837_s5, %s1599_s30  ;;  %p1608_p5 = scmp.lt.s32.totalorder %s1599_s30, %s1599_s30 }
  0x58   : > { %p1602_p0 = pnand %p1600_p6, %p1588_p4  ;;  %p1609_p11 = por %p1608_p5, %p1607_p1 }
  0x5a   : > { %p1603_p3 = pneg %p1602_p0 }
  0x5c   : > { %p1610_p10 = pnand %p1609_p11, %p1603_p3 }
  0x5e   : > { %1613 = shalt.err (!%p1610_p10)
}
  0x5f   : > { %s1695_s20 = smov 320   ;;  %s1696_s22 = smov 20  }
  0x60   : > { %1391 = dma.hbm_to_vmem [thread:$0]  (!%p1849_p13), %s2105_s1, 2560, %s1837_s5, [#allocation6], %s1695_s20, %s1695_s20, %s1696_s22  }
  0x61   : > { %p2118_p8 = scmp.ne.s32.totalorder %s2116_s29, 0 }
  0x62   : > { %s196_s26 = sand.u32 (!%p2118_p8), 1, %s1807_s25   ;;  %s1907_s4 = sand.u32 (!%p2118_p8), 1, %s1680_s13  }
  0x63   : > { %194 = sbr.rel (%p2118_p8) target bundleno = 738 (0x2e2), region = 32  ;;  %s197_s6 = scalar_lea.sflag (!%p2118_p8), [#allocation3], %s196_s26 }
  0x64   : > { %s1377_s18 = smul.u32 (!%p2118_p8), 288, %s1907_s4  ;;  %p2119_p4 = scmp.ne.s32.totalorder (!%p2118_p8), %s2113_s28, 0 }
  0x66   : > { %s1910_s7 = scalar_lea.vmem (!%p2118_p8), [#allocation2], %s1377_s18 }
  0x6a   : > { %1659 = dma.done.wait (%p2119_p4), %s197_s6, 4608  }
  0x6b   : > { %1661 = vsyncadd (%p2119_p4), %s197_s6, 4294962688  ;;  %p2120_p13 = scmp.eq.s32.totalorder %s1807_s25, 0 }
  0x6d   : > { %1663 = dma.done.wait (%p2120_p13), [#allocation6], 2560   ;;  %p2121_p7 = pmov %p2120_p13 }
  0x6e   : > { %s1159_s29 = sshll.u32 %s1907_s4, 5 }
  0x6f   : > { %1665 = vsyncadd (%p2121_p7), [#allocation6], 4294964736  ;;  %s1923_s5 = scalar_lea.vmem [#allocation7], %s1159_s29 }
  0x70   : > { %1667 = dma.done.wait (%p2119_p4), %s197_s6, 512  }
  0x71   : > { %1669 = vsyncadd (%p2119_p4), %s197_s6, 4294966784  ;;  %v1446_v0 = vld [vmem:[%s1910_s7 + $0x40] sm:$0xff]   ;;  %v1450_v4 = vld [vmem:[%s1910_s7 + $0x48] sm:$0xff]   ;;  %vm654_vm0 = vcmask 523264   ;;  %vm1023_vm1 = vcmask 519168   ;;  %s2029_s28 = scalar_lea.vmem [#allocation8], %s1159_s29 }
  0x72   : > { %v1447_v1 = vld [vmem:[%s1910_s7 + $0xc0] sm:$0xff]   ;;  %1263 = vmatprep.subr.bf16.mxu0 %v1446_v0  ;;  %v1451_v5 = vld [vmem:[%s1910_s7 + $0xc8] sm:$0xff]   ;;  %v1454_v8 = vld [vmem:[%s1910_s7 + $0x50] sm:$0xff]   ;;  %s1243_s17 = sshll.u32 %s1807_s25, 9  ;;  %s1046_s24 = sshll.u32 %s2029_s28, 4  ;;  %s2058_s24 = int_to_ptr.vmem [resolvable:$true] %s1046_s24 }
  0x73   : > { %v1448_v2 = vld [vmem:[%s1910_s7] sm:$0xff]   ;;  %1303 = vmatprep.subr.bf16.mxu1 %v1447_v1  ;;  %v1452_v6 = vld [vmem:[%s1910_s7 + $0x8] sm:$0xff]   ;;  %v1455_v9 = vld [vmem:[%s1910_s7 + $0xd0] sm:$0xff]   ;;  %s2056_s8 = scalar_lea.hbm %s2107_s3, %s1243_s17  ;;  %s1033_s25 = scalar_lea.sflag [#allocation4], %s1907_s4 }
  0x74   : > { %v1449_v3 = vld [vmem:[%s1910_s7 + $0x80] sm:$0xff]   ;;  %1264 = vmatpush3.bf16.msra.mxu0 %v1448_v2  ;;  %v1453_v7 = vld [vmem:[%s1910_s7 + $0x88] sm:$0xff]   ;;  %v1456_v10 = vld [vmem:[%s1910_s7 + $0x10] sm:$0xff]   ;;  %s1614_s30 = scalar_lea.vmem %s2058_s24, 512  ;;  %p2122_p12 = scmp.ne.s32.totalorder %s2114_s21, 0 }
  0x75   : > { %1304 = vmatpush3.bf16.msra.mxu1 %v1449_v3  ;;  %1265 = vmatprep.subr.bf16.mxu0 %v1450_v4  ;;  %v1457_v11 = vld [vmem:[%s1910_s7 + $0x90] sm:$0xff]   ;;  %v1458_v12 = vld [vmem:[%s1910_s7 + $0x58] sm:$0xff]   ;;  %v1462_v16 = vld [vmem:[%s1910_s7 + $0x60] sm:$0xff]   ;;  %p1615_p9 = scmp.ne.s32.totalorder %s2058_s24, %s1614_s30  ;;  %s1697_s20 = smov [#allocation8]  }
  0x76   : > { %1305 = vmatprep.subr.bf16.mxu1 %v1451_v5  ;;  %v1459_v13 = vld [vmem:[%s1910_s7 + $0xd8] sm:$0xff]   ;;  %v1463_v17 = vld [vmem:[%s1910_s7 + $0xe0] sm:$0xff]   ;;  %v1466_v20 = vld [vmem:[%s1910_s7 + $0x68] sm:$0xff]   ;;  %s1618_s22 = sshll.u32 %s1697_s20, 4  ;;  %s1619_s22 = int_to_ptr.vmem [resolvable:$false] %s1618_s22 }
  0x77   : > { %v1460_v14 = vld [vmem:[%s1910_s7 + $0x18] sm:$0xff]   ;;  %v1464_v18 = vld [vmem:[%s1910_s7 + $0x20] sm:$0xff]   ;;  %v1467_v21 = vld [vmem:[%s1910_s7 + $0xe8] sm:$0xff]   ;;  %p1616_p2 = pnand %p1615_p9, %p2122_p12  ;;  %s1620_s9 = scalar_lea.vmem %s1619_s22, 1024 }
  0x78   : > { %1266 = vmatpush3.bf16.msra.mxu0 %v1452_v6  ;;  %v1461_v15 = vld [vmem:[%s1910_s7 + $0x98] sm:$0xff]   ;;  %v1465_v19 = vld [vmem:[%s1910_s7 + $0xa0] sm:$0xff]   ;;  %v1468_v22 = vld [vmem:[%s1910_s7 + $0x28] sm:$0xff]   ;;  %p1621_p0 = scmp.lt.s32.totalorder %s2058_s24, %s1619_s22  ;;  %p1622_p3 = scmp.lt.s32.totalorder %s1620_s9, %s1614_s30 }
  0x79   : > { %1306 = vmatpush3.bf16.msra.mxu1 %v1453_v7  ;;  %1267 = vmatprep.subr.bf16.mxu0 %v1454_v8  ;;  %v1469_v23 = vld [vmem:[%s1910_s7 + $0xa8] sm:$0xff]   ;;  %v1470_v24 = vld [vmem:[%s1910_s7 + $0x70] sm:$0xff]   ;;  %v1474_v28 = vld [vmem:[%s1910_s7 + $0x78] sm:$0xff]   ;;  %p1617_p6 = pneg %p1616_p2 }
  0x7a   : > { %1307 = vmatprep.subr.bf16.mxu1 %v1455_v9  ;;  %v1471_v25 = vld [vmem:[%s1910_s7 + $0xf0] sm:$0xff]   ;;  %v1475_v29 = vld [vmem:[%s1910_s7 + $0xf8] sm:$0xff]   ;;  %v1483_v35 = vld [vmem:[#allocation5 + $0xc] ss:$20 sps:$4 sm:$0xff]   ;;  %p1623_p1 = por %p1622_p3, %p1621_p0 }
  0x7b   : > { %v1472_v26 = vld [vmem:[%s1910_s7 + $0x30] sm:$0xff]   ;;  %v1476_v30 = vld [vmem:[%s1910_s7 + $0x38] sm:$0xff]   ;;  %v1484_v36 = vld [vmem:[%s1910_s7 + $0x100] sm:$0xff]   ;;  %764 = vmatprep.mubr.bf16.mxu1 %v1483_v35 }
  0x7c   : > { %1268 = vmatpush3.bf16.msra.mxu0 %v1456_v10  ;;  %v1473_v27 = vld [vmem:[%s1910_s7 + $0xb0] sm:$0xff]   ;;  %v1477_v31 = vld [vmem:[%s1910_s7 + $0xb8] sm:$0xff]   ;;  %v1485_v37 = vld [vmem:[#allocation5 + $0x2c] ss:$20 sps:$4 sm:$0xff]   ;;  %p1624_p5 = pnand %p1623_p1, %p1617_p6 }
  0x7d   : > { %1308 = vmatpush3.bf16.msra.mxu1 %v1457_v11  ;;  %1269 = vmatprep.subr.bf16.mxu0 %v1458_v12  ;;  %v1478_v32 = vld [vmem:[#allocation5] ss:$20 sps:$4 sm:$0xff]   ;;  %v1480_v33 = vld [vmem:[#allocation5 + $0x4] ss:$20 sps:$4 sm:$0xff]   ;;  %v1481_v34 = vld [vmem:[#allocation5 + $0x8] ss:$20 sps:$4 sm:$0xff]  }
  0x7e   : > { %1309 = vmatprep.subr.bf16.mxu1 %v1459_v13  ;;  %699 = vmatprep.mubr.bf16.mxu0 %v1480_v33  ;;  %v1487_v38 = vld [vmem:[#allocation5 + $0x34] ss:$20 sps:$4 sm:$0xff]   ;;  %v1490_v41 = vld [vmem:[#allocation5 + $0x30] ss:$20 sps:$4 sm:$0xff]   ;;  %v1505_v45 = vld [vmem:[%s1910_s7 + $0x118] sm:$0xff]  }
  0x7f   : > { %v1491_v39 = vld [vmem:[%s1910_s7 + $0x108] sm:$0xff]   ;;  %v1494_v43 = vld [vmem:[#allocation5 + $0x5c] ss:$20 sps:$4 sm:$0xff]   ;;  %v1501_v49 = vld [vmem:[#allocation5 + $0x84] ss:$20 sps:$4 sm:$0xff]  }
  0x80   : > { %1270 = vmatpush3.bf16.msra.mxu0 %v1460_v14  ;;  %v1489_v40 = vld [vmem:[#allocation5 + $0x28] ss:$20 sps:$4 sm:$0xff]   ;;  %v1498_v44 = vld [vmem:[%s1910_s7 + $0x110] sm:$0xff]   ;;  %v1497_v47 = vld [vmem:[#allocation5 + $0x58] ss:$20 sps:$4 sm:$0xff]  }
  0x81   : > { %1310 = vmatpush3.bf16.msra.mxu1 %v1461_v15  ;;  %1271 = vmatprep.subr.bf16.mxu0 %v1462_v16  ;;  %v1492_v42 = vld [vmem:[#allocation5 + $0x54] ss:$20 sps:$4 sm:$0xff]   ;;  %v1496_v46 = vld [vmem:[#allocation5 + $0x50] ss:$20 sps:$4 sm:$0xff]   ;;  %v1503_v50 = vld [vmem:[#allocation5 + $0x78] ss:$20 sps:$4 sm:$0xff]  }
  0x82   : > { %1311 = vmatprep.subr.bf16.mxu1 %v1463_v17  ;;  %v1499_v48 = vld [vmem:[#allocation5 + $0x7c] ss:$20 sps:$4 sm:$0xff]   ;;  %v1504_v51 = vld [vmem:[#allocation5 + $0x80] ss:$20 sps:$4 sm:$0xff]   ;;  %v1508_v54 = vld [vmem:[#allocation5 + $0x38] ss:$20 sps:$4 sm:$0xff]  }
  0x83   : > { %v1506_v52 = vld [vmem:[#allocation5 + $0x10] ss:$20 sps:$4 sm:$0xff]   ;;  %v1507_v53 = vld [vmem:[#allocation5 + $0x60] ss:$20 sps:$4 sm:$0xff]   ;;  %v1509_v55 = vld [vmem:[#allocation5 + $0x88] ss:$20 sps:$4 sm:$0xff]  }
  0x84   : > { %1272 = vmatpush3.bf16.msra.mxu0 %v1464_v18 }
  0x85   : > { %1312 = vmatpush3.bf16.msra.mxu1 %v1465_v19  ;;  %1273 = vmatprep.subr.bf16.mxu0 %v1466_v20 }
  0x86   : > { %1313 = vmatprep.subr.bf16.mxu1 %v1467_v21 }
  0x88   : > { %1274 = vmatpush3.bf16.msra.mxu0 %v1468_v22 }
  0x89   : > { %1314 = vmatpush3.bf16.msra.mxu1 %v1469_v23  ;;  %1275 = vmatprep.subr.bf16.mxu0 %v1470_v24 }
  0x8a   : > { %1315 = vmatprep.subr.bf16.mxu1 %v1471_v25 }
  0x8c   : > { %1276 = vmatpush3.bf16.msra.mxu0 %v1472_v26 }
  0x8d   : > { %1316 = vmatpush3.bf16.msra.mxu1 %v1473_v27  ;;  %1277 = vmatprep.subr.bf16.mxu0 %v1474_v28 }
  0x8e   : > { %1317 = vmatprep.subr.bf16.mxu1 %v1475_v29 }
  0x90   : > { %1278 = vmatpush3.bf16.msra.mxu0 %v1476_v30 }
  0x91   : > { %1318 = vmatpush3.bf16.msra.mxu1 %v1477_v31  ;;  %1351 = vmatprep.subr.bf16.mxu0 %v1484_v36 }
  0x92   : > { %1367 = vmatprep.subr.bf16.mxu1 %v1484_v36 }
  0x93   : > { %700 = vmatmul.mubr.bf16.vlgmr.msra.gmra.mrb[0].mxu0 %v1478_v32 }
  0x94   : > { %765 = vmatmul.mubr.bf16.vlgmr.msra.gmra.mrb[0].mxu1 %v1481_v34  ;;  %1352 = vmatpush3.bf16.msra.mxu0 %v1484_v36 }
  0x95   : > { %1371 = vmatpush3.bf16.msra.mxu1 %v1484_v36  ;;  %707 = vmatprep.mubr.bf16.mxu0 %v1485_v37 }
  0x96   : > { %772 = vmatprep.mubr.bf16.mxu1 %v1487_v38  ;;  %1353 = vmatprep.subr.bf16.mxu0 %v1491_v39 }
  0x97   : > { %1368 = vmatprep.subr.bf16.mxu1 %v1491_v39 }
  0x98   : > { %1354 = vmatpush3.bf16.msra.mxu0 %v1491_v39 }
  0x99   : > { %1372 = vmatpush3.bf16.msra.mxu1 %v1491_v39  ;;  %1355 = vmatprep.subr.bf16.mxu0 %v1498_v44 }
  0x9a   : > { %1369 = vmatprep.subr.bf16.mxu1 %v1498_v44 }
  0x9b   : > { %708 = vmatmul.mubr.bf16.gmra.mrb[4].mxu0 %v1489_v40 }
  0x9c   : > { %773 = vmatmul.mubr.bf16.gmra.mrb[4].mxu1 %v1490_v41  ;;  %715 = vmatprep.mubr.bf16.mxu0 %v1492_v42 }
  0x9d   : > { %780 = vmatprep.mubr.bf16.mxu1 %v1494_v43  ;;  %1356 = vmatpush3.bf16.msra.mxu0 %v1498_v44 }
  0x9e   : > { %1373 = vmatpush3.bf16.msra.mxu1 %v1498_v44  ;;  %1357 = vmatprep.subr.bf16.mxu0 %v1505_v45 }
  0x9f   : > { %1370 = vmatprep.subr.bf16.mxu1 %v1505_v45 }
  0xa1   : > { %1358 = vmatpush3.bf16.msra.mxu0 %v1505_v45 }
  0xa2   : > { %1374 = vmatpush3.bf16.msra.mxu1 %v1505_v45 }
  0xa3   : > { %716 = vmatmul.mubr.bf16.gmra.mrb[8].mxu0 %v1496_v46 }
  0xa4   : > { %781 = vmatmul.mubr.bf16.gmra.mrb[8].mxu1 %v1497_v47  ;;  %723 = vmatprep.mubr.bf16.mxu0 %v1499_v48 }
  0xa5   : > { %788 = vmatprep.mubr.bf16.mxu1 %v1501_v49 }
  0xab   : > { %724 = vmatmul.mubr.bf16.gmra.mrb[12].mxu0 %v1503_v50 }
  0xac   : > { %789 = vmatmul.mubr.bf16.gmra.mrb[12].mxu1 %v1504_v51  ;;  %1359 = vmatprep.mubr.msk.bf16.mxu0 %vm654_vm0, %v1506_v52 }
  0xad   : > { %1363 = vmatprep.mubr.msk.bf16.mxu1 %vm654_vm0, %v1507_v53 }
  0xb3   : > { %1360 = vmatmul.mubr.msk.bf16.vlgmr.msra.gmra.mrb[16].mxu0 %vm654_vm0, %v1508_v54 }
  0xb4   : > { %1364 = vmatmul.mubr.msk.bf16.vlgmr.msra.gmra.mrb[16].mxu1 %vm654_vm0, %v1509_v55 }
 0x166   : > { %v1279_v56 = vpop.f32.mrb[0].mxu0 }
 0x167   : > { %v1319_v57 = vpop.f32.mrb[0].mxu1  ;;  %v1280_v58 = vpop.f32.mrb[1].mxu0 }
 0x168   : > { %v1281_v59 = vadd.f32 %v1280_v58, %v1279_v56  ;;  %v1320_v60 = vpop.f32.mrb[1].mxu1  ;;  %v1282_v61 = vpop.f32.mrb[2].mxu0 }
 0x169   : > { %v1321_v62 = vadd.f32 %v1320_v60, %v1319_v57  ;;  %v1322_v63 = vpop.f32.mrb[2].mxu1  ;;  %v1283_v0 = vpop.f32.mrb[3].mxu0 }
 0x16a   : > { %v1284_v1 = vadd.f32 %v1283_v0, %v1282_v61  ;;  %v1323_v2 = vpop.f32.mrb[3].mxu1 }
 0x16b   : > { %v1324_v3 = vadd.f32 %v1323_v2, %v1322_v63  ;;  %v767_v4 = vadd.f32 %v1321_v62, %v1281_v59 }
 0x16d   : > { %v770_v5 = vadd.f32 %v1324_v3, %v1284_v1 }
 0x16e   : > { %v1285_v6 = vpop.f32.mrb[4].mxu0 }
 0x16f   : > { %v1325_v7 = vpop.f32.mrb[4].mxu1  ;;  %v1286_v8 = vpop.f32.mrb[5].mxu0 }
 0x170   : > { %v1287_v9 = vadd.f32 %v1286_v8, %v1285_v6  ;;  %v1326_v10 = vpop.f32.mrb[5].mxu1  ;;  %v1288_v11 = vpop.f32.mrb[6].mxu0 }
 0x171   : > { %v1327_v12 = vadd.f32 %v1326_v10, %v1325_v7  ;;  %v1328_v13 = vpop.f32.mrb[6].mxu1  ;;  %v1289_v14 = vpop.f32.mrb[7].mxu0 }
 0x172   : > { %v1290_v15 = vadd.f32 %v1289_v14, %v1288_v11  ;;  %v1329_v16 = vpop.f32.mrb[7].mxu1 }
 0x173   : > { %v1330_v17 = vadd.f32 %v1329_v16, %v1328_v13  ;;  %v775_v18 = vadd.f32 %v1327_v12, %v1287_v9 }
 0x175   : > { %v778_v19 = vadd.f32 %v1330_v17, %v1290_v15 }
 0x176   : > { %v1291_v20 = vpop.f32.mrb[8].mxu0 }
 0x177   : > { %v1331_v21 = vpop.f32.mrb[8].mxu1  ;;  %v1292_v22 = vpop.f32.mrb[9].mxu0 }
 0x178   : > { %v1293_v23 = vadd.f32 %v1292_v22, %v1291_v20  ;;  %v1332_v24 = vpop.f32.mrb[9].mxu1  ;;  %v1294_v25 = vpop.f32.mrb[10].mxu0 }
 0x179   : > { %v1333_v26 = vadd.f32 %v1332_v24, %v1331_v21  ;;  %v1334_v27 = vpop.f32.mrb[10].mxu1  ;;  %v1295_v28 = vpop.f32.mrb[11].mxu0 }
 0x17a   : > { %v1296_v29 = vadd.f32 %v1295_v28, %v1294_v25  ;;  %v1335_v30 = vpop.f32.mrb[11].mxu1 }
 0x17b   : > { %v1336_v31 = vadd.f32 %v1335_v30, %v1334_v27  ;;  %v783_v32 = vadd.f32 %v1333_v26, %v1293_v23 }
 0x17d   : > { %v786_v33 = vadd.f32 %v1336_v31, %v1296_v29 }
 0x17e   : > { %v1297_v34 = vpop.f32.mrb[12].mxu0 }
 0x17f   : > { %v1337_v35 = vpop.f32.mrb[12].mxu1  ;;  %v1298_v36 = vpop.f32.mrb[13].mxu0 }
 0x180   : > { %v1299_v37 = vadd.f32 %v1298_v36, %v1297_v34  ;;  %v1338_v38 = vpop.f32.mrb[13].mxu1  ;;  %v1300_v39 = vpop.f32.mrb[14].mxu0 }
 0x181   : > { %v1339_v40 = vadd.f32 %v1338_v38, %v1337_v35  ;;  %v1340_v41 = vpop.f32.mrb[14].mxu1  ;;  %v1301_v42 = vpop.f32.mrb[15].mxu0 }
 0x182   : > { %v1302_v43 = vadd.f32 %v1301_v42, %v1300_v39  ;;  %v1341_v44 = vpop.f32.mrb[15].mxu1 }
 0x183   : > { %v1342_v45 = vadd.f32 %v1341_v44, %v1340_v41  ;;  %v791_v46 = vadd.f32 %v1339_v40, %v1299_v37 }
 0x185   : > { %v794_v47 = vadd.f32 %v1342_v45, %v1302_v43 }
 0x186   : > { %v1361_v48 = vpop.f32.mrb[16].mxu0 }
 0x187   : > { %v840_v49 = vadd.f32 %v1361_v48, %v775_v18  ;;  %v1365_v50 = vpop.f32.mrb[16].mxu1  ;;  %v831_v51 = vpop.f32.mrb[17].mxu0 }
 0x188   : > { %v1969_v52 = vadd.f32 %v1365_v50, %v791_v46  ;;  %v832_v53 = vadd.f32 %v831_v51, %v767_v4  ;;  %v847_v54 = vpop.f32.mrb[17].mxu1  ;;  %v1362_v55 = vpop.f32.mrb[18].mxu0 }
 0x189   : > { %v848_v56 = vadd.f32 %v847_v54, %v783_v32  ;;  %v843_v57 = vadd.f32 %v1362_v55, %v778_v19  ;;  %v1366_v58 = vpop.f32.mrb[18].mxu1  ;;  %v834_v59 = vpop.f32.mrb[19].mxu0  ;;  %v868_v60 = vsel %vm654_vm0, %v840_v49, 0.0 }
 0x18a   : > { %v859_v61 = vadd.f32 %v1366_v58, %v794_v47  ;;  %v835_v62 = vadd.f32 %v834_v59, %v770_v5  ;;  %v850_v63 = vpop.f32.mrb[19].mxu1  ;;  %869 = vadd.xlane.f32.xlu1 %v868_v60  ;;  %v862_v0 = vsel %vm654_vm0, %v832_v53, 0.0  ;;  %v880_v7 = vsel %vm654_vm0, %v1969_v52, 0.0 }
 0x18b   : > { %v851_v1 = vadd.f32 %v850_v63, %v786_v33  ;;  %863 = vadd.xlane.f32.xlu0 %v862_v0  ;;  %v871_v2 = vsel %vm654_vm0, %v843_v57, 0.0  ;;  %v874_v3 = vsel %vm654_vm0, %v848_v56, 0.0 }
 0x18c   : > { %v865_v6 = vsel %vm654_vm0, %v835_v62, 0.0  ;;  %v883_v5 = vsel %vm654_vm0, %v859_v61, 0.0 }
 0x18d   : > { %v877_v4 = vsel %vm654_vm0, %v851_v1, 0.0 }
 0x18e   : > { %872 = vadd.xlane.f32.xlu1 %v871_v2 }
 0x18f   : > { %875 = vadd.xlane.f32.xlu0 %v874_v3 }
 0x192   : > { %878 = vadd.xlane.f32.xlu1 %v877_v4 }
 0x193   : > { %866 = vadd.xlane.f32.xlu0 %v865_v6 }
 0x196   : > { %884 = vadd.xlane.f32.xlu1 %v883_v5 }
 0x197   : > { %881 = vadd.xlane.f32.xlu0 %v880_v7  ;;  %v1245_v7 = vld [vmem:[%s1923_s5] sm:$0xff]  }
 0x217   : > { %v870_v8 = vpop.xlane.xlu1 %869 }
 0x218   : > { %v889_v9 = vmul.f32 0.015625, %v870_v8  ;;  %v864_v10 = vpop.xlane.xlu0 %863 }
 0x219   : > { %v887_v11 = vmul.f32 0.015625, %v864_v10 }
 0x21a   : > { %v1980_v12 = vsub.f32 %v840_v49, %v889_v9 }
 0x21b   : > { %v1982_v13 = vsub.f32 %v832_v53, %v887_v11  ;;  %v873_v14 = vpop.xlane.xlu1 %872 }
 0x21c   : > { %v890_v15 = vmul.f32 0.015625, %v873_v14  ;;  %v876_v16 = vpop.xlane.xlu0 %875  ;;  %v905_v17 = vmul.f32 %v1980_v12, %v1980_v12 }
 0x21d   : > { %v891_v18 = vmul.f32 0.015625, %v876_v16  ;;  %v903_v21 = vmul.f32 %v1982_v13, %v1982_v13 }
 0x21e   : > { %v1986_v19 = vsub.f32 %v843_v57, %v890_v15  ;;  %v917_v20 = vsel %vm654_vm0, %v905_v17, 0.0  ;;  %v1246_v17 = vunpack.c.l.bf16 %v1245_v7 }
 0x21f   : > { %v1991_v22 = vsub.f32 %v848_v56, %v891_v18  ;;  %v879_v23 = vpop.xlane.xlu1 %878  ;;  %918 = vadd.xlane.f32.xlu0 %v917_v20  ;;  %v911_v29 = vsel %vm654_vm0, %v903_v21, 0.0  ;;  %v1261_v18 = vld [vmem:[%s1923_s5 + $0x10] sm:$0xff]  }
 0x220   : > { %v892_v24 = vmul.f32 0.015625, %v879_v23  ;;  %v867_v25 = vpop.xlane.xlu0 %866  ;;  %v906_v26 = vmul.f32 %v1986_v19, %v1986_v19 }
 0x221   : > { %v888_v27 = vmul.f32 0.015625, %v867_v25  ;;  %v907_v30 = vmul.f32 %v1991_v22, %v1991_v22 }
 0x222   : > { %v920_v28 = vsel %vm654_vm0, %v906_v26, 0.0  ;;  %v1999_v31 = vsub.f32 %v851_v1, %v892_v24  ;;  %v1254_v26 = vunpack.c.l.bf16 %v1261_v18 }
 0x223   : > { %v2001_v32 = vsub.f32 %v835_v62, %v888_v27  ;;  %921 = vadd.xlane.f32.xlu1 %v920_v28  ;;  %v885_v33 = vpop.xlane.xlu1 %884  ;;  %912 = vadd.xlane.f32.xlu0 %v911_v29  ;;  %v923_v38 = vsel %vm654_vm0, %v907_v30, 0.0  ;;  %v1247_v29 = vunpack.c.h.bf16 %v1245_v7 }
 0x224   : > { %v894_v34 = vmul.f32 0.015625, %v885_v33  ;;  %v882_v35 = vpop.xlane.xlu0 %881  ;;  %v908_v42 = vmul.f32 %v1999_v31, %v1999_v31 }
 0x225   : > { %v893_v36 = vmul.f32 0.015625, %v882_v35  ;;  %v904_v37 = vmul.f32 %v2001_v32, %v2001_v32  ;;  %v1262_v35 = vld [vmem:[%s1923_s5 + $0x18] sm:$0xff]  }
 0x226   : > { %v2006_v39 = vsub.f32 %v859_v61, %v894_v34  ;;  %v926_v44 = vsel %vm654_vm0, %v908_v42, 0.0  ;;  %v1260_v61 = vld [vmem:[%s1923_s5 + $0x8] sm:$0xff]  }
 0x227   : > { %v2009_v40 = vsub.f32 %v1969_v52, %v893_v36  ;;  %924 = vadd.xlane.f32.xlu0 %v923_v38  ;;  %v914_v41 = vsel %vm654_vm0, %v904_v37, 0.0  ;;  %v1250_v2 = vunpack.c.l.bf16 %v1260_v61  ;;  %v1251_v14 = vunpack.c.h.bf16 %v1260_v61 }
 0x228   : > { %915 = vadd.xlane.f32.xlu1 %v914_v41  ;;  %v910_v46 = vmul.f32 %v2006_v39, %v2006_v39  ;;  %v1255_v38 = vunpack.c.h.bf16 %v1261_v18 }
 0x229   : > { %v909_v43 = vmul.f32 %v2009_v40, %v2009_v40 }
 0x22a   : > { %v932_v47 = vsel %vm654_vm0, %v910_v46, 0.0 }
 0x22b   : > { %v929_v45 = vsel %vm654_vm0, %v909_v43, 0.0  ;;  %v1258_v43 = vunpack.c.l.bf16 %v1262_v35 }
 0x22c   : > { %927 = vadd.xlane.f32.xlu1 %v926_v44  ;;  %930 = vadd.xlane.f32.xlu0 %v929_v45 }
 0x230   : > { %933 = vadd.xlane.f32.xlu1 %v932_v47  ;;  %v1259_v47 = vunpack.c.h.bf16 %v1262_v35 }
 0x2ac   : > { %v919_v48 = vpop.xlane.xlu0 %918 }
 0x2ad   : > { %v937_v49 = vmul.f32 0.015625, %v919_v48 }
 0x2af   : > { %v945_v50 = vadd.f32 1e-05, %v937_v49 }
 0x2b0   : > { %v922_v51 = vpop.xlane.xlu1 %921  ;;  %v913_v52 = vpop.xlane.xlu0 %912 }
 0x2b1   : > { %1510 = vrsqrt.f32 %v945_v50  ;;  %v938_v53 = vmul.f32 0.015625, %v922_v51  ;;  %v935_v54 = vmul.f32 0.015625, %v913_v52 }
 0x2b3   : > { %v946_v55 = vadd.f32 1e-05, %v938_v53  ;;  %v943_v56 = vadd.f32 1e-05, %v935_v54 }
 0x2b4   : > { %v925_v57 = vpop.xlane.xlu0 %924 }
 0x2b5   : > { %1512 = vrsqrt.f32 %v946_v55  ;;  %v939_v58 = vmul.f32 0.015625, %v925_v57  ;;  %v916_v59 = vpop.xlane.xlu1 %915 }
 0x2b6   : > { %1514 = vrsqrt.f32 %v943_v56  ;;  %v936_v60 = vmul.f32 0.015625, %v916_v59 }
 0x2b7   : > { %v947_v62 = vadd.f32 1e-05, %v939_v58 }
 0x2b8   : > { %v944_v63 = vadd.f32 1e-05, %v936_v60 }
 0x2b9   : > { %1516 = vrsqrt.f32 %v947_v62  ;;  %v928_v0 = vpop.xlane.xlu1 %927  ;;  %v931_v1 = vpop.xlane.xlu0 %930 }
 0x2ba   : > { %1518 = vrsqrt.f32 %v944_v63  ;;  %v940_v3 = vmul.f32 0.015625, %v928_v0  ;;  %v941_v4 = vmul.f32 0.015625, %v931_v1 }
 0x2bb   : > { %v1511_v6 = vpop.eup %1510 }
 0x2bc   : > { %v961_v5 = vmul.f32 %v1511_v6, %v1980_v12  ;;  %v948_v8 = vadd.f32 1e-05, %v940_v3  ;;  %v949_v9 = vadd.f32 1e-05, %v941_v4 }
 0x2bd   : > { %v934_v10 = vpop.xlane.xlu1 %933 }
 0x2be   : > { %v985_v11 = vadd.f32 %v1250_v2, %v961_v5  ;;  %1520 = vrsqrt.f32 %v948_v8  ;;  %v942_v15 = vmul.f32 0.015625, %v934_v10 }
 0x2bf   : > { %v1513_v16 = vpop.eup %1512  ;;  %1522 = vrsqrt.f32 %v949_v9 }
 0x2c0   : > { %v1515_v20 = vpop.eup %1514  ;;  %v1237_v21 = vpack.c.bf16 %v985_v11, %v985_v11  ;;  %v962_v23 = vmul.f32 %v1513_v16, %v1986_v19  ;;  %v950_v12 = vadd.f32 1e-05, %v942_v15 }
 0x2c1   : > { %v959_v24 = vmul.f32 %v1515_v20, %v1982_v13 }
 0x2c2   : > { %1026 = vst.msk [vmem:[%s2029_s28 + $0x8] sm:$0xf] %vm1023_vm1, %v1237_v21  ;;  %v986_v25 = vadd.f32 %v1251_v14, %v962_v23  ;;  %1524 = vrsqrt.f32 %v950_v12 }
 0x2c3   : > { %v1517_v27 = vpop.eup %1516  ;;  %v983_v28 = vadd.f32 %v1246_v17, %v959_v24 }
 0x2c4   : > { %v1519_v30 = vpop.eup %1518  ;;  %v1238_v19 = vpack.c.bf16 %v986_v25, %v986_v25  ;;  %v963_v33 = vmul.f32 %v1517_v27, %v1991_v22 }
 0x2c5   : > { %v1235_v13 = vpack.c.bf16 %v983_v28, %v983_v28  ;;  %v960_v34 = vmul.f32 %v1519_v30, %v2001_v32 }
 0x2c6   : > { %1027 = vst.msk [vmem:[%s2029_s28 + $0xc] sm:$0xf] %vm1023_vm1, %v1238_v19  ;;  %v987_v36 = vadd.f32 %v1254_v26, %v963_v33 }
 0x2c7   : > { %1024 = vst.msk [vmem:[%s2029_s28] sm:$0xf] %vm1023_vm1, %v1235_v13  ;;  %v984_v37 = vadd.f32 %v1247_v29, %v960_v34 }
 0x2c8   : > { %v1521_v41 = vpop.eup %1520  ;;  %v1239_v42 = vpack.c.bf16 %v987_v36, %v987_v36 }
 0x2c9   : > { %v1523_v44 = vpop.eup %1522  ;;  %v1236_v22 = vpack.c.bf16 %v984_v37, %v984_v37  ;;  %v964_v45 = vmul.f32 %v1521_v41, %v1999_v31 }
 0x2ca   : > { %1028 = vst.msk [vmem:[%s2029_s28 + $0x10] sm:$0xf] %vm1023_vm1, %v1239_v42  ;;  %v965_v32 = vmul.f32 %v1523_v44, %v2009_v40 }
 0x2cb   : > { %1025 = vst.msk [vmem:[%s2029_s28 + $0x4] sm:$0xf] %vm1023_vm1, %v1236_v22  ;;  %v988_v46 = vadd.f32 %v1255_v38, %v964_v45 }
 0x2cc   : > { %v1525_v48 = vpop.eup %1524  ;;  %v989_v49 = vadd.f32 %v1258_v43, %v965_v32 }
 0x2cd   : > { %v1240_v50 = vpack.c.bf16 %v988_v46, %v988_v46  ;;  %v966_v51 = vmul.f32 %v1525_v48, %v2006_v39 }
 0x2ce   : > { %v1241_v52 = vpack.c.bf16 %v989_v49, %v989_v49 }
 0x2cf   : > { %1029 = vst.msk [vmem:[%s2029_s28 + $0x14] sm:$0xf] %vm1023_vm1, %v1240_v50  ;;  %v990_v31 = vadd.f32 %v1259_v47, %v966_v51 }
 0x2d0   : > { %1030 = vst.msk [vmem:[%s2029_s28 + $0x18] sm:$0xf] %vm1023_vm1, %v1241_v52 }
 0x2d1   : > { %v1242_v40 = vpack.c.bf16 %v990_v31, %v990_v31 }
 0x2d3   : > { %1031 = vst.msk [vmem:[%s2029_s28 + $0x1c] sm:$0xf] %vm1023_vm1, %v1242_v40 }
 0x2d4   : > { %1627 = shalt.err (!%p1624_p5)
}
 0x2d5   : > { %s1628_s11 = scalar_lea.hbm %s2056_s8, 512  ;;  %s1632_s6 = scalar_lea.hbm %s2107_s3, 1024 }
 0x2d6   : > { %p1629_p11 = scmp.ne.s32.totalorder %s2056_s8, %s1628_s11  ;;  %p1633_p4 = scmp.lt.u32.totalorder %s2056_s8, %s2107_s3 }
 0x2d7   : > { %p1634_p13 = scmp.lt.u32.totalorder %s1632_s6, %s1628_s11  ;;  %p1636_p9 = scmp.lt.u32.totalorder %s1628_s11, %s2056_s8 }
 0x2d8   : > { %p1630_p10 = pnand %p1629_p11, %p2122_p12 }
 0x2d9   : > { %p1635_p7 = por %p1634_p13, %p1633_p4 }
 0x2da   : > { %p1631_p8 = pneg %p1630_p10 }
 0x2db   : > { %p1637_p2 = por %p1636_p9, %p1635_p7 }
 0x2dd   : > { %p1638_p6 = pnand %p1637_p2, %p1631_p8 }
 0x2df   : > { %1641 = shalt.err (!%p1638_p6)
}
 0x2e0   : > { %s1698_s5 = smov 64   ;;  %s1699_s28 = smov 4  }
 0x2e1   : > { %1386 = dma.vmem_to_hbm [thread:$0]  (%p2122_p12), %s2058_s24, 512, %s2056_s8, %s1033_s25, %s1698_s5, %s1698_s5, %s1699_s28  }
 0x2e2 PF: > { %s1061_s17 = sand.u32 1, %s1676_s12   ;;  %p2123_p0 = scmp.ne.s32.totalorder %s2115_s27, 0 }
 0x2e3   : > { %p2124_p3 = scmp.ge.s32.totalorder %s1688_s15, 2  ;;  %s1062_s10 = scalar_lea.sflag [#allocation4], %s1061_s17 }
 0x2e5   : > { %p1400_p1 = pnand %p2124_p3, %p2123_p0 }
 0x2e7   : > { %1671 = dma.done.wait (!%p1400_p1), %s1062_s10, 512  }
 0x2e8   : > { %1673 = vsyncadd (!%p1400_p1), %s1062_s10, 4294966784  ;;  %p17_p5 = scmp.ge.s32.totalorder %s1741_s16, 4   ;;  %s2125_s12 = smov %s1680_s13 }
 0x2e9   : > { %s2126_s13 = smov %s1684_s14  ;;  %s2127_s14 = smov %s1752_s19 }
 0x2ea   : > { %s2128_s15 = smov %s1741_s16  ;;  %19 = sbr.rel (!%p17_p5) target bundleno = 6 (0x6), region = 92 }
 0x2f1   :  { %1067 = vsyncpa [#allocation3], 1 }
 0x2f2   :  { %1069 = vsyncpa [#allocation3 + $0x1], 1 }
 0x2f3   :  { %1070 = vsyncpa [#allocation6], 1 }
 0x2f4   :  { %1071 = vsyncpa [#allocation4], 1 }
 0x2f5   :  { %1073 = vsyncpa [#allocation4 + $0x1], 1 }

// kernel: generator_forward.127
= control target key start
LH: loop header
LB: loop body
LE: loop exit
PB: predicated region body
PF: predicated region fallthrough
CT: control target
= control target key end

     0   :  { %7 = vsyncpa [#allocation3], 0  ;;  %s3322_s0 = inlined_call_operand.hbm [shape: bf16[2,4,256,64], index: 0, kind: input, shape index: {}]   ;;  %s3323_s1 = inlined_call_operand.hbm [shape: bf16[4,64,256], index: 1, kind: input, shape index: {}]   ;;  %s3324_s2 = inlined_call_operand.hbm [shape: bf16[2,4,64,64], index: 2, kind: output, shape index: {}]  }
   0x1   :  { %9 = vsyncpa [#allocation3 + $0x1], 0 }
   0x2   :  { %10 = vsyncpa [#allocation6], 0 }
   0x3   :  { %11 = vsyncpa [#allocation4], 0 }
   0x4   :  { %13 = vsyncpa [#allocation4 + $0x1], 0  ;;  %s2614_s9 = smov 0   ;;  %s2616_s10 = smov 0  }
   0x5   :  { %s2618_s11 = smov 0   ;;  %s2620_s12 = smov 0  }
   0x6 LB: > { %s2635_s13 = sadd.s32 4294967295, %s2588_s12   ;;  %s1811_s14 = sadd.s32 4294967294, %s2588_s12   ;;  %s2588_s12 = sphi %s2620_s12, %s3347_s12   ;;  %s2584_s11 = sphi %s2618_s11, %s3346_s11   ;;  %s2580_s10 = sphi %s2616_s10, %s3345_s10   ;;  %s2576_s9 = sphi %s2614_s9, %s3344_s9  }
   0x7   : > { %p39_p0 = scmp.ne.s32.totalorder %s2580_s10, %s2576_s9  ;;  %p3325_p1 = scmp.eq.s32.totalorder %s2635_s13, 0 }
   0x8   : > { %p90_p3 = scmp.eq.s32.totalorder %s1811_s14, 1  ;;  %p1812_p5 = scmp.ge.s32.totalorder %s2588_s12, 1 }
   0x9   : > { %p2644_p4 = por %p3325_p1, %p39_p0  ;;  %p97_p7 = scmp.lt.s32.totalorder %s2588_s12, 3 }
   0xa   : > { %p2649_p6 = por %p90_p3, %p39_p0  ;;  %s2590_s18 = smov [#allocation5]  }
   0xb   : > { %s3329_s15 = scalar_select %p2644_p4, 1, 0 }
   0xc   : > { %s3330_s16 = scalar_select %p2649_p6, 1, 0 }
   0xd   : > { %p2654_p8 = pnand %p1812_p5, %p97_p7  ;;  %s109_s19 = sshll.u32 %s2590_s18, 4  ;;  %s2658_s19 = int_to_ptr.vmem [resolvable:$true] %s109_s19 }
   0xe   : > { %s2670_s21 = sadd.s32 1, %s2588_s12   ;;  %s26_s22 = sadd.s32 1, %s2584_s11 }
   0xf   : > { %s3331_s17 = scalar_select %p2654_p8, 1, 0 }
  0x10   : > { %p2277_p9 = pneg %p2654_p8  ;;  %s23_s23 = ssub.s32 %s2588_s12, %s2670_s21 }
  0x11   : > { %s2460_s26 = scalar_lea.hbm %s3323_s1, 4096 }
  0x12   : > { %p2665_p11 = pnand %p2277_p9, %p3325_p1  ;;  %p2461_p12 = scmp.ne.s32.totalorder %s3323_s1, %s2460_s26 }
  0x13   : > { %p2467_p5 = scmp.lt.u32.totalorder %s2460_s26, %s3323_s1 }
  0x14   : > { %p2462_p13 = pneg %p2665_p11 }
  0x16   : > { %p2463_p0 = pnand %p2462_p13, %p2461_p12 }
  0x18   : > { %p2464_p3 = pneg %p2463_p0 }
  0x1a   : > { %p2469_p7 = pnand %p2467_p5, %p2464_p3 }
  0x1c   : > { %2472 = shalt.err (!%p2469_p7)
}
  0x1d   : > { %s2473_s3 = scalar_lea.vmem %s2658_s19, 4096  ;;  %p2481_p2 = scmp.lt.s32.totalorder %s2658_s19, %s2658_s19 }
  0x1e   : > { %p2474_p9 = scmp.ne.s32.totalorder %s2658_s19, %s2473_s3  ;;  %p2482_p6 = scmp.lt.s32.totalorder %s2473_s3, %s2473_s3 }
  0x20   : > { %p2476_p10 = pnand %p2474_p9, %p2462_p13  ;;  %p2483_p4 = por %p2482_p6, %p2481_p2 }
  0x22   : > { %p2477_p1 = pneg %p2476_p10 }
  0x24   : > { %p2484_p8 = pnand %p2483_p4, %p2477_p1 }
  0x26   : > { %2487 = shalt.err (!%p2484_p8)
}
  0x27   : > { %s2591_s4 = smov 128   ;;  %s2592_s5 = smov 8  }
  0x28   : > { %2280 = dma.hbm_to_vmem [thread:$0]  (!%p2665_p11), %s3323_s1, 4096, %s2658_s19, [#allocation6], %s2591_s4, %s2591_s4, %s2592_s5  }
  0x29   : > { %p24_p2 = scmp.eq.s32.totalorder %s23_s23, 0  ;;  %p33_p1 = scmp.ne.s32.totalorder %s2584_s11, %s2580_s10 }
  0x2a   : > { %p34_p4 = scmp.eq.s32.totalorder %s2588_s12, 0  ;;  %p2290_p6 = scmp.lt.s32.totalorder %s2588_s12, 2 }
  0x2b   : > { %s2701_s8 = scalar_select %p24_p2, %s2584_s11, %s26_s22  }
  0x2c   : > { %p35_p8 = por %p34_p4, %p33_p1  ;;  %p3333_p10 = scmp.eq.s32.totalorder %s2635_s13, 1 }
  0x2d   : > { %s123_s18 = sand.u32 1, %s2584_s11   ;;  %s2075_s24 = sshll.u32 %s2588_s12, 13 }
  0x2e   : > { %p2705_p12 = por %p3333_p10, %p33_p1  ;;  %s1815_s25 = sshll.u32 %s123_s18, 9 }
  0x2f   : > { %s2714_s27 = scalar_lea.hbm %s3322_s0, %s2075_s24  ;;  %s127_s19 = scalar_lea.vmem [#allocation2], %s1815_s25 }
  0x30   : > { %s134_s22 = sshll.u32 %s127_s19, 4  ;;  %p2716_p11 = pnand %p2290_p6, %p35_p8  ;;  %s2720_s22 = int_to_ptr.vmem [resolvable:$true] %s134_s22 }
  0x31   : > { %s2722_s28 = scalar_lea.sflag [#allocation3], %s123_s18  ;;  %s2488_s29 = scalar_lea.hbm %s2714_s27, 8192 }
  0x32   : > { %p2489_p13 = scmp.ne.s32.totalorder %s2714_s27, %s2488_s29  ;;  %p2490_p0 = pneg %p2716_p11 }
  0x33   : > { %s2493_s4 = scalar_lea.hbm %s3322_s0, 16384  ;;  %p2494_p7 = scmp.lt.u32.totalorder %s2714_s27, %s3322_s0 }
  0x34   : > { %p2491_p3 = pnand %p2490_p0, %p2489_p13  ;;  %p2495_p9 = scmp.lt.u32.totalorder %s2493_s4, %s2488_s29 }
  0x35   : > { %p2497_p1 = scmp.lt.u32.totalorder %s2488_s29, %s2714_s27 }
  0x36   : > { %p2492_p5 = pneg %p2491_p3  ;;  %p2496_p2 = por %p2495_p9, %p2494_p7 }
  0x38   : > { %p2498_p4 = por %p2497_p1, %p2496_p2 }
  0x3a   : > { %p2499_p6 = pnand %p2498_p4, %p2492_p5 }
  0x3c   : > { %2502 = shalt.err (!%p2499_p6)
}
  0x3d   : > { %s2503_s7 = scalar_lea.vmem %s2720_s22, 8192  ;;  %s2593_s18 = smov [#allocation2]  }
  0x3e   : > { %p2504_p8 = scmp.ne.s32.totalorder %s2720_s22, %s2503_s7  ;;  %s2508_s24 = sshll.u32 %s2593_s18, 4  ;;  %s2509_s24 = int_to_ptr.vmem [resolvable:$false] %s2508_s24 }
  0x3f   : > { %s2510_s25 = scalar_lea.vmem %s2509_s24, 16384  ;;  %p2511_p3 = scmp.lt.s32.totalorder %s2720_s22, %s2509_s24 }
  0x40   : > { %p2506_p10 = pnand %p2504_p8, %p2490_p0  ;;  %p2512_p7 = scmp.lt.s32.totalorder %s2510_s25, %s2503_s7 }
  0x42   : > { %p2507_p13 = pneg %p2506_p10  ;;  %p2513_p9 = por %p2512_p7, %p2511_p3 }
  0x44   : > { %p2514_p2 = pnand %p2513_p9, %p2507_p13 }
  0x46   : > { %2517 = shalt.err (!%p2514_p2)
}
  0x47   : > { %s2594_s20 = smov 64   ;;  %s2595_s26 = smov 4  }
  0x48   : > { %2284 = dma.hbm_to_vmem [thread:$0]  (!%p2716_p11), %s2714_s27, 8192, %s2720_s22, %s2722_s28, %s2594_s20, %s2594_s20, %s2595_s26  }
  0x49   : > { %p3336_p0 = scmp.ne.s32.totalorder %s3331_s17, 0 }
  0x4b   : > { %146 = sbr.rel (%p3336_p0) target bundleno = 773 (0x305), region = 28 }
  0x52   : > { %s2753_s19 = sand.u32 1, %s2580_s10   ;;  %p3337_p5 = scmp.ne.s32.totalorder %s3329_s15, 0 }
  0x53   : > { %s1819_s29 = sshll.u32 %s2753_s19, 9  ;;  %s149_s30 = scalar_lea.sflag [#allocation3], %s2753_s19 }
  0x54   : > { %s2757_s3 = scalar_lea.vmem [#allocation2], %s1819_s29 }
  0x55   : > { %2563 = dma.done.wait (%p3337_p5), %s149_s30, 8192  }
  0x56   : > { %2565 = vsyncadd (%p3337_p5), %s149_s30, 4294959104  ;;  %p3338_p11 = scmp.eq.s32.totalorder %s2635_s13, 0 }
  0x58   : > { %2567 = dma.done.wait (%p3338_p11), [#allocation6], 4096   ;;  %p3339_p1 = pmov %p3338_p11 }
  0x59   : > { %v2332_v0 = vld [vmem:[%s2757_s3 + $0x40] sm:$0xff]   ;;  %v2336_v4 = vld [vmem:[%s2757_s3 + $0x48] sm:$0xff]   ;;  %v2340_v8 = vld [vmem:[%s2757_s3 + $0x50] sm:$0xff]   ;;  %vm1148_vm0 = vcmask 523264   ;;  %s1821_s15 = sshll.u32 %s2753_s19, 7  ;;  %vm1534_vm1 = vcmask 519168  }
  0x5a   : > { %2569 = vsyncadd (%p3339_p1), [#allocation6], 4294963200  ;;  %v2333_v1 = vld [vmem:[%s2757_s3 + $0xc0] sm:$0xff]   ;;  %2109 = vmatprep.subr.bf16.mxu0 %v2332_v0  ;;  %v2337_v5 = vld [vmem:[%s2757_s3 + $0xc8] sm:$0xff]   ;;  %s3181_s17 = scalar_lea.vmem [#allocation7], %s1821_s15  ;;  %s2108_s27 = sshll.u32 %s2635_s13, 11 }
  0x5b   : > { %v2334_v2 = vld [vmem:[%s2757_s3] sm:$0xff]   ;;  %2149 = vmatprep.subr.bf16.mxu1 %v2333_v1  ;;  %v2338_v6 = vld [vmem:[%s2757_s3 + $0x8] sm:$0xff]   ;;  %v2341_v9 = vld [vmem:[%s2757_s3 + $0xd0] sm:$0xff]   ;;  %s1728_s22 = sshll.u32 %s3181_s17, 4  ;;  %s3268_s28 = scalar_lea.hbm %s3324_s2, %s2108_s27  ;;  %s3270_s22 = int_to_ptr.vmem [resolvable:$true] %s1728_s22 }
  0x5c   : > { %v2335_v3 = vld [vmem:[%s2757_s3 + $0x80] sm:$0xff]   ;;  %2110 = vmatpush3.bf16.msra.mxu0 %v2334_v2  ;;  %v2339_v7 = vld [vmem:[%s2757_s3 + $0x88] sm:$0xff]   ;;  %v2342_v10 = vld [vmem:[%s2757_s3 + $0x10] sm:$0xff]   ;;  %s1715_s4 = scalar_lea.sflag [#allocation4], %s2753_s19  ;;  %s2518_s5 = scalar_lea.vmem %s3270_s22, 2048 }
  0x5d   : > { %2150 = vmatpush3.bf16.msra.mxu1 %v2335_v3  ;;  %2111 = vmatprep.subr.bf16.mxu0 %v2336_v4  ;;  %v2343_v11 = vld [vmem:[%s2757_s3 + $0x90] sm:$0xff]   ;;  %v2344_v12 = vld [vmem:[%s2757_s3 + $0x58] sm:$0xff]   ;;  %v2348_v16 = vld [vmem:[%s2757_s3 + $0x60] sm:$0xff]   ;;  %p2519_p4 = scmp.ne.s32.totalorder %s3270_s22, %s2518_s5  ;;  %s2596_s6 = smov [#allocation7]  }
  0x5e   : > { %2151 = vmatprep.subr.bf16.mxu1 %v2337_v5  ;;  %v2345_v13 = vld [vmem:[%s2757_s3 + $0xd8] sm:$0xff]   ;;  %v2349_v17 = vld [vmem:[%s2757_s3 + $0xe0] sm:$0xff]   ;;  %v2352_v20 = vld [vmem:[%s2757_s3 + $0x68] sm:$0xff]   ;;  %s2522_s7 = sshll.u32 %s2596_s6, 4  ;;  %s2523_s7 = int_to_ptr.vmem [resolvable:$false] %s2522_s7 }
  0x5f   : > { %v2346_v14 = vld [vmem:[%s2757_s3 + $0x18] sm:$0xff]   ;;  %v2350_v18 = vld [vmem:[%s2757_s3 + $0x20] sm:$0xff]   ;;  %v2353_v21 = vld [vmem:[%s2757_s3 + $0xe8] sm:$0xff]   ;;  %p2520_p6 = pnand %p2519_p4, %p2705_p12  ;;  %s2524_s18 = scalar_lea.vmem %s2523_s7, 4096 }
  0x60   : > { %2112 = vmatpush3.bf16.msra.mxu0 %v2338_v6  ;;  %v2347_v15 = vld [vmem:[%s2757_s3 + $0x98] sm:$0xff]   ;;  %v2351_v19 = vld [vmem:[%s2757_s3 + $0xa0] sm:$0xff]   ;;  %v2354_v22 = vld [vmem:[%s2757_s3 + $0x28] sm:$0xff]   ;;  %p2525_p10 = scmp.lt.s32.totalorder %s3270_s22, %s2523_s7  ;;  %p2526_p13 = scmp.lt.s32.totalorder %s2524_s18, %s2518_s5 }
  0x61   : > { %2152 = vmatpush3.bf16.msra.mxu1 %v2339_v7  ;;  %2113 = vmatprep.subr.bf16.mxu0 %v2340_v8  ;;  %v2355_v23 = vld [vmem:[%s2757_s3 + $0xa8] sm:$0xff]   ;;  %v2356_v24 = vld [vmem:[%s2757_s3 + $0x70] sm:$0xff]   ;;  %v2360_v28 = vld [vmem:[%s2757_s3 + $0x78] sm:$0xff]   ;;  %p2521_p8 = pneg %p2520_p6 }
  0x62   : > { %2153 = vmatprep.subr.bf16.mxu1 %v2341_v9  ;;  %v2357_v25 = vld [vmem:[%s2757_s3 + $0xf0] sm:$0xff]   ;;  %v2361_v29 = vld [vmem:[%s2757_s3 + $0xf8] sm:$0xff]   ;;  %v2364_v32 = vld [vmem:[#allocation5] ss:$8 sps:$4 sm:$0xff]   ;;  %p2527_p3 = por %p2526_p13, %p2525_p10 }
  0x63   : > { %v2358_v26 = vld [vmem:[%s2757_s3 + $0x30] sm:$0xff]   ;;  %v2362_v30 = vld [vmem:[%s2757_s3 + $0x38] sm:$0xff]   ;;  %v2366_v33 = vld [vmem:[#allocation5 + $0x4] ss:$8 sps:$4 sm:$0xff]  }
  0x64   : > { %2114 = vmatpush3.bf16.msra.mxu0 %v2342_v10  ;;  %v2359_v27 = vld [vmem:[%s2757_s3 + $0xb0] sm:$0xff]   ;;  %v2363_v31 = vld [vmem:[%s2757_s3 + $0xb8] sm:$0xff]   ;;  %v2367_v34 = vld [vmem:[#allocation5 + $0x40] ss:$8 sps:$4 sm:$0xff]   ;;  %386 = vmatprep.mubr.bf16.mxu0 %v2366_v33  ;;  %p2528_p7 = pnand %p2527_p3, %p2521_p8 }
  0x65   : > { %2154 = vmatpush3.bf16.msra.mxu1 %v2343_v11  ;;  %2115 = vmatprep.subr.bf16.mxu0 %v2344_v12  ;;  %v2369_v35 = vld [vmem:[#allocation5 + $0x44] ss:$8 sps:$4 sm:$0xff]   ;;  %v2376_v42 = vld [vmem:[#allocation5 + $0x14] ss:$8 sps:$4 sm:$0xff]   ;;  %v2379_v44 = vld [vmem:[#allocation5 + $0x10] ss:$8 sps:$4 sm:$0xff]  }
  0x66   : > { %2155 = vmatprep.subr.bf16.mxu1 %v2345_v13  ;;  %v2370_v36 = vld [vmem:[%s2757_s3 + $0x140] sm:$0xff]   ;;  %629 = vmatprep.mubr.bf16.mxu1 %v2369_v35  ;;  %v2373_v39 = vld [vmem:[%s2757_s3 + $0x148] sm:$0xff]   ;;  %v2380_v45 = vld [vmem:[%s2757_s3 + $0x150] sm:$0xff]  }
  0x67   : > { %v2371_v37 = vld [vmem:[%s2757_s3 + $0x100] sm:$0xff]   ;;  %v2375_v41 = vld [vmem:[%s2757_s3 + $0x108] sm:$0xff]   ;;  %v2382_v47 = vld [vmem:[%s2757_s3 + $0x110] sm:$0xff]  }
  0x68   : > { %2116 = vmatpush3.bf16.msra.mxu0 %v2346_v14  ;;  %v2372_v38 = vld [vmem:[%s2757_s3 + $0x1c0] sm:$0xff]   ;;  %v2378_v43 = vld [vmem:[%s2757_s3 + $0x1c8] sm:$0xff]   ;;  %v2383_v48 = vld [vmem:[#allocation5 + $0x54] ss:$8 sps:$4 sm:$0xff]  }
  0x69   : > { %2156 = vmatpush3.bf16.msra.mxu1 %v2347_v15  ;;  %2117 = vmatprep.subr.bf16.mxu0 %v2348_v16  ;;  %v2374_v40 = vld [vmem:[%s2757_s3 + $0x180] sm:$0xff]   ;;  %v2381_v46 = vld [vmem:[%s2757_s3 + $0x188] sm:$0xff]   ;;  %v2385_v49 = vld [vmem:[#allocation5 + $0x50] ss:$8 sps:$4 sm:$0xff]  }
  0x6a   : > { %2157 = vmatprep.subr.bf16.mxu1 %v2349_v17  ;;  %v2386_v50 = vld [vmem:[%s2757_s3 + $0x1d0] sm:$0xff]   ;;  %v2387_v51 = vld [vmem:[%s2757_s3 + $0x158] sm:$0xff]   ;;  %v2390_v54 = vld [vmem:[#allocation5 + $0x24] ss:$8 sps:$4 sm:$0xff]  }
  0x6b   : > { %v2388_v52 = vld [vmem:[%s2757_s3 + $0x190] sm:$0xff]   ;;  %v2389_v53 = vld [vmem:[%s2757_s3 + $0x118] sm:$0xff]   ;;  %v2393_v56 = vld [vmem:[#allocation5 + $0x20] ss:$8 sps:$4 sm:$0xff]  }
  0x6c   : > { %2118 = vmatpush3.bf16.msra.mxu0 %v2350_v18  ;;  %v2392_v55 = vld [vmem:[%s2757_s3 + $0x1d8] sm:$0xff]   ;;  %v2394_v57 = vld [vmem:[%s2757_s3 + $0x160] sm:$0xff]   ;;  %v2401_v63 = vld [vmem:[%s2757_s3 + $0x168] sm:$0xff]  }
  0x6d   : > { %2158 = vmatpush3.bf16.msra.mxu1 %v2351_v19  ;;  %2119 = vmatprep.subr.bf16.mxu0 %v2352_v20  ;;  %v2395_v58 = vld [vmem:[%s2757_s3 + $0x198] sm:$0xff]   ;;  %v2396_v59 = vld [vmem:[%s2757_s3 + $0x120] sm:$0xff]   ;;  %v2403_v1 = vld [vmem:[%s2757_s3 + $0x128] sm:$0xff]  }
  0x6e   : > { %2159 = vmatprep.subr.bf16.mxu1 %v2353_v21  ;;  %v2397_v60 = vld [vmem:[#allocation5 + $0x64] ss:$8 sps:$4 sm:$0xff]   ;;  %v2399_v61 = vld [vmem:[#allocation5 + $0x60] ss:$8 sps:$4 sm:$0xff]   ;;  %v2404_v2 = vld [vmem:[#allocation5 + $0x34] ss:$8 sps:$4 sm:$0xff]  }
  0x6f   : > { %v2400_v62 = vld [vmem:[%s2757_s3 + $0x1e0] sm:$0xff]   ;;  %v2406_v3 = vld [vmem:[%s2757_s3 + $0x1e8] sm:$0xff]   ;;  %v2407_v4 = vld [vmem:[#allocation5 + $0x30] ss:$8 sps:$4 sm:$0xff]  }
  0x70   : > { %2120 = vmatpush3.bf16.msra.mxu0 %v2354_v22  ;;  %v2402_v0 = vld [vmem:[%s2757_s3 + $0x1a0] sm:$0xff]   ;;  %v2408_v5 = vld [vmem:[%s2757_s3 + $0x170] sm:$0xff]   ;;  %v2409_v6 = vld [vmem:[%s2757_s3 + $0x1a8] sm:$0xff]  }
  0x71   : > { %2160 = vmatpush3.bf16.msra.mxu1 %v2355_v23  ;;  %2121 = vmatprep.subr.bf16.mxu0 %v2356_v24  ;;  %v2410_v7 = vld [vmem:[%s2757_s3 + $0x130] sm:$0xff]   ;;  %v2415_v11 = vld [vmem:[%s2757_s3 + $0x178] sm:$0xff]   ;;  %v2418_v14 = vld [vmem:[#allocation5 + $0x80] ss:$8 sps:$4 sm:$0xff]  }
  0x72   : > { %2161 = vmatprep.subr.bf16.mxu1 %v2357_v25  ;;  %v2411_v8 = vld [vmem:[#allocation5 + $0x74] ss:$8 sps:$4 sm:$0xff]   ;;  %v2413_v9 = vld [vmem:[#allocation5 + $0x70] ss:$8 sps:$4 sm:$0xff]   ;;  %v2420_v15 = vld [vmem:[#allocation5 + $0x84] ss:$8 sps:$4 sm:$0xff]  }
  0x73   : > { %v2414_v10 = vld [vmem:[%s2757_s3 + $0x1f0] sm:$0xff]   ;;  %v2417_v13 = vld [vmem:[%s2757_s3 + $0x138] sm:$0xff]   ;;  %v2423_v18 = vld [vmem:[#allocation5 + $0xc0] ss:$8 sps:$4 sm:$0xff]  }
  0x74   : > { %2122 = vmatpush3.bf16.msra.mxu0 %v2358_v26  ;;  %v2416_v12 = vld [vmem:[%s2757_s3 + $0x1b0] sm:$0xff]   ;;  %v2421_v16 = vld [vmem:[%s2757_s3 + $0x1f8] sm:$0xff]   ;;  %v2425_v19 = vld [vmem:[#allocation5 + $0xc4] ss:$8 sps:$4 sm:$0xff]  }
  0x75   : > { %2162 = vmatpush3.bf16.msra.mxu1 %v2359_v27  ;;  %2123 = vmatprep.subr.bf16.mxu0 %v2360_v28  ;;  %v2422_v17 = vld [vmem:[%s2757_s3 + $0x1b8] sm:$0xff]   ;;  %v2432_v23 = vld [vmem:[#allocation5 + $0xa4] ss:$8 sps:$4 sm:$0xff]   ;;  %v2434_v26 = vld [vmem:[#allocation5 + $0xa0] ss:$8 sps:$4 sm:$0xff]  }
  0x76   : > { %2163 = vmatprep.subr.bf16.mxu1 %v2361_v29  ;;  %v2426_v20 = vld [vmem:[#allocation5 + $0x94] ss:$8 sps:$4 sm:$0xff]   ;;  %v2428_v22 = vld [vmem:[#allocation5 + $0x90] ss:$8 sps:$4 sm:$0xff]   ;;  %v2435_v25 = vld [vmem:[#allocation5 + $0xe4] ss:$8 sps:$4 sm:$0xff]  }
  0x77   : > { %v2429_v21 = vld [vmem:[#allocation5 + $0xd4] ss:$8 sps:$4 sm:$0xff]   ;;  %v2431_v24 = vld [vmem:[#allocation5 + $0xd0] ss:$8 sps:$4 sm:$0xff]   ;;  %v2437_v28 = vld [vmem:[#allocation5 + $0xe0] ss:$8 sps:$4 sm:$0xff]  }
  0x78   : > { %2124 = vmatpush3.bf16.msra.mxu0 %v2362_v30  ;;  %v2438_v27 = vld [vmem:[#allocation5 + $0xb4] ss:$8 sps:$4 sm:$0xff]   ;;  %v2440_v30 = vld [vmem:[#allocation5 + $0xb0] ss:$8 sps:$4 sm:$0xff]  }
  0x79   : > { %2164 = vmatpush3.bf16.msra.mxu1 %v2363_v31  ;;  %2189 = vmatprep.subr.bf16.mxu0 %v2370_v36  ;;  %v2441_v29 = vld [vmem:[#allocation5 + $0xf4] ss:$8 sps:$4 sm:$0xff]   ;;  %v2443_v31 = vld [vmem:[#allocation5 + $0xf0] ss:$8 sps:$4 sm:$0xff]  }
  0x7a   : > { %2229 = vmatprep.subr.bf16.mxu1 %v2372_v38 }
  0x7b   : > { %387 = vmatmul.mubr.bf16.vlgmr.msra.gmra.mrb[0].mxu0 %v2364_v32 }
  0x7c   : > { %630 = vmatmul.mubr.bf16.vlgmr.msra.gmra.mrb[0].mxu1 %v2367_v34  ;;  %2190 = vmatpush3.bf16.msra.mxu0 %v2371_v37 }
  0x7d   : > { %2191 = vmatprep.subr.bf16.mxu0 %v2373_v39  ;;  %2230 = vmatpush3.bf16.msra.mxu1 %v2374_v40 }
  0x7e   : > { %394 = vmatprep.mubr.bf16.mxu0 %v2376_v42  ;;  %2231 = vmatprep.subr.bf16.mxu1 %v2378_v43 }
  0x7f   : > { %637 = vmatprep.mubr.bf16.mxu1 %v2383_v48 }
  0x80   : > { %2192 = vmatpush3.bf16.msra.mxu0 %v2375_v41 }
  0x81   : > { %2193 = vmatprep.subr.bf16.mxu0 %v2380_v45  ;;  %2232 = vmatpush3.bf16.msra.mxu1 %v2381_v46 }
  0x82   : > { %2233 = vmatprep.subr.bf16.mxu1 %v2386_v50 }
  0x83   : > { %395 = vmatmul.mubr.bf16.gmra.mrb[4].mxu0 %v2379_v44 }
  0x84   : > { %2194 = vmatpush3.bf16.msra.mxu0 %v2382_v47  ;;  %638 = vmatmul.mubr.bf16.gmra.mrb[4].mxu1 %v2385_v49 }
  0x85   : > { %2195 = vmatprep.subr.bf16.mxu0 %v2387_v51  ;;  %2234 = vmatpush3.bf16.msra.mxu1 %v2388_v52 }
  0x86   : > { %402 = vmatprep.mubr.bf16.mxu0 %v2390_v54  ;;  %2235 = vmatprep.subr.bf16.mxu1 %v2392_v55 }
  0x87   : > { %645 = vmatprep.mubr.bf16.mxu1 %v2397_v60 }
  0x88   : > { %2196 = vmatpush3.bf16.msra.mxu0 %v2389_v53 }
  0x89   : > { %2197 = vmatprep.subr.bf16.mxu0 %v2394_v57  ;;  %2236 = vmatpush3.bf16.msra.mxu1 %v2395_v58 }
  0x8a   : > { %2237 = vmatprep.subr.bf16.mxu1 %v2400_v62 }
  0x8b   : > { %403 = vmatmul.mubr.bf16.gmra.mrb[8].mxu0 %v2393_v56 }
  0x8c   : > { %2198 = vmatpush3.bf16.msra.mxu0 %v2396_v59  ;;  %646 = vmatmul.mubr.bf16.gmra.mrb[8].mxu1 %v2399_v61 }
  0x8d   : > { %2199 = vmatprep.subr.bf16.mxu0 %v2401_v63  ;;  %2238 = vmatpush3.bf16.msra.mxu1 %v2402_v0 }
  0x8e   : > { %410 = vmatprep.mubr.bf16.mxu0 %v2404_v2  ;;  %2239 = vmatprep.subr.bf16.mxu1 %v2406_v3 }
  0x8f   : > { %653 = vmatprep.mubr.bf16.mxu1 %v2411_v8 }
  0x90   : > { %2200 = vmatpush3.bf16.msra.mxu0 %v2403_v1 }
  0x91   : > { %2201 = vmatprep.subr.bf16.mxu0 %v2408_v5  ;;  %2240 = vmatpush3.bf16.msra.mxu1 %v2409_v6 }
  0x92   : > { %2241 = vmatprep.subr.bf16.mxu1 %v2414_v10 }
  0x93   : > { %411 = vmatmul.mubr.bf16.gmra.mrb[12].mxu0 %v2407_v4 }
  0x94   : > { %2202 = vmatpush3.bf16.msra.mxu0 %v2410_v7  ;;  %654 = vmatmul.mubr.bf16.gmra.mrb[12].mxu1 %v2413_v9 }
  0x95   : > { %2203 = vmatprep.subr.bf16.mxu0 %v2415_v11  ;;  %2242 = vmatpush3.bf16.msra.mxu1 %v2416_v12 }
  0x96   : > { %872 = vmatprep.mubr.bf16.mxu0 %v2420_v15  ;;  %2243 = vmatprep.subr.bf16.mxu1 %v2421_v16 }
  0x97   : > { %1115 = vmatprep.mubr.bf16.mxu1 %v2425_v19 }
  0x98   : > { %2204 = vmatpush3.bf16.msra.mxu0 %v2417_v13 }
  0x99   : > { %2244 = vmatpush3.bf16.msra.mxu1 %v2422_v17 }
  0x9b   : > { %873 = vmatmul.mubr.bf16.vlgmr.msra.gmra.mrb[16].mxu0 %v2418_v14 }
  0x9c   : > { %1116 = vmatmul.mubr.bf16.vlgmr.msra.gmra.mrb[16].mxu1 %v2423_v18  ;;  %880 = vmatprep.mubr.bf16.mxu0 %v2426_v20 }
  0x9d   : > { %1123 = vmatprep.mubr.bf16.mxu1 %v2429_v21 }
  0xa3   : > { %881 = vmatmul.mubr.bf16.gmra.mrb[20].mxu0 %v2428_v22 }
  0xa4   : > { %888 = vmatprep.mubr.bf16.mxu0 %v2432_v23  ;;  %1124 = vmatmul.mubr.bf16.gmra.mrb[20].mxu1 %v2431_v24 }
  0xa5   : > { %1131 = vmatprep.mubr.bf16.mxu1 %v2435_v25 }
  0xab   : > { %889 = vmatmul.mubr.bf16.gmra.mrb[24].mxu0 %v2434_v26 }
  0xac   : > { %896 = vmatprep.mubr.bf16.mxu0 %v2438_v27  ;;  %1132 = vmatmul.mubr.bf16.gmra.mrb[24].mxu1 %v2437_v28 }
  0xad   : > { %1139 = vmatprep.mubr.bf16.mxu1 %v2441_v29 }
  0xb3   : > { %897 = vmatmul.mubr.bf16.gmra.mrb[28].mxu0 %v2440_v30 }
  0xb4   : > { %1140 = vmatmul.mubr.bf16.gmra.mrb[28].mxu1 %v2443_v31 }
 0x14e   : > { %v2125_v32 = vpop.f32.mrb[0].mxu0 }
 0x14f   : > { %v2165_v33 = vpop.f32.mrb[0].mxu1  ;;  %v2126_v34 = vpop.f32.mrb[1].mxu0 }
 0x150   : > { %v2831_v35 = vadd.f32 %v2126_v34, %v2125_v32  ;;  %v2166_v36 = vpop.f32.mrb[1].mxu1  ;;  %v2128_v37 = vpop.f32.mrb[2].mxu0 }
 0x151   : > { %v2833_v38 = vadd.f32 %v2166_v36, %v2165_v33  ;;  %v2168_v39 = vpop.f32.mrb[2].mxu1  ;;  %v2129_v40 = vpop.f32.mrb[3].mxu0 }
 0x152   : > { %v2835_v41 = vadd.f32 %v2129_v40, %v2128_v37  ;;  %v2169_v42 = vpop.f32.mrb[3].mxu1  ;;  %v1149_v43 = vsel %vm1148_vm0, %v2831_v35, 0.0 }
 0x153   : > { %v2839_v44 = vadd.f32 %v2169_v42, %v2168_v39  ;;  %1150 = vadd.xlane.f32.xlu0 %v1149_v43  ;;  %v1173_v47 = vsel %vm1148_vm0, %v2833_v38, 0.0 }
 0x154   : > { %v1152_v54 = vsel %vm1148_vm0, %v2835_v41, 0.0 }
 0x155   : > { %v1176_v45 = vsel %vm1148_vm0, %v2839_v44, 0.0 }
 0x156   : > { %1177 = vadd.xlane.f32.xlu1 %v1176_v45  ;;  %v2131_v46 = vpop.f32.mrb[4].mxu0 }
 0x157   : > { %v2132_v48 = vpop.f32.mrb[5].mxu0  ;;  %1174 = vadd.xlane.f32.xlu0 %v1173_v47  ;;  %v2171_v55 = vpop.f32.mrb[4].mxu1 }
 0x158   : > { %v2845_v49 = vadd.f32 %v2132_v48, %v2131_v46  ;;  %v2134_v50 = vpop.f32.mrb[6].mxu0  ;;  %v2172_v56 = vpop.f32.mrb[5].mxu1 }
 0x159   : > { %v2135_v51 = vpop.f32.mrb[7].mxu0  ;;  %v2853_v57 = vadd.f32 %v2172_v56, %v2171_v55  ;;  %v2174_v58 = vpop.f32.mrb[6].mxu1 }
 0x15a   : > { %v2847_v52 = vadd.f32 %v2135_v51, %v2134_v50  ;;  %v1155_v53 = vsel %vm1148_vm0, %v2845_v49, 0.0  ;;  %v2175_v59 = vpop.f32.mrb[7].mxu1 }
 0x15b   : > { %1156 = vadd.xlane.f32.xlu1 %v1155_v53  ;;  %1153 = vadd.xlane.f32.xlu0 %v1152_v54  ;;  %v2857_v61 = vadd.f32 %v2175_v59, %v2174_v58  ;;  %v1179_v62 = vsel %vm1148_vm0, %v2853_v57, 0.0 }
 0x15c   : > { %v1158_v60 = vsel %vm1148_vm0, %v2847_v52, 0.0 }
 0x15d   : > { %v1182_v1 = vsel %vm1148_vm0, %v2857_v61, 0.0 }
 0x15e   : > { %v2137_v63 = vpop.f32.mrb[8].mxu0 }
 0x15f   : > { %1159 = vadd.xlane.f32.xlu1 %v1158_v60  ;;  %1180 = vadd.xlane.f32.xlu0 %v1179_v62  ;;  %v2138_v0 = vpop.f32.mrb[9].mxu0  ;;  %v2177_v7 = vpop.f32.mrb[8].mxu1 }
 0x160   : > { %v2863_v2 = vadd.f32 %v2138_v0, %v2137_v63  ;;  %v2140_v3 = vpop.f32.mrb[10].mxu0  ;;  %v2178_v8 = vpop.f32.mrb[9].mxu1 }
 0x161   : > { %v2141_v4 = vpop.f32.mrb[11].mxu0  ;;  %v2871_v10 = vadd.f32 %v2178_v8, %v2177_v7  ;;  %v2180_v11 = vpop.f32.mrb[10].mxu1 }
 0x162   : > { %v2865_v5 = vadd.f32 %v2141_v4, %v2140_v3  ;;  %v1161_v6 = vsel %vm1148_vm0, %v2863_v2, 0.0  ;;  %v2181_v12 = vpop.f32.mrb[11].mxu1 }
 0x163   : > { %1183 = vadd.xlane.f32.xlu1 %v1182_v1  ;;  %1162 = vadd.xlane.f32.xlu0 %v1161_v6  ;;  %v2873_v13 = vadd.f32 %v2181_v12, %v2180_v11  ;;  %v1185_v14 = vsel %vm1148_vm0, %v2871_v10, 0.0 }
 0x164   : > { %v1164_v9 = vsel %vm1148_vm0, %v2865_v5, 0.0 }
 0x165   : > { %v1188_v16 = vsel %vm1148_vm0, %v2873_v13, 0.0 }
 0x166   : > { %v2143_v15 = vpop.f32.mrb[12].mxu0 }
 0x167   : > { %1165 = vadd.xlane.f32.xlu1 %v1164_v9  ;;  %1186 = vadd.xlane.f32.xlu0 %v1185_v14  ;;  %v2144_v17 = vpop.f32.mrb[13].mxu0  ;;  %v2183_v23 = vpop.f32.mrb[12].mxu1 }
 0x168   : > { %v2879_v18 = vadd.f32 %v2144_v17, %v2143_v15  ;;  %v2146_v19 = vpop.f32.mrb[14].mxu0  ;;  %v2184_v24 = vpop.f32.mrb[13].mxu1 }
 0x169   : > { %v2147_v20 = vpop.f32.mrb[15].mxu0  ;;  %v2887_v26 = vadd.f32 %v2184_v24, %v2183_v23  ;;  %v2186_v27 = vpop.f32.mrb[14].mxu1 }
 0x16a   : > { %v2881_v21 = vadd.f32 %v2147_v20, %v2146_v19  ;;  %v1167_v22 = vsel %vm1148_vm0, %v2879_v18, 0.0  ;;  %v2187_v28 = vpop.f32.mrb[15].mxu1 }
 0x16b   : > { %1189 = vadd.xlane.f32.xlu1 %v1188_v16  ;;  %1168 = vadd.xlane.f32.xlu0 %v1167_v22  ;;  %v2889_v29 = vadd.f32 %v2187_v28, %v2186_v27  ;;  %v1191_v30 = vsel %vm1148_vm0, %v2887_v26, 0.0 }
 0x16c   : > { %v1170_v25 = vsel %vm1148_vm0, %v2881_v21, 0.0 }
 0x16d   : > { %v1194_v32 = vsel %vm1148_vm0, %v2889_v29, 0.0 }
 0x16e   : > { %v2205_v31 = vpop.f32.mrb[16].mxu0 }
 0x16f   : > { %1171 = vadd.xlane.f32.xlu1 %v1170_v25  ;;  %1192 = vadd.xlane.f32.xlu0 %v1191_v30  ;;  %v2206_v33 = vpop.f32.mrb[17].mxu0  ;;  %v2245_v39 = vpop.f32.mrb[16].mxu1 }
 0x170   : > { %v2895_v34 = vadd.f32 %v2206_v33, %v2205_v31  ;;  %v2208_v36 = vpop.f32.mrb[18].mxu0  ;;  %v2246_v42 = vpop.f32.mrb[17].mxu1 }
 0x171   : > { %v2209_v37 = vpop.f32.mrb[19].mxu0  ;;  %v2901_v45 = vadd.f32 %v2246_v42, %v2245_v39  ;;  %v2248_v46 = vpop.f32.mrb[18].mxu1 }
 0x172   : > { %v2897_v40 = vadd.f32 %v2209_v37, %v2208_v36  ;;  %v1205_v43 = vsel %vm1148_vm0, %v2895_v34, 0.0  ;;  %v2249_v47 = vpop.f32.mrb[19].mxu1 }
 0x173   : > { %1195 = vadd.xlane.f32.xlu1 %v1194_v32  ;;  %1206 = vadd.xlane.f32.xlu0 %v1205_v43  ;;  %v2905_v50 = vadd.f32 %v2249_v47, %v2248_v46  ;;  %v1237_v51 = vsel %vm1148_vm0, %v2901_v45, 0.0 }
 0x174   : > { %v1208_v48 = vsel %vm1148_vm0, %v2897_v40, 0.0 }
 0x175   : > { %v1240_v58 = vsel %vm1148_vm0, %v2905_v50, 0.0 }
 0x176   : > { %v2211_v53 = vpop.f32.mrb[20].mxu0 }
 0x177   : > { %1209 = vadd.xlane.f32.xlu1 %v1208_v48  ;;  %v2212_v54 = vpop.f32.mrb[21].mxu0  ;;  %1238 = vadd.xlane.f32.xlu0 %v1237_v51  ;;  %v2251_v59 = vpop.f32.mrb[20].mxu1 }
 0x178   : > { %v2909_v55 = vadd.f32 %v2212_v54, %v2211_v53  ;;  %v2214_v56 = vpop.f32.mrb[22].mxu0  ;;  %v2252_v63 = vpop.f32.mrb[21].mxu1 }
 0x179   : > { %v2215_v60 = vpop.f32.mrb[23].mxu0  ;;  %v2917_v1 = vadd.f32 %v2252_v63, %v2251_v59  ;;  %v2254_v3 = vpop.f32.mrb[22].mxu1 }
 0x17a   : > { %v2913_v62 = vadd.f32 %v2215_v60, %v2214_v56  ;;  %v1211_v0 = vsel %vm1148_vm0, %v2909_v55, 0.0  ;;  %v2255_v4 = vpop.f32.mrb[23].mxu1 }
 0x17b   : > { %1241 = vadd.xlane.f32.xlu1 %v1240_v58  ;;  %1212 = vadd.xlane.f32.xlu0 %v1211_v0  ;;  %v2921_v7 = vadd.f32 %v2255_v4, %v2254_v3  ;;  %v1243_v8 = vsel %vm1148_vm0, %v2917_v1, 0.0 }
 0x17c   : > { %v1214_v6 = vsel %vm1148_vm0, %v2913_v62, 0.0 }
 0x17d   : > { %v1246_v12 = vsel %vm1148_vm0, %v2921_v7, 0.0 }
 0x17e   : > { %v2217_v9 = vpop.f32.mrb[24].mxu0 }
 0x17f   : > { %1215 = vadd.xlane.f32.xlu1 %v1214_v6  ;;  %v2218_v11 = vpop.f32.mrb[25].mxu0  ;;  %1244 = vadd.xlane.f32.xlu0 %v1243_v8  ;;  %v2257_v16 = vpop.f32.mrb[24].mxu1 }
 0x180   : > { %v2927_v14 = vadd.f32 %v2218_v11, %v2217_v9  ;;  %v2220_v15 = vpop.f32.mrb[26].mxu0  ;;  %v2258_v20 = vpop.f32.mrb[25].mxu1 }
 0x181   : > { %v2221_v17 = vpop.f32.mrb[27].mxu0  ;;  %v2933_v23 = vadd.f32 %v2258_v20, %v2257_v16  ;;  %v2260_v24 = vpop.f32.mrb[26].mxu1 }
 0x182   : > { %v2929_v19 = vadd.f32 %v2221_v17, %v2220_v15  ;;  %v1217_v22 = vsel %vm1148_vm0, %v2927_v14, 0.0  ;;  %v2261_v25 = vpop.f32.mrb[27].mxu1 }
 0x183   : > { %1247 = vadd.xlane.f32.xlu1 %v1246_v12  ;;  %1218 = vadd.xlane.f32.xlu0 %v1217_v22  ;;  %v2937_v28 = vadd.f32 %v2261_v25, %v2260_v24  ;;  %v1249_v30 = vsel %vm1148_vm0, %v2933_v23, 0.0 }
 0x184   : > { %v1220_v27 = vsel %vm1148_vm0, %v2929_v19, 0.0 }
 0x185   : > { %v1252_v33 = vsel %vm1148_vm0, %v2937_v28, 0.0 }
 0x186   : > { %v2223_v31 = vpop.f32.mrb[28].mxu0 }
 0x187   : > { %1221 = vadd.xlane.f32.xlu1 %v1220_v27  ;;  %v2224_v32 = vpop.f32.mrb[29].mxu0  ;;  %1250 = vadd.xlane.f32.xlu0 %v1249_v30  ;;  %v2263_v39 = vpop.f32.mrb[28].mxu1 }
 0x188   : > { %v2943_v36 = vadd.f32 %v2224_v32, %v2223_v31  ;;  %v2226_v37 = vpop.f32.mrb[30].mxu0  ;;  %v2264_v46 = vpop.f32.mrb[29].mxu1 }
 0x189   : > { %v2227_v42 = vpop.f32.mrb[31].mxu0  ;;  %v2949_v48 = vadd.f32 %v2264_v46, %v2263_v39  ;;  %v2266_v51 = vpop.f32.mrb[30].mxu1 }
 0x18a   : > { %v2945_v43 = vadd.f32 %v2227_v42, %v2226_v37  ;;  %v1223_v47 = vsel %vm1148_vm0, %v2943_v36, 0.0  ;;  %v2267_v53 = vpop.f32.mrb[31].mxu1 }
 0x18b   : > { %1253 = vadd.xlane.f32.xlu1 %v1252_v33  ;;  %1224 = vadd.xlane.f32.xlu0 %v1223_v47  ;;  %v2953_v56 = vadd.f32 %v2267_v53, %v2266_v51  ;;  %v1255_v58 = vsel %vm1148_vm0, %v2949_v48, 0.0 }
 0x18c   : > { %v1226_v54 = vsel %vm1148_vm0, %v2945_v43, 0.0 }
 0x18d   : > { %3340 = vst [vmem:[#allocation11_spill] sm:$0xff] %v2953_v56  ;;  %v1258_v59 = vsel %vm1148_vm0, %v2953_v56, 0.0 }
 0x18f   : > { %1227 = vadd.xlane.f32.xlu1 %v1226_v54  ;;  %1256 = vadd.xlane.f32.xlu0 %v1255_v58 }
 0x193   : > { %1259 = vadd.xlane.f32.xlu1 %v1258_v59 }
 0x1e0   : > { %v1151_v60 = vpop.xlane.xlu0 %1150 }
 0x1e3   : > { %v1178_v63 = vpop.xlane.xlu1 %1177 }
 0x1e4   : > { %v1175_v0 = vpop.xlane.xlu0 %1174 }
 0x1e5   : > { %v1197_v27 = vadd.f32 %v1175_v0, %v1151_v60 }
 0x1e8   : > { %v1157_v3 = vpop.xlane.xlu1 %1156  ;;  %v1154_v4 = vpop.xlane.xlu0 %1153 }
 0x1e9   : > { %v1198_v31 = vadd.f32 %v1178_v63, %v1154_v4 }
 0x1ec   : > { %v1160_v6 = vpop.xlane.xlu1 %1159  ;;  %v1181_v8 = vpop.xlane.xlu0 %1180 }
 0x1ed   : > { %v1199_v53 = vadd.f32 %v1181_v8, %v1157_v3 }
 0x1f0   : > { %v1184_v9 = vpop.xlane.xlu1 %1183  ;;  %v2959_v11 = vpop.xlane.xlu0 %1162 }
 0x1f1   : > { %v1200_v56 = vadd.f32 %v1184_v9, %v1160_v6 }
 0x1f4   : > { %v2961_v12 = vpop.xlane.xlu1 %1165  ;;  %v1187_v15 = vpop.xlane.xlu0 %1186 }
 0x1f8   : > { %v2963_v16 = vpop.xlane.xlu1 %1189  ;;  %v2965_v17 = vpop.xlane.xlu0 %1168 }
 0x1fc   : > { %v2967_v20 = vpop.xlane.xlu1 %1171  ;;  %v2969_v22 = vpop.xlane.xlu0 %1192 }
 0x200   : > { %v2971_v24 = vpop.xlane.xlu1 %1195  ;;  %v1207_v25 = vpop.xlane.xlu0 %1206 }
 0x201   : > { %v1229_v32 = vadd.f32 %v1207_v25, %v1197_v27 }
 0x204   : > { %v1210_v30 = vpop.xlane.xlu1 %1209  ;;  %v1239_v33 = vpop.xlane.xlu0 %1238 }
 0x205   : > { %v1230_v37 = vadd.f32 %v1210_v30, %v1198_v31  ;;  %v1261_v39 = vadd.f32 %v1239_v33, %v1229_v32 }
 0x207   : > { %v1270_v46 = vmul.f32 0.00390625, %v1261_v39 }
 0x208   : > { %v1242_v42 = vpop.xlane.xlu1 %1241  ;;  %v1213_v51 = vpop.xlane.xlu0 %1212 }
 0x209   : > { %v1262_v47 = vadd.f32 %v1242_v42, %v1230_v37  ;;  %v2974_v58 = vsub.f32 %v2831_v35, %v1270_v46  ;;  %v2977_v59 = vsub.f32 %v2833_v38, %v1270_v46  ;;  %v1231_v0 = vadd.f32 %v1213_v51, %v1199_v53 }
 0x20a   : > { %v2988_v35 = vsub.f32 %v2895_v34, %v1270_v46  ;;  %v3005_v37 = vsub.f32 %v2901_v45, %v1270_v46 }
 0x20b   : > { %v1271_v54 = vmul.f32 0.00390625, %v1262_v47  ;;  %v1286_v63 = vmul.f32 %v2974_v58, %v2974_v58  ;;  %v1326_v9 = vmul.f32 %v2977_v59, %v2977_v59 }
 0x20c   : > { %v1216_v60 = vpop.xlane.xlu1 %1215  ;;  %v1245_v27 = vpop.xlane.xlu0 %1244  ;;  %v1374_v33 = vmul.f32 %v2988_v35, %v2988_v35 }
 0x20d   : > { %v2982_v4 = vsub.f32 %v2835_v41, %v1271_v54  ;;  %v1232_v25 = vadd.f32 %v1216_v60, %v1200_v56  ;;  %v2985_v3 = vsub.f32 %v2839_v44, %v1271_v54  ;;  %v1263_v8 = vadd.f32 %v1245_v27, %v1231_v0 }
 0x20e   : > { %v1294_v38 = vsel %vm1148_vm0, %v1286_v63, 0.0  ;;  %v2999_v34 = vsub.f32 %v2897_v40, %v1271_v54  ;;  %v1334_v32 = vsel %vm1148_vm0, %v1326_v9, 0.0  ;;  %v3011_v40 = vsub.f32 %v2905_v50, %v1271_v54 }
 0x20f   : > { %v1287_v6 = vmul.f32 %v2982_v4, %v2982_v4  ;;  %1295 = vadd.xlane.f32.xlu0 %v1294_v38  ;;  %v1327_v44 = vmul.f32 %v2985_v3, %v2985_v3  ;;  %v1272_v31 = vmul.f32 0.00390625, %v1263_v8  ;;  %v1382_v53 = vsel %vm1148_vm0, %v1374_v33, 0.0 }
 0x210   : > { %v1248_v41 = vpop.xlane.xlu1 %1247  ;;  %v1375_v47 = vmul.f32 %v2999_v34, %v2999_v34  ;;  %v1219_v51 = vpop.xlane.xlu0 %1218  ;;  %v1422_v60 = vmul.f32 %v3005_v37, %v3005_v37  ;;  %v1423_v63 = vmul.f32 %v3011_v40, %v3011_v40  ;;  %v1201_v54 = vadd.f32 %v1187_v15, %v2959_v11 }
 0x211   : > { %v1264_v30 = vadd.f32 %v1248_v41, %v1232_v25  ;;  %v1297_v56 = vsel %vm1148_vm0, %v1287_v6, 0.0  ;;  %v1337_v42 = vsel %vm1148_vm0, %v1327_v44, 0.0  ;;  %v3017_v45 = vsub.f32 %v2845_v49, %v1272_v31 }
 0x212   : > { %1298 = vadd.xlane.f32.xlu1 %v1297_v56  ;;  %v1385_v0 = vsel %vm1148_vm0, %v1375_v47, 0.0  ;;  %v1430_v25 = vsel %vm1148_vm0, %v1422_v60, 0.0  ;;  %v3030_v49 = vsub.f32 %v2853_v57, %v1272_v31  ;;  %v1202_v8 = vadd.f32 %v2963_v16, %v2961_v12 }
 0x213   : > { %1335 = vadd.xlane.f32.xlu0 %v1334_v32  ;;  %v1273_v39 = vmul.f32 0.00390625, %v1264_v30  ;;  %v1288_v27 = vmul.f32 %v3017_v45, %v3017_v45  ;;  %v1233_v6 = vadd.f32 %v1219_v51, %v1201_v54  ;;  %v3041_v41 = vsub.f32 %v2909_v55, %v1272_v31 }
 0x214   : > { %v1222_v46 = vpop.xlane.xlu1 %1221  ;;  %v1251_v38 = vpop.xlane.xlu0 %1250  ;;  %v1328_v16 = vmul.f32 %v3030_v49, %v3030_v49  ;;  %v3056_v47 = vsub.f32 %v2917_v1, %v1272_v31 }
 0x215   : > { %v3023_v50 = vsub.f32 %v2847_v52, %v1273_v39  ;;  %v1433_v52 = vsel %vm1148_vm0, %v1423_v63, 0.0  ;;  %v3038_v11 = vsub.f32 %v2857_v61, %v1273_v39  ;;  %v1234_v57 = vadd.f32 %v1222_v46, %v1202_v8 }
 0x216   : > { %1338 = vadd.xlane.f32.xlu1 %v1337_v42  ;;  %v1265_v30 = vadd.f32 %v1251_v38, %v1233_v6  ;;  %v1300_v12 = vsel %vm1148_vm0, %v1288_v27, 0.0  ;;  %v3050_v32 = vsub.f32 %v2913_v62, %v1273_v39  ;;  %v1340_v33 = vsel %vm1148_vm0, %v1328_v16, 0.0 }
 0x217   : > { %1383 = vadd.xlane.f32.xlu0 %v1382_v53  ;;  %v1289_v9 = vmul.f32 %v3023_v50, %v3023_v50  ;;  %v1329_v61 = vmul.f32 %v3038_v11, %v3038_v11  ;;  %v1376_v42 = vmul.f32 %v3041_v41, %v3041_v41  ;;  %v3062_v62 = vsub.f32 %v2921_v7, %v1273_v39 }
 0x218   : > { %v1254_v15 = vpop.xlane.xlu1 %1253  ;;  %v1274_v55 = vmul.f32 0.00390625, %v1265_v30  ;;  %v1377_v60 = vmul.f32 %v3050_v32, %v3050_v32  ;;  %v1225_v46 = vpop.xlane.xlu0 %1224  ;;  %v1424_v63 = vmul.f32 %v3056_v47, %v3056_v47  ;;  %v1203_v39 = vadd.f32 %v2969_v22, %v2965_v17 }
 0x219   : > { %v1266_v56 = vadd.f32 %v1254_v15, %v1234_v57  ;;  %v1303_v44 = vsel %vm1148_vm0, %v1289_v9, 0.0  ;;  %v1343_v53 = vsel %vm1148_vm0, %v1329_v61, 0.0  ;;  %v1204_v38 = vadd.f32 %v2971_v24, %v2967_v20 }
 0x21a   : > { %1386 = vadd.xlane.f32.xlu1 %v1385_v0  ;;  %v1388_v0 = vsel %vm1148_vm0, %v1376_v42, 0.0  ;;  %v3068_v1 = vsub.f32 %v2863_v2, %v1274_v55  ;;  %v1391_v54 = vsel %vm1148_vm0, %v1377_v60, 0.0  ;;  %v1436_v27 = vsel %vm1148_vm0, %v1424_v63, 0.0 }
 0x21b   : > { %1431 = vadd.xlane.f32.xlu0 %v1430_v25  ;;  %v1275_v51 = vmul.f32 0.00390625, %v1266_v56  ;;  %v1425_v25 = vmul.f32 %v3062_v62, %v3062_v62  ;;  %v3082_v8 = vsub.f32 %v2871_v10, %v1274_v55  ;;  %v3093_v15 = vsub.f32 %v2927_v14, %v1274_v55 }
 0x21c   : > { %v1228_v31 = vpop.xlane.xlu1 %1227  ;;  %v1290_v2 = vmul.f32 %v3068_v1, %v3068_v1  ;;  %v1257_v6 = vpop.xlane.xlu0 %1256  ;;  %v3108_v61 = vsub.f32 %v2933_v23, %v1274_v55 }
 0x21d   : > { %v3074_v7 = vsub.f32 %v2865_v5, %v1275_v51  ;;  %v1439_v5 = vsel %vm1148_vm0, %v1425_v25, 0.0  ;;  %v3090_v17 = vsub.f32 %v2873_v13, %v1275_v51  ;;  %v1236_v10 = vadd.f32 %v1228_v31, %v1204_v38 }
 0x21e   : > { %1434 = vadd.xlane.f32.xlu1 %v1433_v52  ;;  %v1235_v52 = vadd.f32 %v1225_v46, %v1203_v39  ;;  %v1306_v20 = vsel %vm1148_vm0, %v1290_v2, 0.0  ;;  %v1330_v24 = vmul.f32 %v3082_v8, %v3082_v8  ;;  %v3102_v16 = vsub.f32 %v2929_v19, %v1275_v51 }
 0x21f   : > { %1301 = vadd.xlane.f32.xlu0 %v1300_v12  ;;  %v1291_v9 = vmul.f32 %v3074_v7, %v3074_v7  ;;  %v1331_v13 = vmul.f32 %v3090_v17, %v3090_v17  ;;  %v3114_v19 = vsub.f32 %v2937_v28, %v1275_v51  ;;  %v1426_v46 = vmul.f32 %v3108_v61, %v3108_v61 }
 0x220   : > { %v1260_v22 = vpop.xlane.xlu1 %1259  ;;  %v1267_v57 = vadd.f32 %v1257_v6, %v1235_v52  ;;  %v1346_v56 = vsel %vm1148_vm0, %v1330_v24, 0.0 }
 0x221   : > { %v1268_v30 = vadd.f32 %v1260_v22, %v1236_v10  ;;  %v1309_v12 = vsel %vm1148_vm0, %v1291_v9, 0.0  ;;  %v1349_v42 = vsel %vm1148_vm0, %v1331_v13, 0.0  ;;  %v1427_v55 = vmul.f32 %v3114_v19, %v3114_v19  ;;  %v3341_v9 = vld [vmem:[#allocation11_spill] sm:$0xff] }
 0x222   : > { %1304 = vadd.xlane.f32.xlu1 %v1303_v44  ;;  %v1276_v14 = vmul.f32 0.00390625, %v1267_v57  ;;  %v1378_v44 = vmul.f32 %v3093_v15, %v3093_v15  ;;  %v1442_v28 = vsel %vm1148_vm0, %v1426_v46, 0.0 }
 0x223   : > { %1341 = vadd.xlane.f32.xlu0 %v1340_v33  ;;  %v1277_v33 = vmul.f32 0.00390625, %v1268_v30 }
 0x224   : > { %v1394_v60 = vsel %vm1148_vm0, %v1378_v44, 0.0  ;;  %v3132_v31 = vsub.f32 %v2887_v26, %v1276_v14  ;;  %v3156_v52 = vsub.f32 %v2949_v48, %v1276_v14 }
 0x225   : > { %v3126_v63 = vsub.f32 %v2881_v21, %v1277_v33  ;;  %v3138_v25 = vsub.f32 %v2889_v29, %v1277_v33  ;;  %v3150_v38 = vsub.f32 %v2945_v43, %v1277_v33  ;;  %v3162_v22 = vsub.f32 %v3341_v9, %v1277_v33 }
 0x226   : > { %1344 = vadd.xlane.f32.xlu1 %v1343_v53  ;;  %v1379_v53 = vmul.f32 %v3102_v16, %v3102_v16  ;;  %v1332_v39 = vmul.f32 %v3132_v31, %v3132_v31  ;;  %v1428_v10 = vmul.f32 %v3156_v52, %v3156_v52 }
 0x227   : > { %1389 = vadd.xlane.f32.xlu0 %v1388_v0  ;;  %v3120_v0 = vsub.f32 %v2879_v18, %v1276_v14  ;;  %v1445_v18 = vsel %vm1148_vm0, %v1427_v55, 0.0  ;;  %v1333_v2 = vmul.f32 %v3138_v25, %v3138_v25  ;;  %v1429_v48 = vmul.f32 %v3162_v22, %v3162_v22 }
 0x228   : > { %v1397_v23 = vsel %vm1148_vm0, %v1379_v53, 0.0  ;;  %v1352_v29 = vsel %vm1148_vm0, %v1332_v39, 0.0 }
 0x229   : > { %v1292_v51 = vmul.f32 %v3120_v0, %v3120_v0  ;;  %v1451_v24 = vsel %vm1148_vm0, %v1429_v48, 0.0 }
 0x22a   : > { %1392 = vadd.xlane.f32.xlu1 %v1391_v54  ;;  %v1293_v54 = vmul.f32 %v3126_v63, %v3126_v63 }
 0x22b   : > { %1437 = vadd.xlane.f32.xlu0 %v1436_v27  ;;  %v1312_v21 = vsel %vm1148_vm0, %v1292_v51, 0.0  ;;  %v3144_v27 = vsub.f32 %v2943_v36, %v1276_v14  ;;  %v1355_v36 = vsel %vm1148_vm0, %v1333_v2, 0.0 }
 0x22c   : > { %v1315_v26 = vsel %vm1148_vm0, %v1293_v54, 0.0 }
 0x22d   : > { %v1380_v6 = vmul.f32 %v3144_v27, %v3144_v27 }
 0x22e   : > { %1440 = vadd.xlane.f32.xlu1 %v1439_v5  ;;  %v1381_v5 = vmul.f32 %v3150_v38, %v3150_v38 }
 0x22f   : > { %1307 = vadd.xlane.f32.xlu0 %v1306_v20  ;;  %v1400_v43 = vsel %vm1148_vm0, %v1380_v6, 0.0  ;;  %v1448_v20 = vsel %vm1148_vm0, %v1428_v10, 0.0 }
 0x230   : > { %v1403_v57 = vsel %vm1148_vm0, %v1381_v5, 0.0 }
 0x232   : > { %1310 = vadd.xlane.f32.xlu1 %v1309_v12 }
 0x233   : > { %1347 = vadd.xlane.f32.xlu0 %v1346_v56 }
 0x236   : > { %1350 = vadd.xlane.f32.xlu1 %v1349_v42 }
 0x237   : > { %1395 = vadd.xlane.f32.xlu0 %v1394_v60 }
 0x23a   : > { %1398 = vadd.xlane.f32.xlu1 %v1397_v23 }
 0x23b   : > { %1443 = vadd.xlane.f32.xlu0 %v1442_v28 }
 0x23e   : > { %1446 = vadd.xlane.f32.xlu1 %v1445_v18 }
 0x23f   : > { %1313 = vadd.xlane.f32.xlu0 %v1312_v21 }
 0x242   : > { %1316 = vadd.xlane.f32.xlu1 %v1315_v26 }
 0x243   : > { %1353 = vadd.xlane.f32.xlu0 %v1352_v29 }
 0x246   : > { %1356 = vadd.xlane.f32.xlu1 %v1355_v36 }
 0x247   : > { %1401 = vadd.xlane.f32.xlu0 %v1400_v43 }
 0x24a   : > { %1404 = vadd.xlane.f32.xlu1 %v1403_v57 }
 0x24b   : > { %1449 = vadd.xlane.f32.xlu0 %v1448_v20 }
 0x24e   : > { %1452 = vadd.xlane.f32.xlu1 %v1451_v24 }
 0x29c   : > { %v1296_v30 = vpop.xlane.xlu0 %1295 }
 0x29f   : > { %v1299_v12 = vpop.xlane.xlu1 %1298 }
 0x2a0   : > { %v1336_v13 = vpop.xlane.xlu0 %1335 }
 0x2a1   : > { %v1358_v44 = vadd.f32 %v1336_v13, %v1296_v30 }
 0x2a3   : > { %v1339_v14 = vpop.xlane.xlu1 %1338 }
 0x2a4   : > { %v1384_v56 = vpop.xlane.xlu0 %1383  ;;  %v1359_v42 = vadd.f32 %v1339_v14, %v1299_v12 }
 0x2a5   : > { %v1406_v53 = vadd.f32 %v1384_v56, %v1358_v44 }
 0x2a7   : > { %v1387_v33 = vpop.xlane.xlu1 %1386 }
 0x2a8   : > { %v1432_v60 = vpop.xlane.xlu0 %1431  ;;  %v1407_v46 = vadd.f32 %v1387_v33, %v1359_v42 }
 0x2a9   : > { %v1454_v23 = vadd.f32 %v1432_v60, %v1406_v53 }
 0x2ab   : > { %v1435_v55 = vpop.xlane.xlu1 %1434  ;;  %v1462_v28 = vmul.f32 0.00390625, %v1454_v23 }
 0x2ac   : > { %v1455_v51 = vadd.f32 %v1435_v55, %v1407_v46  ;;  %v1302_v18 = vpop.xlane.xlu0 %1301 }
 0x2ad   : > { %v1470_v54 = vadd.f32 1e-05, %v1462_v28 }
 0x2ae   : > { %v1463_v21 = vmul.f32 0.00390625, %v1455_v51 }
 0x2af   : > { %v1305_v39 = vpop.xlane.xlu1 %1304  ;;  %2444 = vrsqrt.f32 %v1470_v54 }
 0x2b0   : > { %v1471_v26 = vadd.f32 1e-05, %v1463_v21  ;;  %v1342_v2 = vpop.xlane.xlu0 %1341 }
 0x2b1   : > { %v1360_v36 = vadd.f32 %v1342_v2, %v1302_v18 }
 0x2b2   : > { %2446 = vrsqrt.f32 %v1471_v26 }
 0x2b3   : > { %v1345_v29 = vpop.xlane.xlu1 %1344 }
 0x2b4   : > { %v1390_v6 = vpop.xlane.xlu0 %1389  ;;  %v1361_v9 = vadd.f32 %v1345_v29, %v1305_v39 }
 0x2b5   : > { %v1408_v43 = vadd.f32 %v1390_v6, %v1360_v36 }
 0x2b7   : > { %v1393_v5 = vpop.xlane.xlu1 %1392 }
 0x2b8   : > { %v1438_v10 = vpop.xlane.xlu0 %1437  ;;  %v1409_v48 = vadd.f32 %v1393_v5, %v1361_v9 }
 0x2b9   : > { %v2445_v57 = vpop.eup %2444  ;;  %v1456_v20 = vadd.f32 %v1438_v10, %v1408_v43 }
 0x2ba   : > { %v1486_v24 = vmul.f32 %v2445_v57, %v2974_v58  ;;  %v1543_v30 = vmul.f32 %v2445_v57, %v2977_v59  ;;  %v1600_v12 = vmul.f32 %v2445_v57, %v2988_v35  ;;  %v1657_v13 = vmul.f32 %v2445_v57, %v3005_v37 }
 0x2bb   : > { %v1441_v14 = vpop.xlane.xlu1 %1440  ;;  %v1464_v44 = vmul.f32 0.00390625, %v1456_v20 }
 0x2bc   : > { %v2447_v56 = vpop.eup %2446  ;;  %v1457_v33 = vadd.f32 %v1441_v14, %v1409_v48  ;;  %v1494_v42 = vmax.f32 %v1486_v24, 0.0  ;;  %v1551_v53 = vmax.f32 %v1543_v30, 0.0  ;;  %v1608_v60 = vmax.f32 %v1600_v12, 0.0  ;;  %v1308_v23 = vpop.xlane.xlu0 %1307 }
 0x2bd   : > { %v1665_v46 = vmax.f32 %v1657_v13, 0.0  ;;  %v1487_v55 = vmul.f32 %v2447_v56, %v2982_v4  ;;  %v1544_v58 = vmul.f32 %v2447_v56, %v2985_v3  ;;  %v1601_v59 = vmul.f32 %v2447_v56, %v2999_v34 }
 0x2be   : > { %v1658_v35 = vmul.f32 %v2447_v56, %v3011_v40  ;;  %v2076_v28 = vpack.c.bf16 %v1494_v42, %v1494_v42  ;;  %v2084_v37 = vpack.c.bf16 %v1551_v53, %v1551_v53  ;;  %v2092_v51 = vpack.c.bf16 %v1608_v60, %v1608_v60 }
 0x2bf   : > { %v2100_v18 = vpack.c.bf16 %v1665_v46, %v1665_v46  ;;  %v1311_v54 = vpop.xlane.xlu1 %1310  ;;  %v1495_v21 = vmax.f32 %v1487_v55, 0.0  ;;  %v1552_v39 = vmax.f32 %v1544_v58, 0.0  ;;  %v1609_v26 = vmax.f32 %v1601_v59, 0.0 }
 0x2c0   : > { %v1666_v2 = vmax.f32 %v1658_v35, 0.0  ;;  %1535 = vst.msk [vmem:[%s3181_s17] sm:$0xf] %vm1534_vm1, %v2076_v28  ;;  %2030 = vst.msk [vmem:[%s3181_s17 + $0x20] sm:$0xf] %vm1534_vm1, %v2084_v37  ;;  %v1465_v3 = vmul.f32 0.00390625, %v1457_v33  ;;  %v1348_v34 = vpop.xlane.xlu0 %1347 }
 0x2c1   : > { %2046 = vst.msk [vmem:[%s3181_s17 + $0x40] sm:$0xf] %vm1534_vm1, %v2092_v51  ;;  %2062 = vst.msk [vmem:[%s3181_s17 + $0x60] sm:$0xf] %vm1534_vm1, %v2100_v18  ;;  %v1472_v4 = vadd.f32 1e-05, %v1464_v44  ;;  %v2077_v40 = vpack.c.bf16 %v1495_v21, %v1495_v21  ;;  %v2085_v29 = vpack.c.bf16 %v1552_v39, %v1552_v39  ;;  %v2093_v6 = vpack.c.bf16 %v1609_v26, %v1609_v26 }
 0x2c2   : > { %v2101_v36 = vpack.c.bf16 %v1666_v2, %v1666_v2  ;;  %v1473_v5 = vadd.f32 1e-05, %v1465_v3  ;;  %v1362_v10 = vadd.f32 %v1348_v34, %v1308_v23 }
 0x2c3   : > { %2448 = vrsqrt.f32 %v1472_v4  ;;  %v1351_v9 = vpop.xlane.xlu1 %1350  ;;  %1536 = vst.msk [vmem:[%s3181_s17 + $0x4] sm:$0xf] %vm1534_vm1, %v2077_v40  ;;  %2031 = vst.msk [vmem:[%s3181_s17 + $0x24] sm:$0xf] %vm1534_vm1, %v2085_v29 }
 0x2c4   : > { %2047 = vst.msk [vmem:[%s3181_s17 + $0x44] sm:$0xf] %vm1534_vm1, %v2093_v6  ;;  %2063 = vst.msk [vmem:[%s3181_s17 + $0x64] sm:$0xf] %vm1534_vm1, %v2101_v36  ;;  %2450 = vrsqrt.f32 %v1473_v5  ;;  %v1396_v43 = vpop.xlane.xlu0 %1395  ;;  %v1363_v48 = vadd.f32 %v1351_v9, %v1311_v54 }
 0x2c5   : > { %v1410_v20 = vadd.f32 %v1396_v43, %v1362_v10 }
 0x2c7   : > { %v1399_v57 = vpop.xlane.xlu1 %1398 }
 0x2c8   : > { %v1444_v24 = vpop.xlane.xlu0 %1443  ;;  %v1411_v30 = vadd.f32 %v1399_v57, %v1363_v48 }
 0x2c9   : > { %v1458_v12 = vadd.f32 %v1444_v24, %v1410_v20 }
 0x2cb   : > { %v1447_v13 = vpop.xlane.xlu1 %1446  ;;  %v1466_v14 = vmul.f32 0.00390625, %v1458_v12 }
 0x2cc   : > { %v1459_v56 = vadd.f32 %v1447_v13, %v1411_v30  ;;  %v1314_v33 = vpop.xlane.xlu0 %1313 }
 0x2cd   : > { %v2449_v44 = vpop.eup %2448  ;;  %v1474_v55 = vadd.f32 1e-05, %v1466_v14 }
 0x2ce   : > { %v1488_v42 = vmul.f32 %v2449_v44, %v3017_v45  ;;  %v1545_v53 = vmul.f32 %v2449_v44, %v3030_v49  ;;  %v1602_v60 = vmul.f32 %v2449_v44, %v3041_v41  ;;  %v1659_v46 = vmul.f32 %v2449_v44, %v3056_v47  ;;  %v2451_v23 = vpop.eup %2450 }
 0x2cf   : > { %v1467_v58 = vmul.f32 0.00390625, %v1459_v56  ;;  %v1317_v59 = vpop.xlane.xlu1 %1316  ;;  %v1489_v18 = vmul.f32 %v2451_v23, %v3023_v50  ;;  %v1546_v45 = vmul.f32 %v2451_v23, %v3038_v11  ;;  %v1603_v49 = vmul.f32 %v2451_v23, %v3050_v32 }
 0x2d0   : > { %v1496_v35 = vmax.f32 %v1488_v42, 0.0  ;;  %v1553_v28 = vmax.f32 %v1545_v53, 0.0  ;;  %v1610_v37 = vmax.f32 %v1602_v60, 0.0  ;;  %v1667_v51 = vmax.f32 %v1659_v46, 0.0  ;;  %v1354_v47 = vpop.xlane.xlu0 %1353 }
 0x2d1   : > { %v1660_v41 = vmul.f32 %v2451_v23, %v3062_v62  ;;  %v1497_v2 = vmax.f32 %v1489_v18, 0.0  ;;  %v1554_v4 = vmax.f32 %v1546_v45, 0.0  ;;  %v1611_v3 = vmax.f32 %v1603_v49, 0.0 }
 0x2d2   : > { %v2078_v54 = vpack.c.bf16 %v1496_v35, %v1496_v35  ;;  %v2086_v21 = vpack.c.bf16 %v1553_v28, %v1553_v28  ;;  %v2094_v39 = vpack.c.bf16 %v1610_v37, %v1610_v37  ;;  %v2102_v26 = vpack.c.bf16 %v1667_v51, %v1667_v51 }
 0x2d3   : > { %v1668_v34 = vmax.f32 %v1660_v41, 0.0  ;;  %v1357_v50 = vpop.xlane.xlu1 %1356  ;;  %2452 = vrsqrt.f32 %v1474_v55  ;;  %v1475_v11 = vadd.f32 1e-05, %v1467_v58  ;;  %v2079_v32 = vpack.c.bf16 %v1497_v2, %v1497_v2 }
 0x2d4   : > { %1537 = vst.msk [vmem:[%s3181_s17 + $0x8] sm:$0xf] %vm1534_vm1, %v2078_v54  ;;  %2032 = vst.msk [vmem:[%s3181_s17 + $0x28] sm:$0xf] %vm1534_vm1, %v2086_v21  ;;  %v2087_v62 = vpack.c.bf16 %v1554_v4, %v1554_v4  ;;  %v2095_v40 = vpack.c.bf16 %v1611_v3, %v1611_v3  ;;  %v1402_v6 = vpop.xlane.xlu0 %1401  ;;  %v1364_v36 = vadd.f32 %v1354_v47, %v1314_v33 }
 0x2d5   : > { %2048 = vst.msk [vmem:[%s3181_s17 + $0x48] sm:$0xf] %vm1534_vm1, %v2094_v39  ;;  %2064 = vst.msk [vmem:[%s3181_s17 + $0x68] sm:$0xf] %vm1534_vm1, %v2102_v26  ;;  %v2103_v29 = vpack.c.bf16 %v1668_v34, %v1668_v34  ;;  %2454 = vrsqrt.f32 %v1475_v11  ;;  %v1365_v9 = vadd.f32 %v1357_v50, %v1317_v59 }
 0x2d6   : > { %1538 = vst.msk [vmem:[%s3181_s17 + $0xc] sm:$0xf] %vm1534_vm1, %v2079_v32  ;;  %2033 = vst.msk [vmem:[%s3181_s17 + $0x2c] sm:$0xf] %vm1534_vm1, %v2087_v62  ;;  %v1412_v43 = vadd.f32 %v1402_v6, %v1364_v36 }
 0x2d7   : > { %2049 = vst.msk [vmem:[%s3181_s17 + $0x4c] sm:$0xf] %vm1534_vm1, %v2095_v40  ;;  %2065 = vst.msk [vmem:[%s3181_s17 + $0x6c] sm:$0xf] %vm1534_vm1, %v2103_v29  ;;  %v1405_v5 = vpop.xlane.xlu1 %1404 }
 0x2d8   : > { %v1450_v10 = vpop.xlane.xlu0 %1449  ;;  %v1413_v57 = vadd.f32 %v1405_v5, %v1365_v9 }
 0x2d9   : > { %v1460_v48 = vadd.f32 %v1450_v10, %v1412_v43 }
 0x2db   : > { %v1453_v20 = vpop.xlane.xlu1 %1452  ;;  %v1468_v24 = vmul.f32 0.00390625, %v1460_v48 }
 0x2dc   : > { %v1461_v30 = vadd.f32 %v1453_v20, %v1413_v57 }
 0x2dd   : > { %v2453_v12 = vpop.eup %2452  ;;  %v1476_v13 = vadd.f32 1e-05, %v1468_v24 }
 0x2de   : > { %v1469_v14 = vmul.f32 0.00390625, %v1461_v30  ;;  %v1490_v56 = vmul.f32 %v2453_v12, %v3068_v1  ;;  %v1547_v44 = vmul.f32 %v2453_v12, %v3082_v8  ;;  %v1604_v33 = vmul.f32 %v2453_v12, %v3093_v15 }
 0x2df   : > { %v1661_v42 = vmul.f32 %v2453_v12, %v3108_v61  ;;  %v2455_v53 = vpop.eup %2454  ;;  %2456 = vrsqrt.f32 %v1476_v13 }
 0x2e0   : > { %v1477_v60 = vadd.f32 1e-05, %v1469_v14  ;;  %v1498_v46 = vmax.f32 %v1490_v56, 0.0  ;;  %v1555_v23 = vmax.f32 %v1547_v44, 0.0  ;;  %v1612_v55 = vmax.f32 %v1604_v33, 0.0 }
 0x2e1   : > { %v1669_v58 = vmax.f32 %v1661_v42, 0.0  ;;  %v1491_v59 = vmul.f32 %v2455_v53, %v3074_v7  ;;  %v1548_v1 = vmul.f32 %v2455_v53, %v3090_v17  ;;  %v1605_v8 = vmul.f32 %v2455_v53, %v3102_v16 }
 0x2e2   : > { %v1662_v15 = vmul.f32 %v2455_v53, %v3114_v19  ;;  %v2080_v61 = vpack.c.bf16 %v1498_v46, %v1498_v46  ;;  %v2088_v35 = vpack.c.bf16 %v1555_v23, %v1555_v23  ;;  %v2096_v28 = vpack.c.bf16 %v1612_v55, %v1612_v55 }
 0x2e3   : > { %v2104_v37 = vpack.c.bf16 %v1669_v58, %v1669_v58  ;;  %v1499_v51 = vmax.f32 %v1491_v59, 0.0  ;;  %v1556_v18 = vmax.f32 %v1548_v1, 0.0  ;;  %v1613_v45 = vmax.f32 %v1605_v8, 0.0 }
 0x2e4   : > { %v1670_v49 = vmax.f32 %v1662_v15, 0.0  ;;  %1539 = vst.msk [vmem:[%s3181_s17 + $0x10] sm:$0xf] %vm1534_vm1, %v2080_v61  ;;  %2034 = vst.msk [vmem:[%s3181_s17 + $0x30] sm:$0xf] %vm1534_vm1, %v2088_v35  ;;  %2458 = vrsqrt.f32 %v1477_v60 }
 0x2e5   : > { %2050 = vst.msk [vmem:[%s3181_s17 + $0x50] sm:$0xf] %vm1534_vm1, %v2096_v28  ;;  %2066 = vst.msk [vmem:[%s3181_s17 + $0x70] sm:$0xf] %vm1534_vm1, %v2104_v37  ;;  %v2081_v7 = vpack.c.bf16 %v1499_v51, %v1499_v51  ;;  %v2089_v17 = vpack.c.bf16 %v1556_v18, %v1556_v18  ;;  %v2097_v16 = vpack.c.bf16 %v1613_v45, %v1613_v45 }
 0x2e6   : > { %v2105_v19 = vpack.c.bf16 %v1670_v49, %v1670_v49 }
 0x2e7   : > { %1540 = vst.msk [vmem:[%s3181_s17 + $0x14] sm:$0xf] %vm1534_vm1, %v2081_v7  ;;  %2035 = vst.msk [vmem:[%s3181_s17 + $0x34] sm:$0xf] %vm1534_vm1, %v2089_v17 }
 0x2e8   : > { %2051 = vst.msk [vmem:[%s3181_s17 + $0x54] sm:$0xf] %vm1534_vm1, %v2097_v16  ;;  %2067 = vst.msk [vmem:[%s3181_s17 + $0x74] sm:$0xf] %vm1534_vm1, %v2105_v19 }
 0x2e9   : > { %v2457_v41 = vpop.eup %2456 }
 0x2ea   : > { %v1492_v47 = vmul.f32 %v2457_v41, %v3120_v0  ;;  %v1549_v54 = vmul.f32 %v2457_v41, %v3132_v31  ;;  %v1606_v21 = vmul.f32 %v2457_v41, %v3144_v27  ;;  %v1663_v39 = vmul.f32 %v2457_v41, %v3156_v52 }
 0x2ec   : > { %v1500_v26 = vmax.f32 %v1492_v47, 0.0  ;;  %v1557_v2 = vmax.f32 %v1549_v54, 0.0  ;;  %v1614_v4 = vmax.f32 %v1606_v21, 0.0  ;;  %v1671_v3 = vmax.f32 %v1663_v39, 0.0 }
 0x2ee   : > { %v2459_v34 = vpop.eup %2458  ;;  %v2082_v50 = vpack.c.bf16 %v1500_v26, %v1500_v26  ;;  %v2090_v11 = vpack.c.bf16 %v1557_v2, %v1557_v2  ;;  %v2098_v0 = vpack.c.bf16 %v1614_v4, %v1614_v4  ;;  %v2106_v32 = vpack.c.bf16 %v1671_v3, %v1671_v3 }
 0x2ef   : > { %v1493_v31 = vmul.f32 %v2459_v34, %v3126_v63  ;;  %v1550_v27 = vmul.f32 %v2459_v34, %v3138_v25  ;;  %v1607_v62 = vmul.f32 %v2459_v34, %v3150_v38  ;;  %v1664_v52 = vmul.f32 %v2459_v34, %v3162_v22 }
 0x2f0   : > { %1541 = vst.msk [vmem:[%s3181_s17 + $0x18] sm:$0xf] %vm1534_vm1, %v2082_v50  ;;  %2036 = vst.msk [vmem:[%s3181_s17 + $0x38] sm:$0xf] %vm1534_vm1, %v2090_v11 }
 0x2f1   : > { %2052 = vst.msk [vmem:[%s3181_s17 + $0x58] sm:$0xf] %vm1534_vm1, %v2098_v0  ;;  %2068 = vst.msk [vmem:[%s3181_s17 + $0x78] sm:$0xf] %vm1534_vm1, %v2106_v32  ;;  %v1501_v63 = vmax.f32 %v1493_v31, 0.0  ;;  %v1558_v25 = vmax.f32 %v1550_v27, 0.0 }
 0x2f2   : > { %v1615_v38 = vmax.f32 %v1607_v62, 0.0  ;;  %v1672_v22 = vmax.f32 %v1664_v52, 0.0 }
 0x2f3   : > { %v2083_v40 = vpack.c.bf16 %v1501_v63, %v1501_v63  ;;  %v2091_v29 = vpack.c.bf16 %v1558_v25, %v1558_v25 }
 0x2f4   : > { %v2099_v6 = vpack.c.bf16 %v1615_v38, %v1615_v38  ;;  %v2107_v36 = vpack.c.bf16 %v1672_v22, %v1672_v22 }
 0x2f5   : > { %1542 = vst.msk [vmem:[%s3181_s17 + $0x1c] sm:$0xf] %vm1534_vm1, %v2083_v40  ;;  %2037 = vst.msk [vmem:[%s3181_s17 + $0x3c] sm:$0xf] %vm1534_vm1, %v2091_v29 }
 0x2f6   : > { %2053 = vst.msk [vmem:[%s3181_s17 + $0x5c] sm:$0xf] %vm1534_vm1, %v2099_v6  ;;  %2069 = vst.msk [vmem:[%s3181_s17 + $0x7c] sm:$0xf] %vm1534_vm1, %v2107_v36 }
 0x2f7   : > { %2531 = shalt.err (!%p2528_p7)
}
 0x2f8   : > { %s2532_s24 = scalar_lea.hbm %s3268_s28, 2048  ;;  %s2536_s26 = scalar_lea.hbm %s3324_s2, 4096 }
 0x2f9   : > { %p2533_p9 = scmp.ne.s32.totalorder %s3268_s28, %s2532_s24  ;;  %p2537_p5 = scmp.lt.u32.totalorder %s3268_s28, %s3324_s2 }
 0x2fa   : > { %p2538_p11 = scmp.lt.u32.totalorder %s2536_s26, %s2532_s24  ;;  %p2540_p4 = scmp.lt.u32.totalorder %s2532_s24, %s3268_s28 }
 0x2fb   : > { %p2534_p2 = pnand %p2533_p9, %p2705_p12 }
 0x2fc   : > { %p2539_p1 = por %p2538_p11, %p2537_p5 }
 0x2fd   : > { %p2535_p0 = pneg %p2534_p2 }
 0x2fe   : > { %p2541_p6 = por %p2540_p4, %p2539_p1 }
 0x300   : > { %p2542_p8 = pnand %p2541_p6, %p2535_p0 }
 0x302   : > { %2545 = shalt.err (!%p2542_p8)
}
 0x303   : > { %s2597_s3 = smov 64   ;;  %s2598_s15 = smov 4  }
 0x304   : > { %2275 = dma.vmem_to_hbm [thread:$0]  (%p2705_p12), %s3270_s22, 2048, %s3268_s28, %s1715_s4, %s2597_s3, %s2597_s3, %s2598_s15  }
 0x305 PF: > { %s1743_s17 = sand.u32 1, %s2576_s9   ;;  %p3342_p10 = scmp.ne.s32.totalorder %s3330_s16, 0 }
 0x306   : > { %p3343_p13 = scmp.ge.s32.totalorder %s2588_s12, 2  ;;  %s1744_s27 = scalar_lea.sflag [#allocation4], %s1743_s17 }
 0x308   : > { %p2286_p3 = pnand %p3343_p13, %p3342_p10 }
 0x30a   : > { %2571 = dma.done.wait (!%p2286_p3), %s1744_s27, 2048  }
 0x30b   : > { %2573 = vsyncadd (!%p2286_p3), %s1744_s27, 4294965248  ;;  %p16_p7 = scmp.ge.s32.totalorder %s2670_s21, 4   ;;  %s3344_s9 = smov %s2580_s10 }
 0x30c   : > { %s3345_s10 = smov %s2584_s11  ;;  %s3346_s11 = smov %s2701_s8 }
 0x30d   : > { %s3347_s12 = smov %s2670_s21  ;;  %18 = sbr.rel (!%p16_p7) target bundleno = 6 (0x6), region = 86 }
 0x314   :  { %1749 = vsyncpa [#allocation3], 1 }
 0x315   :  { %1751 = vsyncpa [#allocation3 + $0x1], 1 }
 0x316   :  { %1752 = vsyncpa [#allocation6], 1 }
 0x317   :  { %1753 = vsyncpa [#allocation4], 1 }
 0x318   :  { %1755 = vsyncpa [#allocation4 + $0x1], 1 }

// kernel: generator_forward.129
= control target key start
LH: loop header
LB: loop body
LE: loop exit
PB: predicated region body
PF: predicated region fallthrough
CT: control target
= control target key end

     0   :  { %8 = vsyncpa [#allocation3], 0  ;;  %s1695_s0 = inlined_call_operand.hbm [shape: bf16[2,576,256], index: 0, kind: input, shape index: {}]   ;;  %s1696_s1 = inlined_call_operand.hbm [shape: bf16[3,576], index: 1, kind: input, shape index: {}]   ;;  %s1697_s2 = inlined_call_operand.hbm [shape: f32[3,1], index: 2, kind: input, shape index: {}]   ;;  %s1698_s3 = inlined_call_operand.hbm [shape: f32[2,3,256], index: 3, kind: output, shape index: {}]  }
   0x1   :  { %10 = vsyncpa [#allocation3 + $0x1], 0 }
   0x2   :  { %11 = vsyncpa [#allocation6], 0 }
   0x3   :  { %12 = vsyncpa [#allocation4], 0 }
   0x4   :  { %14 = vsyncpa [#allocation4 + $0x1], 0  ;;  %s1389_s12 = smov 0   ;;  %s1391_s13 = smov 0  }
   0x5   :  { %s1393_s14 = smov 0   ;;  %s1395_s15 = smov 0  }
   0x6 LB: > { %s1410_s16 = sadd.s32 4294967295, %s1359_s15   ;;  %s921_s17 = sadd.s32 4294967294, %s1359_s15   ;;  %s1359_s15 = sphi %s1395_s15, %s1723_s15   ;;  %s1355_s14 = sphi %s1393_s14, %s1722_s14   ;;  %s1351_s13 = sphi %s1391_s13, %s1721_s13   ;;  %s1347_s12 = sphi %s1389_s12, %s1720_s12  }
   0x7   : > { %s1414_s18 = sadd.s32 1, %s1359_s15   ;;  %s27_s19 = sadd.s32 1, %s1355_s14 }
   0x8   : > { %s24_s20 = ssub.s32 %s1359_s15, %s1414_s18  ;;  %p34_p0 = scmp.ne.s32.totalorder %s1355_s14, %s1351_s13 }
   0x9   : > { %p25_p1 = scmp.eq.s32.totalorder %s24_s20, 0  ;;  %p35_p2 = scmp.eq.s32.totalorder %s1359_s15, 0 }
   0xa   : > { %p40_p3 = scmp.ne.s32.totalorder %s1351_s13, %s1347_s12  ;;  %p1699_p4 = scmp.eq.s32.totalorder %s1410_s16, 0 }
   0xb   : > { %s1426_s21 = scalar_select %p25_p1, %s1355_s14, %s27_s19  }
   0xc   : > { %p1428_p5 = por %p35_p2, %p34_p0  ;;  %p1434_p6 = por %p1699_p4, %p40_p3 }
   0xd   : > { %p106_p7 = scmp.eq.s32.totalorder %s1410_s16, 1  ;;  %p112_p8 = scmp.eq.s32.totalorder %s921_s17, 1 }
   0xe   : > { %s1705_s23 = scalar_select %p1434_p6, 1, 0 }
   0xf   : > { %p922_p9 = scmp.ge.s32.totalorder %s1359_s15, 1  ;;  %p119_p10 = scmp.lt.s32.totalorder %s1359_s15, 3 }
  0x10   : > { %p1441_p11 = por %p106_p7, %p34_p0  ;;  %p1445_p12 = por %p112_p8, %p40_p3 }
  0x11   : > { %p1449_p13 = pnand %p922_p9, %p119_p10  ;;  %s1361_s27 = smov [#allocation5]  }
  0x12   : > { %s1706_s24 = scalar_select %p1441_p11, 1, 0 }
  0x13   : > { %s1707_s25 = scalar_select %p1445_p12, 1, 0 }
  0x14   : > { %s1708_s26 = scalar_select %p1449_p13, 1, 0 }
  0x15   : > { %p1034_p2 = pneg %p1449_p13  ;;  %s132_s28 = sshll.u32 %s1361_s27, 4  ;;  %s133_s28 = int_to_ptr.vmem [resolvable:$true] %s132_s28 }
  0x16   : > { %p1051_p4 = scmp.lt.s32.totalorder %s1359_s15, 2  ;;  %p1709_p0 = scmp.eq.s32.totalorder %s1410_s16, 0 }
  0x17   : > { %s1362_s4 = smov [#allocation7]   ;;  %s1203_s8 = scalar_lea.hbm %s1696_s1, 160 }
  0x18   : > { %p1459_p7 = pnand %p1034_p2, %p1709_p0  ;;  %p1465_p3 = pnand %p1051_p4, %p1428_p5 }
  0x19   : > { %s143_s5 = sshll.u32 %s1362_s4, 4  ;;  %p1204_p8 = scmp.ne.s32.totalorder %s1696_s1, %s1203_s8  ;;  %s1469_s5 = int_to_ptr.vmem [resolvable:$true] %s143_s5 }
  0x1a   : > { %s1711_s30 = scalar_select %p1465_p3, 1, 0 }
  0x1b   : > { %p1205_p9 = pneg %p1459_p7  ;;  %p1210_p10 = scmp.lt.u32.totalorder %s1203_s8, %s1696_s1 }
  0x1d   : > { %p1206_p4 = pnand %p1205_p9, %p1204_p8 }
  0x1f   : > { %p1207_p5 = pneg %p1206_p4 }
  0x21   : > { %p1212_p2 = pnand %p1210_p10, %p1207_p5 }
  0x23   : > { %1215 = shalt.err (!%p1212_p2)
}
  0x24   : > { %s1216_s19 = scalar_lea.vmem %s133_s28, 160  ;;  %p1224_p11 = scmp.lt.s32.totalorder %s133_s28, %s133_s28 }
  0x25   : > { %p1217_p0 = scmp.ne.s32.totalorder %s133_s28, %s1216_s19  ;;  %p1225_p6 = scmp.lt.s32.totalorder %s1216_s19, %s1216_s19 }
  0x27   : > { %p1219_p1 = pnand %p1217_p0, %p1205_p9  ;;  %p1226_p13 = por %p1225_p6, %p1224_p11 }
  0x29   : > { %p1220_p12 = pneg %p1219_p1 }
  0x2b   : > { %p1227_p3 = pnand %p1226_p13, %p1220_p12 }
  0x2d   : > { %1230 = shalt.err (!%p1227_p3)
}
  0x2e   : > { %1037 = dma.hbm_to_vmem [thread:$0]  (!%p1459_p7), %s1696_s1, 160, %s133_s28, [#allocation6]  }
  0x2f   : > { %s154_s27 = sand.u32 1, %s1355_s14   ;;  %s1231_s7 = scalar_lea.hbm %s1697_s2, 64 }
  0x30   : > { %p1232_p1 = scmp.ne.s32.totalorder %s1697_s2, %s1231_s7  ;;  %p1238_p12 = scmp.lt.u32.totalorder %s1231_s7, %s1697_s2 }
  0x32   : > { %p1234_p6 = pnand %p1232_p1, %p1205_p9 }
  0x34   : > { %p1235_p11 = pneg %p1234_p6 }
  0x36   : > { %p1240_p13 = pnand %p1238_p12, %p1235_p11 }
  0x38   : > { %1243 = shalt.err (!%p1240_p13)
}
  0x39   : > { %s1244_s28 = scalar_lea.vmem %s1469_s5, 64  ;;  %p1252_p5 = scmp.lt.s32.totalorder %s1469_s5, %s1469_s5 }
  0x3a   : > { %p1245_p3 = scmp.ne.s32.totalorder %s1469_s5, %s1244_s28  ;;  %p1253_p10 = scmp.lt.s32.totalorder %s1244_s28, %s1244_s28 }
  0x3c   : > { %p1247_p8 = pnand %p1245_p3, %p1205_p9  ;;  %p1254_p2 = por %p1253_p10, %p1252_p5 }
  0x3e   : > { %p1248_p4 = pneg %p1247_p8 }
  0x40   : > { %p1255_p0 = pnand %p1254_p2, %p1248_p4 }
  0x42   : > { %1258 = shalt.err (!%p1255_p0)
}
  0x43   : > { %1040 = dma.hbm_to_vmem [thread:$0]  (!%p1459_p7), %s1697_s2, 64, %s1469_s5, [#allocation6]  }
  0x44   : > { %s1019_s20 = smul.u32 576, %s154_s27  ;;  %s1527_s9 = scalar_lea.sflag [#allocation3], %s154_s27 }
  0x45   : > { %s1020_s22 = smul.u32 9216, %s1359_s15  ;;  %p1712_p7 = scmp.ne.s32.totalorder %s1711_s30, 0 }
  0x46   : > { %s158_s29 = scalar_lea.vmem [#allocation2], %s1019_s20  ;;  %s1264_s28 = scalar_lea.hbm %s1695_s0, 18432 }
  0x47   : > { %s1523_s7 = scalar_lea.hbm %s1695_s0, %s1020_s22  ;;  %s165_s8 = sshll.u32 %s158_s29, 4  ;;  %s1525_s8 = int_to_ptr.vmem [resolvable:$true] %s165_s8 }
  0x48   : > { %s1259_s10 = scalar_lea.hbm %s1523_s7, 9216  ;;  %p1261_p1 = pneg %p1712_p7 }
  0x49   : > { %p1260_p9 = scmp.ne.s32.totalorder %s1523_s7, %s1259_s10  ;;  %p1265_p12 = scmp.lt.u32.totalorder %s1523_s7, %s1695_s0 }
  0x4a   : > { %p1266_p13 = scmp.lt.u32.totalorder %s1264_s28, %s1259_s10  ;;  %p1268_p8 = scmp.lt.u32.totalorder %s1259_s10, %s1523_s7 }
  0x4b   : > { %p1262_p6 = pnand %p1261_p1, %p1260_p9 }
  0x4c   : > { %p1267_p3 = por %p1266_p13, %p1265_p12 }
  0x4d   : > { %p1263_p11 = pneg %p1262_p6 }
  0x4e   : > { %p1269_p4 = por %p1268_p8, %p1267_p3 }
  0x50   : > { %p1270_p5 = pnand %p1269_p4, %p1263_p11 }
  0x52   : > { %1273 = shalt.err (!%p1270_p5)
}
  0x53   : > { %s1274_s27 = scalar_lea.vmem %s1525_s8, 9216  ;;  %s1363_s20 = smov [#allocation2]  }
  0x54   : > { %p1275_p10 = scmp.ne.s32.totalorder %s1525_s8, %s1274_s27  ;;  %s1279_s22 = sshll.u32 %s1363_s20, 4  ;;  %s1280_s22 = int_to_ptr.vmem [resolvable:$false] %s1279_s22 }
  0x55   : > { %s1281_s4 = scalar_lea.vmem %s1280_s22, 18432  ;;  %p1282_p9 = scmp.lt.s32.totalorder %s1525_s8, %s1280_s22 }
  0x56   : > { %p1277_p2 = pnand %p1275_p10, %p1261_p1  ;;  %p1283_p6 = scmp.lt.s32.totalorder %s1281_s4, %s1274_s27 }
  0x58   : > { %p1278_p0 = pneg %p1277_p2  ;;  %p1284_p12 = por %p1283_p6, %p1282_p9 }
  0x5a   : > { %p1285_p13 = pnand %p1284_p12, %p1278_p0 }
  0x5c   : > { %1288 = shalt.err (!%p1285_p13)
}
  0x5d   : > { %s1364_s6 = smov 128   ;;  %s1365_s29 = smov 8  }
  0x5e   : > { %1044 = dma.hbm_to_vmem [thread:$0]  (!%p1712_p7), %s1523_s7, 9216, %s1525_s8, %s1527_s9, %s1364_s6, %s1364_s6, %s1365_s29  }
  0x5f   : > { %p1713_p1 = scmp.ne.s32.totalorder %s1708_s26, 0 }
  0x60   : > { %s1558_s10 = sand.u32 (!%p1713_p1), 1, %s1351_s13   ;;  %p1714_p11 = scmp.ne.s32.totalorder (!%p1713_p1), %s1705_s23, 0 }
  0x61   : > { %177 = sbr.rel (%p1713_p1) target bundleno = 420 (0x1a4), region = 32  ;;  %s180_s11 = scalar_lea.sflag (!%p1713_p1), [#allocation3], %s1558_s10 }
  0x62   : > { %s1021_s5 = smul.u32 (!%p1713_p1), 576, %s1558_s10 }
  0x64   : > { %s1562_s28 = scalar_lea.vmem (!%p1713_p1), [#allocation2], %s1021_s5 }
  0x68   : > { %1334 = dma.done.wait (%p1714_p11), %s180_s11, 9216  }
  0x69   : > { %1336 = vsyncadd (%p1714_p11), %s180_s11, 4294958080  ;;  %p1715_p7 = scmp.eq.s32.totalorder %s1410_s16, 0 }
  0x6b   : > { %1338 = dma.done.wait (%p1715_p7), [#allocation6], 224   ;;  %p1716_p3 = pmov %p1715_p7 }
  0x6c   : > { %v1366_v0 = vmov 0   ;;  %v1094_v1 = vld [vmem:[%s1562_s28 + $0x104] ss:$8 sps:$4 sm:$0xff]   ;;  %v1096_v2 = vld [vmem:[%s1562_s28 + $0x100] ss:$8 sps:$4 sm:$0xff]   ;;  %v301_v38 = vlaneseq  ;;  %vm685_vm0 = vcmask 523264  }
  0x6d   : > { %1340 = vsyncadd (%p1716_p3), [#allocation6], 4294967072  ;;  %1093 = vset.pattern.permute.xlu0 %v1366_v0  ;;  %730 = vmatprep.subr.bf16.mxu0 %v1094_v1  ;;  %v1097_v3 = vld [vmem:[%s1562_s28 + $0x114] ss:$8 sps:$4 sm:$0xff]   ;;  %v1099_v4 = vld [vmem:[%s1562_s28 + $0x110] ss:$8 sps:$4 sm:$0xff]  }
  0x6e   : > { %731 = vmatpush1.bf16.msra.mxu0 %v1096_v2  ;;  %v1100_v5 = vld [vmem:[%s1562_s28 + $0x124] ss:$8 sps:$4 sm:$0xff]   ;;  %v1105_v7 = vld [vmem:[%s1562_s28] ss:$8 sps:$4 sm:$0xff]   ;;  %v1109_v9 = vld [vmem:[%s1562_s28 + $0x14] ss:$8 sps:$4 sm:$0xff]  }
  0x6f   : > { %732 = vmatprep.subr.bf16.mxu0 %v1097_v3  ;;  %v1103_v6 = vld [vmem:[%s1562_s28 + $0x4] ss:$8 sps:$4 sm:$0xff]   ;;  %v1102_v8 = vld [vmem:[%s1562_s28 + $0x120] ss:$8 sps:$4 sm:$0xff]   ;;  %v1111_v10 = vld [vmem:[%s1562_s28 + $0x10] ss:$8 sps:$4 sm:$0xff]  }
  0x70   : > { %689 = vmatprep.subr.bf16.mxu1 %v1103_v6  ;;  %v1106_v11 = vld [vmem:[%s1562_s28 + $0x134] ss:$8 sps:$4 sm:$0xff]   ;;  %v1108_v12 = vld [vmem:[%s1562_s28 + $0x130] ss:$8 sps:$4 sm:$0xff]   ;;  %v1115_v13 = vld [vmem:[%s1562_s28 + $0x24] ss:$8 sps:$4 sm:$0xff]  }
  0x71   : > { %690 = vmatpush1.bf16.msra.mxu1 %v1105_v7  ;;  %v1112_v14 = vld [vmem:[%s1562_s28 + $0x144] ss:$8 sps:$4 sm:$0xff]   ;;  %v1117_v15 = vld [vmem:[%s1562_s28 + $0x20] ss:$8 sps:$4 sm:$0xff]   ;;  %v1121_v16 = vld [vmem:[%s1562_s28 + $0x34] ss:$8 sps:$4 sm:$0xff]  }
  0x72   : > { %733 = vmatpush1.bf16.msra.mxu0 %v1099_v4  ;;  %691 = vmatprep.subr.bf16.mxu1 %v1109_v9  ;;  %v1114_v17 = vld [vmem:[%s1562_s28 + $0x140] ss:$8 sps:$4 sm:$0xff]   ;;  %v1118_v18 = vld [vmem:[%s1562_s28 + $0x154] ss:$8 sps:$4 sm:$0xff]   ;;  %v1123_v19 = vld [vmem:[%s1562_s28 + $0x30] ss:$8 sps:$4 sm:$0xff]  }
  0x73   : > { %734 = vmatprep.subr.bf16.mxu0 %v1100_v5  ;;  %v1127_v20 = vld [vmem:[%s1562_s28 + $0x44] ss:$8 sps:$4 sm:$0xff]   ;;  %v1120_v21 = vld [vmem:[%s1562_s28 + $0x150] ss:$8 sps:$4 sm:$0xff]   ;;  %v1129_v23 = vld [vmem:[%s1562_s28 + $0x40] ss:$8 sps:$4 sm:$0xff]  }
  0x74   : > { %v1124_v22 = vld [vmem:[%s1562_s28 + $0x164] ss:$8 sps:$4 sm:$0xff]   ;;  %v1133_v24 = vld [vmem:[%s1562_s28 + $0x54] ss:$8 sps:$4 sm:$0xff]   ;;  %v1126_v25 = vld [vmem:[%s1562_s28 + $0x160] ss:$8 sps:$4 sm:$0xff]  }
  0x75   : > { %692 = vmatpush1.bf16.msra.mxu1 %v1111_v10  ;;  %v1130_v26 = vld [vmem:[%s1562_s28 + $0x174] ss:$8 sps:$4 sm:$0xff]   ;;  %v1135_v27 = vld [vmem:[%s1562_s28 + $0x50] ss:$8 sps:$4 sm:$0xff]   ;;  %v1139_v28 = vld [vmem:[%s1562_s28 + $0x64] ss:$8 sps:$4 sm:$0xff]  }
  0x76   : > { %735 = vmatpush1.bf16.msra.mxu0 %v1102_v8  ;;  %693 = vmatprep.subr.bf16.mxu1 %v1115_v13  ;;  %v1132_v29 = vld [vmem:[%s1562_s28 + $0x170] ss:$8 sps:$4 sm:$0xff]   ;;  %v1136_v30 = vld [vmem:[%s1562_s28 + $0x184] ss:$8 sps:$4 sm:$0xff]   ;;  %v1141_v31 = vld [vmem:[%s1562_s28 + $0x60] ss:$8 sps:$4 sm:$0xff]  }
  0x77   : > { %736 = vmatprep.subr.bf16.mxu0 %v1106_v11  ;;  %v1145_v32 = vld [vmem:[%s1562_s28 + $0x74] ss:$8 sps:$4 sm:$0xff]   ;;  %v1138_v33 = vld [vmem:[%s1562_s28 + $0x180] ss:$8 sps:$4 sm:$0xff]   ;;  %v1147_v35 = vld [vmem:[%s1562_s28 + $0x70] ss:$8 sps:$4 sm:$0xff]  }
  0x78   : > { %v1142_v34 = vld [vmem:[%s1562_s28 + $0x194] ss:$8 sps:$4 sm:$0xff]   ;;  %v1367_v36 = vmov 1983009808   ;;  %v1151_v39 = vld [vmem:[%s1562_s28 + $0x84] ss:$8 sps:$4 sm:$0xff]  }
  0x79   : > { %694 = vmatpush1.bf16.msra.mxu1 %v1117_v15  ;;  %v299_v37 = vunpack.c.l.s4 %v1367_v36  ;;  %v1144_v40 = vld [vmem:[%s1562_s28 + $0x190] ss:$8 sps:$4 sm:$0xff]   ;;  %v1148_v41 = vld [vmem:[%s1562_s28 + $0x1a4] ss:$8 sps:$4 sm:$0xff]   ;;  %v1153_v42 = vld [vmem:[%s1562_s28 + $0x80] ss:$8 sps:$4 sm:$0xff]  }
  0x7a   : > { %737 = vmatpush1.bf16.msra.mxu0 %v1108_v12  ;;  %695 = vmatprep.subr.bf16.mxu1 %v1121_v16  ;;  %v302_v44 = vshrl.u32 %v301_v38, 7  ;;  %v1157_v45 = vld [vmem:[%s1562_s28 + $0x94] ss:$8 sps:$4 sm:$0xff]   ;;  %v1150_v46 = vld [vmem:[%s1562_s28 + $0x1a0] ss:$8 sps:$4 sm:$0xff]   ;;  %s930_s23 = sshll.u32 %s1558_s10, 3 }
  0x7b   : > { %738 = vmatprep.subr.bf16.mxu0 %v1112_v14  ;;  %v300_v43 = vunpack.c.0.s8 %v299_v37  ;;  %v1154_v47 = vld [vmem:[%s1562_s28 + $0x1b4] ss:$8 sps:$4 sm:$0xff]   ;;  %v1159_v48 = vld [vmem:[%s1562_s28 + $0x90] ss:$8 sps:$4 sm:$0xff]   ;;  %v1163_v49 = vld [vmem:[%s1562_s28 + $0xa4] ss:$8 sps:$4 sm:$0xff]  }
  0x7c   : > { %v287_v51 = vld [vmem:[#allocation5] sm:$0xff]  ;;  %v1156_v54 = vld [vmem:[%s1562_s28 + $0x1b0] ss:$8 sps:$4 sm:$0xff]   ;;  %v1169_v59 = vld [vmem:[%s1562_s28 + $0xb4] ss:$8 sps:$4 sm:$0xff]   ;;  %s1010_s26 = sshll.u32 %s1410_s16, 7 }
  0x7d   : > { %696 = vmatpush1.bf16.msra.mxu1 %v1123_v19  ;;  %v303_v50 = vsub.s32 %v300_v43, %v302_v44  ;;  %v297_v52 = vcombine.high %v287_v51, %v287_v51  ;;  %v1160_v55 = vld [vmem:[%s1562_s28 + $0x1c4] ss:$8 sps:$4 sm:$0xff]   ;;  %v1165_v56 = vld [vmem:[%s1562_s28 + $0xa0] ss:$8 sps:$4 sm:$0xff]   ;;  %v1171_v62 = vld [vmem:[%s1562_s28 + $0xb0] ss:$8 sps:$4 sm:$0xff]   ;;  %s1651_s17 = scalar_lea.hbm %s1698_s3, %s1010_s26 }
  0x7e   : > { %739 = vmatpush1.bf16.msra.mxu0 %v1114_v17  ;;  %697 = vmatprep.subr.bf16.mxu1 %v1127_v20  ;;  %v1162_v61 = vld [vmem:[%s1562_s28 + $0x1c0] ss:$8 sps:$4 sm:$0xff]   ;;  %v1166_v63 = vld [vmem:[%s1562_s28 + $0x1d4] ss:$8 sps:$4 sm:$0xff]   ;;  %v1175_v1 = vld [vmem:[%s1562_s28 + $0xc4] ss:$8 sps:$4 sm:$0xff]  }
  0x7f   : > { %740 = vmatprep.subr.bf16.mxu0 %v1118_v18  ;;  %v304_v53 = vrot.slane %v287_v51, %v303_v50  ;;  %v311_v57 = vrot.slane %v297_v52, %v303_v50  ;;  %v289_v2 = vld [vmem:[#allocation7] sm:$0x7]  ;;  %v1168_v3 = vld [vmem:[%s1562_s28 + $0x1d0] ss:$8 sps:$4 sm:$0xff]   ;;  %v1181_v6 = vld [vmem:[%s1562_s28 + $0xd4] ss:$8 sps:$4 sm:$0xff]  }
  0x80   : > { %292 = vperm.xlu0 %1093, %v289_v2   ;;  %v1177_v4 = vld [vmem:[%s1562_s28 + $0xc0] ss:$8 sps:$4 sm:$0xff]   ;;  %v1172_v5 = vld [vmem:[%s1562_s28 + $0x1e4] ss:$8 sps:$4 sm:$0xff]   ;;  %v1183_v8 = vld [vmem:[%s1562_s28 + $0xd0] ss:$8 sps:$4 sm:$0xff]  }
  0x81   : > { %698 = vmatpush1.bf16.msra.mxu1 %v1129_v23  ;;  %v312_v58 = vcombine.high %v304_v53, %v304_v53  ;;  %v313_v60 = vcombine.high %v311_v57, %v311_v57  ;;  %v1174_v7 = vld [vmem:[%s1562_s28 + $0x1e0] ss:$8 sps:$4 sm:$0xff]   ;;  %v1178_v9 = vld [vmem:[%s1562_s28 + $0x1f4] ss:$8 sps:$4 sm:$0xff]   ;;  %v1188_v10 = vld [vmem:[%s1562_s28 + $0xe4] ss:$8 sps:$4 sm:$0xff]  }
  0x82   : > { %741 = vmatpush1.bf16.msra.mxu0 %v1120_v21  ;;  %699 = vmatprep.subr.bf16.mxu1 %v1133_v24  ;;  %v1180_v11 = vld [vmem:[%s1562_s28 + $0x1f0] ss:$8 sps:$4 sm:$0xff]   ;;  %v1190_v12 = vld [vmem:[%s1562_s28 + $0xe0] ss:$8 sps:$4 sm:$0xff]   ;;  %v1187_v13 = vld [vmem:[%s1562_s28 + $0x204] ss:$8 sps:$4 sm:$0xff]  }
  0x83   : > { %742 = vmatprep.subr.bf16.mxu0 %v1124_v22  ;;  %721 = vmatprep.mubr.bf16.mxu1 %v312_v58  ;;  %v1194_v14 = vld [vmem:[%s1562_s28 + $0xf4] ss:$8 sps:$4 sm:$0xff]   ;;  %v1185_v15 = vld [vmem:[%s1562_s28 + $0x200] ss:$8 sps:$4 sm:$0xff]   ;;  %v1196_v16 = vld [vmem:[%s1562_s28 + $0xf0] ss:$8 sps:$4 sm:$0xff]  }
  0x84   : > { %762 = vmatprep.mubr.bf16.mxu0 %v313_v60  ;;  %v1193_v17 = vld [vmem:[%s1562_s28 + $0x214] ss:$8 sps:$4 sm:$0xff]   ;;  %v1191_v18 = vld [vmem:[%s1562_s28 + $0x210] ss:$8 sps:$4 sm:$0xff]   ;;  %v1199_v19 = vld [vmem:[%s1562_s28 + $0x224] ss:$8 sps:$4 sm:$0xff]  }
  0x85   : > { %700 = vmatpush1.bf16.msra.mxu1 %v1135_v27  ;;  %v1197_v20 = vld [vmem:[%s1562_s28 + $0x220] ss:$8 sps:$4 sm:$0xff]   ;;  %v1202_v21 = vld [vmem:[%s1562_s28 + $0x234] ss:$8 sps:$4 sm:$0xff]   ;;  %v1200_v22 = vld [vmem:[%s1562_s28 + $0x230] ss:$8 sps:$4 sm:$0xff]  }
  0x86   : > { %743 = vmatpush1.bf16.msra.mxu0 %v1126_v25  ;;  %701 = vmatprep.subr.bf16.mxu1 %v1139_v28  ;;  %v931_v23 = vld.sshfl [vmem:[#allocation5 + $0x8] sm:$0x3 pattern:$0x76325410]  ;;  %s213_s30 = scalar_lea.vmem [#allocation8], %s930_s23  ;;  %s818_s19 = scalar_lea.sflag [#allocation4], %s1558_s10 }
  0x87   : > { %744 = vmatprep.subr.bf16.mxu0 %v1130_v26  ;;  %s832_s7 = sshll.u32 %s213_s30, 4  ;;  %p1717_p4 = scmp.ne.s32.totalorder %s1706_s24, 0  ;;  %s1653_s7 = int_to_ptr.vmem [resolvable:$true] %s832_s7 }
  0x88   : > { %s1289_s27 = scalar_lea.vmem %s1653_s7, 128  ;;  %s1368_s16 = smov [#allocation8]  }
  0x89   : > { %702 = vmatpush1.bf16.msra.mxu1 %v1141_v31  ;;  %p1290_p8 = scmp.ne.s32.totalorder %s1653_s7, %s1289_s27  ;;  %s1293_s20 = sshll.u32 %s1368_s16, 4  ;;  %s1294_s20 = int_to_ptr.vmem [resolvable:$false] %s1293_s20 }
  0x8a   : > { %745 = vmatpush1.bf16.msra.mxu0 %v1132_v29  ;;  %703 = vmatprep.subr.bf16.mxu1 %v1145_v32  ;;  %s1295_s22 = scalar_lea.vmem %s1294_s20, 256  ;;  %p1296_p2 = scmp.lt.s32.totalorder %s1653_s7, %s1294_s20 }
  0x8b   : > { %746 = vmatprep.subr.bf16.mxu0 %v1136_v30  ;;  %p1291_p5 = pnand %p1290_p8, %p1717_p4  ;;  %p1297_p0 = scmp.lt.s32.totalorder %s1295_s22, %s1289_s27 }
  0x8d   : > { %704 = vmatpush1.bf16.msra.mxu1 %v1147_v35  ;;  %p1292_p10 = pneg %p1291_p5  ;;  %p1298_p9 = por %p1297_p0, %p1296_p2 }
  0x8e   : > { %747 = vmatpush1.bf16.msra.mxu0 %v1138_v33  ;;  %705 = vmatprep.subr.bf16.mxu1 %v1151_v39 }
  0x8f   : > { %748 = vmatprep.subr.bf16.mxu0 %v1142_v34  ;;  %p1299_p6 = pnand %p1298_p9, %p1292_p10 }
  0x91   : > { %706 = vmatpush1.bf16.msra.mxu1 %v1153_v42 }
  0x92   : > { %749 = vmatpush1.bf16.msra.mxu0 %v1144_v40  ;;  %707 = vmatprep.subr.bf16.mxu1 %v1157_v45 }
  0x93   : > { %750 = vmatprep.subr.bf16.mxu0 %v1148_v41 }
  0x95   : > { %708 = vmatpush1.bf16.msra.mxu1 %v1159_v48 }
  0x96   : > { %751 = vmatpush1.bf16.msra.mxu0 %v1150_v46  ;;  %709 = vmatprep.subr.bf16.mxu1 %v1163_v49 }
  0x97   : > { %752 = vmatprep.subr.bf16.mxu0 %v1154_v47 }
  0x99   : > { %710 = vmatpush1.bf16.msra.mxu1 %v1165_v56 }
  0x9a   : > { %753 = vmatpush1.bf16.msra.mxu0 %v1156_v54  ;;  %711 = vmatprep.subr.bf16.mxu1 %v1169_v59 }
  0x9b   : > { %754 = vmatprep.subr.bf16.mxu0 %v1160_v55 }
  0x9d   : > { %712 = vmatpush1.bf16.msra.mxu1 %v1171_v62 }
  0x9e   : > { %755 = vmatpush1.bf16.msra.mxu0 %v1162_v61  ;;  %713 = vmatprep.subr.bf16.mxu1 %v1175_v1 }
  0x9f   : > { %756 = vmatprep.subr.bf16.mxu0 %v1166_v63 }
  0xa1   : > { %714 = vmatpush1.bf16.msra.mxu1 %v1177_v4 }
  0xa2   : > { %757 = vmatpush1.bf16.msra.mxu0 %v1168_v3  ;;  %715 = vmatprep.subr.bf16.mxu1 %v1181_v6 }
  0xa3   : > { %758 = vmatprep.subr.bf16.mxu0 %v1172_v5 }
  0xa5   : > { %716 = vmatpush1.bf16.msra.mxu1 %v1183_v8 }
  0xa6   : > { %759 = vmatpush1.bf16.msra.mxu0 %v1174_v7  ;;  %717 = vmatprep.subr.bf16.mxu1 %v1188_v10 }
  0xa7   : > { %760 = vmatprep.subr.bf16.mxu0 %v1178_v9 }
  0xa9   : > { %718 = vmatpush1.bf16.msra.mxu1 %v1190_v12 }
  0xaa   : > { %761 = vmatpush1.bf16.msra.mxu0 %v1180_v11  ;;  %719 = vmatprep.subr.bf16.mxu1 %v1194_v14 }
  0xab   : > { %771 = vmatprep.subr.bf16.mxu0 %v1187_v13 }
  0xad   : > { %763 = vmatmul.mubr.bf16.vlgmr.msra.gmra.mrb[0].mxu0 %v311_v57  ;;  %720 = vmatpush1.bf16.msra.mxu1 %v1196_v16 }
  0xae   : > { %772 = vmatpush1.bf16.msra.mxu0 %v1185_v15  ;;  %803 = vmatprep.mubr.bf16.mxu0 %v1366_v0 }
  0xaf   : > { %773 = vmatprep.subr.bf16.mxu0 %v1193_v17 }
  0xb0   : > { %722 = vmatmul.mubr.bf16.vlgmr.msra.gmra.mrb[0].mxu1 %v304_v53 }
  0xb2   : > { %774 = vmatpush1.bf16.msra.mxu0 %v1191_v18 }
  0xb3   : > { %775 = vmatprep.subr.bf16.mxu0 %v1199_v19 }
  0xb6   : > { %776 = vmatpush1.bf16.msra.mxu0 %v1197_v20 }
  0xb7   : > { %777 = vmatprep.subr.bf16.mxu0 %v1202_v21 }
  0xba   : > { %778 = vmatpush1.bf16.msra.mxu0 %v1200_v22 }
  0xbd   : > { %1004 = vmatmul.mubr.msk.bf16.vlgmr.msra.gmra.mrb[0].mxu0 %vm685_vm0, %v931_v23 }
  0xff   : > { %v293_v28 = vpop.permute.xlu0 %292 }
 0x183   : > { %v723_v24 = vpop.f32.mrb[0].mxu1 }
 0x184   : > { %v725_v25 = vpop.f32.mrb[1].mxu1  ;;  %v724_v0 = vadd.f32 %v723_v24, %v293_v28 }
 0x185   : > { %v727_v26 = vpop.f32.mrb[2].mxu1  ;;  %v726_v29 = vadd.f32 %v725_v25, %v293_v28 }
 0x186   : > { %v728_v27 = vpop.f32.mrb[3].mxu1 }
 0x190   : > { %v805_v30 = vpop.f32.mrb[0].mxu0 }
 0x191   : > { %v1012_v31 = vadd.f32 %v805_v30, %v724_v0  ;;  %v807_v32 = vpop.f32.mrb[1].mxu0 }
 0x192   : > { %v1014_v33 = vadd.f32 %v807_v32, %v726_v29  ;;  %v809_v34 = vpop.f32.mrb[2].mxu0 }
 0x193   : > { %v810_v35 = vpop.f32.mrb[3].mxu0 }
 0x194   : > { %v814_v36 = vcombine.low %v1012_v31, %v1014_v33 }
 0x196   : > { %816 = vst [vmem:[%s213_s30] sm:$0x77] %v814_v36 }
 0x197   : > { %1302 = shalt.err (!%p1299_p6)
}
 0x198   : > { %s1303_s4 = scalar_lea.hbm %s1651_s17, 128  ;;  %s1307_s10 = scalar_lea.hbm %s1698_s3, 256 }
 0x199   : > { %p1304_p12 = scmp.ne.s32.totalorder %s1651_s17, %s1303_s4  ;;  %p1308_p11 = scmp.lt.u32.totalorder %s1651_s17, %s1698_s3 }
 0x19a   : > { %p1309_p7 = scmp.lt.u32.totalorder %s1307_s10, %s1303_s4  ;;  %p1311_p8 = scmp.lt.u32.totalorder %s1303_s4, %s1651_s17 }
 0x19b   : > { %p1305_p13 = pnand %p1304_p12, %p1717_p4 }
 0x19c   : > { %p1310_p3 = por %p1309_p7, %p1308_p11 }
 0x19d   : > { %p1306_p1 = pneg %p1305_p13 }
 0x19e   : > { %p1312_p5 = por %p1311_p8, %p1310_p3 }
 0x1a0   : > { %p1313_p10 = pnand %p1312_p5, %p1306_p1 }
 0x1a2   : > { %1316 = shalt.err (!%p1313_p10)
}
 0x1a3   : > { %1032 = dma.vmem_to_hbm [thread:$0]  (%p1717_p4), %s1653_s7, 128, %s1651_s17, %s818_s19  }
 0x1a4 PF: > { %s844_s28 = sand.u32 1, %s1347_s12   ;;  %p1718_p2 = scmp.ne.s32.totalorder %s1707_s25, 0 }
 0x1a5   : > { %p1719_p0 = scmp.ge.s32.totalorder %s1359_s15, 2  ;;  %s845_s23 = scalar_lea.sflag [#allocation4], %s844_s28 }
 0x1a7   : > { %p1046_p9 = pnand %p1719_p0, %p1718_p2 }
 0x1a9   : > { %1342 = dma.done.wait (!%p1046_p9), %s845_s23, 128  }
 0x1aa   : > { %1344 = vsyncadd (!%p1046_p9), %s845_s23, 4294967168  ;;  %p17_p6 = scmp.ge.s32.totalorder %s1414_s18, 4   ;;  %s1720_s12 = smov %s1351_s13 }
 0x1ab   : > { %s1721_s13 = smov %s1355_s14  ;;  %s1722_s14 = smov %s1426_s21 }
 0x1ac   : > { %s1723_s15 = smov %s1414_s18  ;;  %19 = sbr.rel (!%p17_p6) target bundleno = 6 (0x6), region = 85 }
 0x1b3   :  { %850 = vsyncpa [#allocation3], 1 }
 0x1b4   :  { %852 = vsyncpa [#allocation3 + $0x1], 1 }
 0x1b5   :  { %853 = vsyncpa [#allocation6], 1 }
 0x1b6   :  { %854 = vsyncpa [#allocation4], 1 }
 0x1b7   :  { %856 = vsyncpa [#allocation4 + $0x1], 1 }

</bundles_post_ra>
